<compile_context>
chip_gen: v7x
topology: tpu7x:2x2x1
jax: 0.10.0
libtpu: 0.0.40
codegen_flags: <defaults>
</compile_context>

<pallas_src>
import functools

import jax
import jax.numpy as jnp
from jax import lax
from jax.experimental import pallas as pl
from jax.experimental.pallas import tpu as pltpu


CHAN_LIST = [64, 128, 256, 128]
CONV_CFG = [  # (kernel, stride, padding) -- mirrors the nn.Sequential in __init__
    (12, 6, 6),
    (8, 4, 4),
    (5, 2, 2),
    (3, 1, 1),
]

LANE = 128


def _round_up(x, m):
    return (x + m - 1) // m * m


# ----------------------------- Pallas kernel --------------------------------

def _matmul_bias_relu_kernel(a_ref, b_ref, bias_ref, o_ref):
    acc = jnp.dot(a_ref[...], b_ref[...], preferred_element_type=jnp.float32)
    o_ref[...] = jnp.maximum(acc + bias_ref[...], 0.0)


def matmul_bias_relu(a, b, bias, *, tm_max=256):
    """Fused relu(a @ b + bias) on the MXU.

    a:    (M, K)   bf16 patch matrix
    b:    (K, Np)  bf16 weights, Np a multiple of 128 (lane-dense stores)
    bias: (1, Np)  f32
    Returns (M, Np) f32.
    """
    M, K = a.shape
    K2, Np = b.shape
    assert K == K2 and Np % LANE == 0

    if M <= tm_max:
        # Single grid step; block dims equal the full array dims, so no
        # (8, 128) divisibility padding and no inter-step pipeline bubbles.
        tm = M
    else:
        # Multiple of 8 (sublane) rows; Pallas masks the ragged final block.
        tm = tm_max
    grid_m = pl.cdiv(M, tm)

    bytes_accessed = (M * K * a.dtype.itemsize + K * Np * b.dtype.itemsize
                      + Np * 4 + M * Np * 4)

    return pl.pallas_call(
        _matmul_bias_relu_kernel,
        out_shape=jax.ShapeDtypeStruct((M, Np), jnp.float32),
        grid_spec=pltpu.PrefetchScalarGridSpec(
            num_scalar_prefetch=0,
            grid=(grid_m,),
            in_specs=[
                pl.BlockSpec((tm, K), lambda i: (i, 0)),    # patch-row tile
                pl.BlockSpec((K, Np), lambda i: (0, 0)),    # full weight matrix
                pl.BlockSpec((1, Np), lambda i: (0, 0)),    # bias row
            ],
            out_specs=pl.BlockSpec((tm, Np), lambda i: (i, 0)),
        ),
        compiler_params=pltpu.CompilerParams(
            dimension_semantics=("parallel",)),
        cost_estimate=pl.CostEstimate(
            flops=2 * M * K * Np,
            transcendentals=0,
            bytes_accessed=bytes_accessed),
    )(a, b, bias)


# ------------------------------ conv plumbing -------------------------------

def conv2d_bias_relu(x_nhwc, w_oihw, bias, k, s, p):
    """PyTorch-semantics Conv2d(kernel=k, stride=s, padding=p) + bias + ReLU."""
    N = x_nhwc.shape[0]
    Cout = w_oihw.shape[0]

    # Cast the activation once; the (duplicated) patch matrix is then bf16,
    # halving its HBM traffic.  Patch feature order is (Cin, kh, kw) flattened
    # (channel-major), which matches w_oihw.reshape(Cout, Cin*kh*kw).
    x_bf16 = x_nhwc.astype(jnp.bfloat16)
    patches = lax.conv_general_dilated_patches(
        x_bf16, filter_shape=(k, k), window_strides=(s, s),
        padding=[(p, p), (p, p)],
        dimension_numbers=("NHWC", "HWIO", "NHWC"))
    _, Hout, Wout, K = patches.shape
    patches = patches.reshape(N * Hout * Wout, K)

    # Lane-pad the output width to a multiple of 128 (zero weights / zero bias
    # in the padding columns; sliced off after the kernel).
    Np = _round_up(Cout, LANE)
    w_mat = w_oihw.reshape(Cout, K).T.astype(jnp.bfloat16)       # (K, Cout)
    w_mat = jnp.pad(w_mat, ((0, 0), (0, Np - Cout)))
    bias_row = jnp.pad(bias.astype(jnp.float32), (0, Np - Cout)).reshape(1, Np)

    out = matmul_bias_relu(patches, w_mat, bias_row)             # (M, Np) f32
    return out[:, :Cout].reshape(N, Hout, Wout, Cout)


def avg_pool_scale(x_nhwc, scale):
    """nn.AvgPool2d(scale, scale, padding=scale//2), count_include_pad=True.

    kernel == stride => non-overlapping windows, so pad+reshape+mean is exact.
    """
    if scale <= 1:
        return x_nhwc
    p = scale // 2
    N, H, W, C = x_nhwc.shape
    xp = jnp.pad(x_nhwc, ((0, 0), (p, p), (p, p), (0, 0)))
    Hp, Wp = H + 2 * p, W + 2 * p
    Hout = (Hp - scale) // scale + 1
    Wout = (Wp - scale) // scale + 1
    xp = xp[:, :Hout * scale, :Wout * scale, :]
    xp = xp.reshape(N, Hout, scale, Wout, scale, C)
    return xp.mean(axis=(2, 4))


# ------------------------------- FCN module ---------------------------------

def init_fcn_params(key, in_channels):
    """Deterministic PyTorch-style (uniform +/- 1/sqrt(fan_in)) conv params."""
    params = []
    cin = in_channels
    for (k, _, _), cout in zip(CONV_CFG, CHAN_LIST):
        key, kw, kb = jax.random.split(key, 3)
        fan_in = cin * k * k
        bound = 1.0 / float(jnp.sqrt(jnp.float32(fan_in)))
        w = jax.random.uniform(kw, (cout, cin, k, k), jnp.float32, -bound, bound)
        b = jax.random.uniform(kb, (cout,), jnp.float32, -bound, bound)
        params.append((w, b))
        cin = cout
    return params


def fcn_forward(params, x_nchw, scale):
    x = jnp.transpose(x_nchw, (0, 2, 3, 1))   # NCHW -> NHWC
    x = avg_pool_scale(x, scale)
    for (w, b), (k, s, p) in zip(params, CONV_CFG):
        x = conv2d_bias_relu(x, w, b, k, s, p)
    return jnp.transpose(x, (0, 3, 1, 2))     # NHWC -> NCHW (PyTorch output layout)


def fcn_forward_ref(params, x_nchw, scale):
    """Pure-JAX reference (lax conv) with the same bf16-operand / f32-accumulate
    precision as the Pallas path, used only to validate the kernel."""
    x = jnp.transpose(x_nchw, (0, 2, 3, 1))
    x = avg_pool_scale(x, scale)
    for (w, b), (k, s, p) in zip(params, CONV_CFG):
        w_hwio = jnp.transpose(w, (2, 3, 1, 0)).astype(jnp.bfloat16)
        y = lax.conv_general_dilated(
            x.astype(jnp.bfloat16), w_hwio, window_strides=(s, s),
            padding=[(p, p), (p, p)],
            dimension_numbers=("NHWC", "HWIO", "NHWC"),
            preferred_element_type=jnp.float32)
        x = jnp.maximum(y + b, 0.0)
    return jnp.transpose(x, (0, 3, 1, 2))


if __name__ == "__main__":
    key = jax.random.PRNGKey(0)
    in_channels = 4
    scale = 2                      # exercises the AvgPool2d(scale, scale, pad=scale//2) branch
    N, H, W = 2, 96, 96
    kp, kx = jax.random.split(key)

    params = init_fcn_params(kp, in_channels)
    x = jax.random.normal(kx, (N, in_channels, H, W), jnp.float32)

    fwd = jax.jit(functools.partial(fcn_forward, scale=scale))
    out = jax.block_until_ready(fwd(params, x))

    ref = fcn_forward_ref(params, x, scale)
    assert out.shape == ref.shape, (out.shape, ref.shape)
    err = float(jnp.max(jnp.abs(out - ref)))
    assert jnp.allclose(out, ref, atol=2e-3, rtol=2e-3), f"max abs err {err}"

    print("KERNEL_OK")
</pallas_src>

<mosaic_0001>
module attributes {stable_mosaic.version = 11 : i64} {
  func.func @_matmul_bias_relu_kernel(%arg0: i32, %arg1: memref<162x576xbf16, #tpu.memory_space<vmem>>, %arg2: memref<576x128xbf16, #tpu.memory_space<vmem>>, %arg3: memref<1x128xf32, #tpu.memory_space<vmem>>, %arg4: memref<162x128xf32, #tpu.memory_space<vmem>>) attributes {dimension_semantics = [#tpu.dimension_semantics<parallel>], iteration_bounds = array<i64: 1>, scalar_prefetch = 0 : i64, scratch_operands = 0 : i64, tpu.core_type = #tpu.core_type<tc>, window_params = [{transform_indices = @transform_0, window_bounds = array<i64: 162, 576>}, {pipeline_mode = #tpu.pipeline_mode<synchronous>, transform_indices = @transform_1, window_bounds = array<i64: 576, 128>}, {pipeline_mode = #tpu.pipeline_mode<synchronous>, transform_indices = @transform_2, window_bounds = array<i64: 1, 128>}, {transform_indices = @transform_3, window_bounds = array<i64: 162, 128>}]} {
    %c0 = arith.constant 0 : index
    %c0_0 = arith.constant 0 : index
    %0 = vector.load %arg1[%c0, %c0_0] : memref<162x576xbf16, #tpu.memory_space<vmem>>, vector<162x576xbf16>
    %c0_1 = arith.constant 0 : index
    %c0_2 = arith.constant 0 : index
    %1 = vector.load %arg2[%c0_1, %c0_2] : memref<576x128xbf16, #tpu.memory_space<vmem>>, vector<576x128xbf16>
    %cst = arith.constant dense<0.000000e+00> : vector<162x128xf32>
    %2 = tpu.matmul %0, %1, %cst {dimension_numbers = #tpu.dot_dimension_numbers<[1], [0], [0], [1], [0, 0, 1, 1], [], []>} : vector<162x576xbf16>, vector<576x128xbf16>, vector<162x128xf32> -> vector<162x128xf32>
    %c0_3 = arith.constant 0 : index
    %c0_4 = arith.constant 0 : index
    %3 = vector.load %arg3[%c0_3, %c0_4] : memref<1x128xf32, #tpu.memory_space<vmem>>, vector<1x128xf32>
    %4 = vector.broadcast %3 : vector<1x128xf32> to vector<162x128xf32>
    %5 = arith.addf %2, %4 : vector<162x128xf32>
    %cst_5 = arith.constant 0.000000e+00 : f32
    %6 = vector.broadcast %cst_5 : f32 to vector<162x128xf32>
    %7 = arith.maximumf %5, %6 : vector<162x128xf32>
    %c0_6 = arith.constant 0 : index
    %c0_7 = arith.constant 0 : index
    %8 = vector.load %arg4[%c0_6, %c0_7] : memref<162x128xf32, #tpu.memory_space<vmem>>, vector<162x128xf32>
    tpu.vector_store %arg4[%c0_6, %c0_7], %7 {strides = array<i32>} : memref<162x128xf32, #tpu.memory_space<vmem>>, vector<162x128xf32>,
    return
  }
  func.func @transform_0(%arg0: i32) -> (i32, i32) {
    %c0_i32 = arith.constant 0 : i32
    %c0_i32_0 = arith.constant 0 : i32
    return %arg0, %c0_i32 : i32, i32
  }
  func.func @transform_1(%arg0: i32) -> (i32, i32) {
    %c0_i32 = arith.constant 0 : i32
    %c0_i32_0 = arith.constant 0 : i32
    %c0_i32_1 = arith.constant 0 : i32
    return %c0_i32, %c0_i32_0 : i32, i32
  }
  func.func @transform_2(%arg0: i32) -> (i32, i32) {
    %c0_i32 = arith.constant 0 : i32
    %c0_i32_0 = arith.constant 0 : i32
    %c0_i32_1 = arith.constant 0 : i32
    return %c0_i32, %c0_i32_0 : i32, i32
  }
  func.func @transform_3(%arg0: i32) -> (i32, i32) {
    %c0_i32 = arith.constant 0 : i32
    %c0_i32_0 = arith.constant 0 : i32
    return %arg0, %c0_i32 : i32, i32
  }
}

module attributes {stable_mosaic.version = 11 : i64} {
  func.func @_matmul_bias_relu_kernel(%arg0: i32, %arg1: memref<18x4096xbf16, #tpu.memory_space<vmem>>, %arg2: memref<4096x128xbf16, #tpu.memory_space<vmem>>, %arg3: memref<1x128xf32, #tpu.memory_space<vmem>>, %arg4: memref<18x128xf32, #tpu.memory_space<vmem>>) attributes {dimension_semantics = [#tpu.dimension_semantics<parallel>], iteration_bounds = array<i64: 1>, scalar_prefetch = 0 : i64, scratch_operands = 0 : i64, tpu.core_type = #tpu.core_type<tc>, window_params = [{transform_indices = @transform_0, window_bounds = array<i64: 18, 4096>}, {pipeline_mode = #tpu.pipeline_mode<synchronous>, transform_indices = @transform_1, window_bounds = array<i64: 4096, 128>}, {pipeline_mode = #tpu.pipeline_mode<synchronous>, transform_indices = @transform_2, window_bounds = array<i64: 1, 128>}, {transform_indices = @transform_3, window_bounds = array<i64: 18, 128>}]} {
    %c0 = arith.constant 0 : index
    %c0_0 = arith.constant 0 : index
    %0 = vector.load %arg1[%c0, %c0_0] : memref<18x4096xbf16, #tpu.memory_space<vmem>>, vector<18x4096xbf16>
    %c0_1 = arith.constant 0 : index
    %c0_2 = arith.constant 0 : index
    %1 = vector.load %arg2[%c0_1, %c0_2] : memref<4096x128xbf16, #tpu.memory_space<vmem>>, vector<4096x128xbf16>
    %cst = arith.constant dense<0.000000e+00> : vector<18x128xf32>
    %2 = tpu.matmul %0, %1, %cst {dimension_numbers = #tpu.dot_dimension_numbers<[1], [0], [0], [1], [0, 0, 1, 1], [], []>} : vector<18x4096xbf16>, vector<4096x128xbf16>, vector<18x128xf32> -> vector<18x128xf32>
    %c0_3 = arith.constant 0 : index
    %c0_4 = arith.constant 0 : index
    %3 = vector.load %arg3[%c0_3, %c0_4] : memref<1x128xf32, #tpu.memory_space<vmem>>, vector<1x128xf32>
    %4 = vector.broadcast %3 : vector<1x128xf32> to vector<18x128xf32>
    %5 = arith.addf %2, %4 : vector<18x128xf32>
    %cst_5 = arith.constant 0.000000e+00 : f32
    %6 = vector.broadcast %cst_5 : f32 to vector<18x128xf32>
    %7 = arith.maximumf %5, %6 : vector<18x128xf32>
    %c0_6 = arith.constant 0 : index
    %c0_7 = arith.constant 0 : index
    %8 = vector.load %arg4[%c0_6, %c0_7] : memref<18x128xf32, #tpu.memory_space<vmem>>, vector<18x128xf32>
    tpu.vector_store %arg4[%c0_6, %c0_7], %7 {strides = array<i32>} : memref<18x128xf32, #tpu.memory_space<vmem>>, vector<18x128xf32>,
    return
  }
  func.func @transform_0(%arg0: i32) -> (i32, i32) {
    %c0_i32 = arith.constant 0 : i32
    %c0_i32_0 = arith.constant 0 : i32
    return %arg0, %c0_i32 : i32, i32
  }
  func.func @transform_1(%arg0: i32) -> (i32, i32) {
    %c0_i32 = arith.constant 0 : i32
    %c0_i32_0 = arith.constant 0 : i32
    %c0_i32_1 = arith.constant 0 : i32
    return %c0_i32, %c0_i32_0 : i32, i32
  }
  func.func @transform_2(%arg0: i32) -> (i32, i32) {
    %c0_i32 = arith.constant 0 : i32
    %c0_i32_0 = arith.constant 0 : i32
    %c0_i32_1 = arith.constant 0 : i32
    return %c0_i32, %c0_i32_0 : i32, i32
  }
  func.func @transform_3(%arg0: i32) -> (i32, i32) {
    %c0_i32 = arith.constant 0 : i32
    %c0_i32_0 = arith.constant 0 : i32
    return %arg0, %c0_i32 : i32, i32
  }
}

module attributes {stable_mosaic.version = 11 : i64} {
  func.func @_matmul_bias_relu_kernel(%arg0: i32, %arg1: memref<8x3200xbf16, #tpu.memory_space<vmem>>, %arg2: memref<3200x256xbf16, #tpu.memory_space<vmem>>, %arg3: memref<1x256xf32, #tpu.memory_space<vmem>>, %arg4: memref<8x256xf32, #tpu.memory_space<vmem>>) attributes {dimension_semantics = [#tpu.dimension_semantics<parallel>], iteration_bounds = array<i64: 1>, scalar_prefetch = 0 : i64, scratch_operands = 0 : i64, tpu.core_type = #tpu.core_type<tc>, window_params = [{transform_indices = @transform_0, window_bounds = array<i64: 8, 3200>}, {pipeline_mode = #tpu.pipeline_mode<synchronous>, transform_indices = @transform_1, window_bounds = array<i64: 3200, 256>}, {pipeline_mode = #tpu.pipeline_mode<synchronous>, transform_indices = @transform_2, window_bounds = array<i64: 1, 256>}, {transform_indices = @transform_3, window_bounds = array<i64: 8, 256>}]} {
    %c0 = arith.constant 0 : index
    %c0_0 = arith.constant 0 : index
    %0 = vector.load %arg1[%c0, %c0_0] : memref<8x3200xbf16, #tpu.memory_space<vmem>>, vector<8x3200xbf16>
    %c0_1 = arith.constant 0 : index
    %c0_2 = arith.constant 0 : index
    %1 = vector.load %arg2[%c0_1, %c0_2] : memref<3200x256xbf16, #tpu.memory_space<vmem>>, vector<3200x256xbf16>
    %cst = arith.constant dense<0.000000e+00> : vector<8x256xf32>
    %2 = tpu.matmul %0, %1, %cst {dimension_numbers = #tpu.dot_dimension_numbers<[1], [0], [0], [1], [0, 0, 1, 1], [], []>} : vector<8x3200xbf16>, vector<3200x256xbf16>, vector<8x256xf32> -> vector<8x256xf32>
    %c0_3 = arith.constant 0 : index
    %c0_4 = arith.constant 0 : index
    %3 = vector.load %arg3[%c0_3, %c0_4] : memref<1x256xf32, #tpu.memory_space<vmem>>, vector<1x256xf32>
    %4 = vector.broadcast %3 : vector<1x256xf32> to vector<8x256xf32>
    %5 = arith.addf %2, %4 : vector<8x256xf32>
    %cst_5 = arith.constant 0.000000e+00 : f32
    %6 = vector.broadcast %cst_5 : f32 to vector<8x256xf32>
    %7 = arith.maximumf %5, %6 : vector<8x256xf32>
    %c0_6 = arith.constant 0 : index
    %c0_7 = arith.constant 0 : index
    %8 = vector.load %arg4[%c0_6, %c0_7] : memref<8x256xf32, #tpu.memory_space<vmem>>, vector<8x256xf32>
    tpu.vector_store %arg4[%c0_6, %c0_7], %7 {strides = array<i32>} : memref<8x256xf32, #tpu.memory_space<vmem>>, vector<8x256xf32>,
    return
  }
  func.func @transform_0(%arg0: i32) -> (i32, i32) {
    %c0_i32 = arith.constant 0 : i32
    %c0_i32_0 = arith.constant 0 : i32
    return %arg0, %c0_i32 : i32, i32
  }
  func.func @transform_1(%arg0: i32) -> (i32, i32) {
    %c0_i32 = arith.constant 0 : i32
    %c0_i32_0 = arith.constant 0 : i32
    %c0_i32_1 = arith.constant 0 : i32
    return %c0_i32, %c0_i32_0 : i32, i32
  }
  func.func @transform_2(%arg0: i32) -> (i32, i32) {
    %c0_i32 = arith.constant 0 : i32
    %c0_i32_0 = arith.constant 0 : i32
    %c0_i32_1 = arith.constant 0 : i32
    return %c0_i32, %c0_i32_0 : i32, i32
  }
  func.func @transform_3(%arg0: i32) -> (i32, i32) {
    %c0_i32 = arith.constant 0 : i32
    %c0_i32_0 = arith.constant 0 : i32
    return %arg0, %c0_i32 : i32, i32
  }
}

module attributes {stable_mosaic.version = 11 : i64} {
  func.func @_matmul_bias_relu_kernel(%arg0: i32, %arg1: memref<8x2304xbf16, #tpu.memory_space<vmem>>, %arg2: memref<2304x128xbf16, #tpu.memory_space<vmem>>, %arg3: memref<1x128xf32, #tpu.memory_space<vmem>>, %arg4: memref<8x128xf32, #tpu.memory_space<vmem>>) attributes {dimension_semantics = [#tpu.dimension_semantics<parallel>], iteration_bounds = array<i64: 1>, scalar_prefetch = 0 : i64, scratch_operands = 0 : i64, tpu.core_type = #tpu.core_type<tc>, window_params = [{transform_indices = @transform_0, window_bounds = array<i64: 8, 2304>}, {pipeline_mode = #tpu.pipeline_mode<synchronous>, transform_indices = @transform_1, window_bounds = array<i64: 2304, 128>}, {pipeline_mode = #tpu.pipeline_mode<synchronous>, transform_indices = @transform_2, window_bounds = array<i64: 1, 128>}, {transform_indices = @transform_3, window_bounds = array<i64: 8, 128>}]} {
    %c0 = arith.constant 0 : index
    %c0_0 = arith.constant 0 : index
    %0 = vector.load %arg1[%c0, %c0_0] : memref<8x2304xbf16, #tpu.memory_space<vmem>>, vector<8x2304xbf16>
    %c0_1 = arith.constant 0 : index
    %c0_2 = arith.constant 0 : index
    %1 = vector.load %arg2[%c0_1, %c0_2] : memref<2304x128xbf16, #tpu.memory_space<vmem>>, vector<2304x128xbf16>
    %cst = arith.constant dense<0.000000e+00> : vector<8x128xf32>
    %2 = tpu.matmul %0, %1, %cst {dimension_numbers = #tpu.dot_dimension_numbers<[1], [0], [0], [1], [0, 0, 1, 1], [], []>} : vector<8x2304xbf16>, vector<2304x128xbf16>, vector<8x128xf32> -> vector<8x128xf32>
    %c0_3 = arith.constant 0 : index
    %c0_4 = arith.constant 0 : index
    %3 = vector.load %arg3[%c0_3, %c0_4] : memref<1x128xf32, #tpu.memory_space<vmem>>, vector<1x128xf32>
    %4 = vector.broadcast %3 : vector<1x128xf32> to vector<8x128xf32>
    %5 = arith.addf %2, %4 : vector<8x128xf32>
    %cst_5 = arith.constant 0.000000e+00 : f32
    %6 = vector.broadcast %cst_5 : f32 to vector<8x128xf32>
    %7 = arith.maximumf %5, %6 : vector<8x128xf32>
    %c0_6 = arith.constant 0 : index
    %c0_7 = arith.constant 0 : index
    %8 = vector.load %arg4[%c0_6, %c0_7] : memref<8x128xf32, #tpu.memory_space<vmem>>, vector<8x128xf32>
    tpu.vector_store %arg4[%c0_6, %c0_7], %7 {strides = array<i32>} : memref<8x128xf32, #tpu.memory_space<vmem>>, vector<8x128xf32>,
    return
  }
  func.func @transform_0(%arg0: i32) -> (i32, i32) {
    %c0_i32 = arith.constant 0 : i32
    %c0_i32_0 = arith.constant 0 : i32
    return %arg0, %c0_i32 : i32, i32
  }
  func.func @transform_1(%arg0: i32) -> (i32, i32) {
    %c0_i32 = arith.constant 0 : i32
    %c0_i32_0 = arith.constant 0 : i32
    %c0_i32_1 = arith.constant 0 : i32
    return %c0_i32, %c0_i32_0 : i32, i32
  }
  func.func @transform_2(%arg0: i32) -> (i32, i32) {
    %c0_i32 = arith.constant 0 : i32
    %c0_i32_0 = arith.constant 0 : i32
    %c0_i32_1 = arith.constant 0 : i32
    return %c0_i32, %c0_i32_0 : i32, i32
  }
  func.func @transform_3(%arg0: i32) -> (i32, i32) {
    %c0_i32 = arith.constant 0 : i32
    %c0_i32_0 = arith.constant 0 : i32
    return %arg0, %c0_i32 : i32, i32
  }
}

</mosaic_0001>

<bundles_post_ra>
// kernel: fcn_forward.4
= control target key start
LH: loop header
LB: loop body
LE: loop exit
PB: predicated region body
PF: predicated region fallthrough
CT: control target
= control target key end

     0   :  { %v1543_v24 = vmov 0.0   ;;  %vm1544_vm0 = vmmov 0   ;;  %vm640_vm1 = vcmask 523264   ;;  %s2021_s1 = inlined_call_operand.vmem [shape: bf16[576,128], index: 1, kind: input, shape index: {}]   ;;  %s2022_s0 = inlined_call_operand.vmem [shape: bf16[162,576], index: 0, kind: input, shape index: {}]   ;;  %s2023_s2 = inlined_call_operand.vmem [shape: f32[1,128], index: 2, kind: input, shape index: {}]   ;;  %s2024_s3 = inlined_call_operand.vmem [shape: f32[162,128], index: 3, kind: output, shape index: {}]  }
   0x1   :  { %v1432_v0 = vld [vmem:[%s2021_s1 + $0x40] sm:$0xff]   ;;  %v1434_v2 = vld [vmem:[%s2021_s1 + $0x48] sm:$0xff]   ;;  %v1436_v4 = vld [vmem:[%s2021_s1 + $0x50] sm:$0xff]  }
   0x2   :  { %v1433_v1 = vld [vmem:[%s2021_s1] sm:$0xff]   ;;  %1183 = vmatprep.subr.bf16.mxu0 %v1432_v0  ;;  %1414 = vmatprep.subr.bf16.mxu1 %v1432_v0  ;;  %v1435_v3 = vld [vmem:[%s2021_s1 + $0x8] sm:$0xff]   ;;  %v1437_v5 = vld [vmem:[%s2021_s1 + $0x10] sm:$0xff]  }
   0x3   :  { %1184 = vmatpush3.bf16.msra.mxu0 %v1433_v1  ;;  %1422 = vmatpush3.bf16.msra.mxu1 %v1433_v1  ;;  %v1438_v6 = vld [vmem:[%s2021_s1 + $0x58] sm:$0xff]   ;;  %v1440_v8 = vld [vmem:[%s2021_s1 + $0x60] sm:$0xff]   ;;  %v1442_v10 = vld [vmem:[%s2021_s1 + $0x68] sm:$0xff]  }
   0x4   :  { %1185 = vmatprep.subr.bf16.mxu0 %v1434_v2  ;;  %1415 = vmatprep.subr.bf16.mxu1 %v1434_v2  ;;  %v1439_v7 = vld [vmem:[%s2021_s1 + $0x18] sm:$0xff]   ;;  %v1441_v9 = vld [vmem:[%s2021_s1 + $0x20] sm:$0xff]   ;;  %v1453_v12 = vld [vmem:[%s2022_s0 + $0xf4] ss:$20 sps:$4 sm:$0xff]  }
   0x5   :  { %v1450_v11 = vld [vmem:[%s2022_s0 + $0x4] ss:$20 sps:$4 sm:$0xff]   ;;  %v1443_v13 = vld [vmem:[%s2021_s1 + $0x28] sm:$0xff]   ;;  %v1444_v14 = vld [vmem:[%s2021_s1 + $0x70] sm:$0xff]   ;;  %754 = vmatprep.mubr.bf16.mxu1 %v1453_v12 }
   0x6   :  { %706 = vmatprep.mubr.bf16.mxu0 %v1450_v11  ;;  %v1445_v15 = vld [vmem:[%s2021_s1 + $0x30] sm:$0xff]   ;;  %v1446_v16 = vld [vmem:[%s2021_s1 + $0x78] sm:$0xff]   ;;  %v1455_v18 = vld [vmem:[%s2021_s1 + $0xc0] sm:$0xff]  }
   0x7   :  { %1186 = vmatpush3.bf16.msra.mxu0 %v1435_v3  ;;  %1423 = vmatpush3.bf16.msra.mxu1 %v1435_v3  ;;  %v1447_v17 = vld [vmem:[%s2021_s1 + $0x38] sm:$0xff]   ;;  %v1448_v19 = vld [vmem:[%s2022_s0] ss:$20 sps:$4 sm:$0xff]   ;;  %v1451_v20 = vld [vmem:[%s2022_s0 + $0xf0] ss:$20 sps:$4 sm:$0xff]  }
   0x8   :  { %1187 = vmatprep.subr.bf16.mxu0 %v1436_v4  ;;  %1416 = vmatprep.subr.bf16.mxu1 %v1436_v4  ;;  %v1454_v21 = vld [vmem:[%s2021_s1 + $0x100] sm:$0xff]   ;;  %v1459_v25 = vld [vmem:[%s2022_s0 + $0x11c] ss:$20 sps:$4 sm:$0xff]   ;;  %v1463_v26 = vld [vmem:[%s2021_s1 + $0xc8] sm:$0xff]  }
   0x9   :  { %v1456_v22 = vld [vmem:[%s2021_s1 + $0x80] sm:$0xff]   ;;  %v1464_v27 = vld [vmem:[%s2021_s1 + $0x88] sm:$0xff]   ;;  %v1465_v30 = vld [vmem:[%s2021_s1 + $0xd0] sm:$0xff]  }
   0xa   :  { %v1457_v23 = vld [vmem:[%s2022_s0 + $0x2c] ss:$20 sps:$4 sm:$0xff]   ;;  %v1461_v29 = vld [vmem:[%s2022_s0 + $0x28] ss:$20 sps:$4 sm:$0xff]   ;;  %v1467_v32 = vld [vmem:[%s2021_s1 + $0x90] sm:$0xff]  }
   0xb   :  { %1188 = vmatpush3.bf16.msra.mxu0 %v1437_v5  ;;  %1424 = vmatpush3.bf16.msra.mxu1 %v1437_v5  ;;  %v1466_v28 = vld [vmem:[%s2021_s1 + $0x108] sm:$0xff]   ;;  %v1470_v34 = vld [vmem:[%s2022_s0 + $0x144] ss:$20 sps:$4 sm:$0xff]   ;;  %v1484_v36 = vld [vmem:[%s2021_s1 + $0x110] sm:$0xff]  }
   0xc   :  { %1189 = vmatprep.subr.bf16.mxu0 %v1438_v6  ;;  %1417 = vmatprep.subr.bf16.mxu1 %v1438_v6  ;;  %v1462_v31 = vld [vmem:[%s2022_s0 + $0x118] ss:$20 sps:$4 sm:$0xff]   ;;  %v1468_v33 = vld [vmem:[%s2022_s0 + $0x54] ss:$20 sps:$4 sm:$0xff]   ;;  %v1472_v38 = vld [vmem:[%s2022_s0 + $0x50] ss:$20 sps:$4 sm:$0xff]  }
   0xd   :  { %v1474_v35 = vld [vmem:[%s2021_s1 + $0xd8] sm:$0xff]   ;;  %v1473_v39 = vld [vmem:[%s2022_s0 + $0x140] ss:$20 sps:$4 sm:$0xff]   ;;  %v1485_v45 = vld [vmem:[%s2021_s1 + $0xe8] sm:$0xff]  }
   0xe   :  { %v1475_v37 = vld [vmem:[%s2021_s1 + $0x98] sm:$0xff]   ;;  %v1480_v40 = vld [vmem:[%s2021_s1 + $0xe0] sm:$0xff]   ;;  %v1486_v46 = vld [vmem:[%s2021_s1 + $0xa8] sm:$0xff]  }
   0xf   :  { %1190 = vmatpush3.bf16.msra.mxu0 %v1439_v7  ;;  %1425 = vmatpush3.bf16.msra.mxu1 %v1439_v7  ;;  %v1476_v41 = vld [vmem:[%s2022_s0 + $0x7c] ss:$20 sps:$4 sm:$0xff]   ;;  %v1478_v42 = vld [vmem:[%s2022_s0 + $0x16c] ss:$20 sps:$4 sm:$0xff]   ;;  %v1487_v51 = vld [vmem:[%s2022_s0 + $0xa4] ss:$20 sps:$4 sm:$0xff]  }
  0x10   :  { %1191 = vmatprep.subr.bf16.mxu0 %v1440_v8  ;;  %1418 = vmatprep.subr.bf16.mxu1 %v1440_v8  ;;  %v1483_v43 = vld [vmem:[%s2021_s1 + $0xa0] sm:$0xff]   ;;  %v1496_v44 = vld [vmem:[%s2021_s1 + $0x118] sm:$0xff]   ;;  %v75_v47 = vld [vmem:[%s2022_s0 + $0x190] sm:$0x11] }
  0x11   :  { %v1492_v48 = vld [vmem:[%s2021_s1 + $0xf0] sm:$0xff]   ;;  %v1481_v49 = vld [vmem:[%s2022_s0 + $0x78] ss:$20 sps:$4 sm:$0xff]   ;;  %v1482_v50 = vld [vmem:[%s2022_s0 + $0x168] ss:$20 sps:$4 sm:$0xff]   ;;  %v1132_v52 = vcombine.high %v75_v47, %v75_v47  ;;  %v1131_v57 = vcombine.low %v75_v47, %v75_v47 }
  0x12   :  { %v1493_v53 = vld [vmem:[%s2021_s1 + $0xb0] sm:$0xff]   ;;  %v1494_v54 = vld [vmem:[%s2021_s1 + $0xf8] sm:$0xff]   ;;  %v1497_v58 = vld [vmem:[%s2022_s0 + $0xcc] ss:$20 sps:$4 sm:$0xff]  }
  0x13   :  { %1192 = vmatpush3.bf16.msra.mxu0 %v1441_v9  ;;  %1426 = vmatpush3.bf16.msra.mxu1 %v1441_v9  ;;  %v1495_v55 = vld [vmem:[%s2021_s1 + $0xb8] sm:$0xff]   ;;  %v1490_v56 = vld [vmem:[%s2022_s0 + $0xa0] ss:$20 sps:$4 sm:$0xff]   ;;  %v1505_v63 = vld [vmem:[%s2022_s0 + $0x30] ss:$20 sps:$4 sm:$0xff]  }
  0x14   :  { %1193 = vmatprep.subr.bf16.mxu0 %v1442_v10  ;;  %1419 = vmatprep.subr.bf16.mxu1 %v1442_v10  ;;  %v1501_v59 = vld [vmem:[%s2022_s0 + $0xc] ss:$20 sps:$4 sm:$0xff]   ;;  %v1499_v60 = vld [vmem:[%s2022_s0 + $0x8] ss:$20 sps:$4 sm:$0xff]   ;;  %v1506_v0 = vld [vmem:[%s2022_s0 + $0x10] ss:$20 sps:$4 sm:$0xff]  }
  0x15   :  { %v1502_v61 = vld [vmem:[%s2022_s0 + $0xc8] ss:$20 sps:$4 sm:$0xff]   ;;  %v1509_v2 = vld [vmem:[%s2022_s0 + $0x58] ss:$20 sps:$4 sm:$0xff]   ;;  %v1513_v5 = vld [vmem:[%s2022_s0 + $0x80] ss:$20 sps:$4 sm:$0xff]  }
  0x16   :  { %v1503_v62 = vld [vmem:[%s2022_s0 + $0x34] ss:$20 sps:$4 sm:$0xff]   ;;  %v1507_v1 = vld [vmem:[%s2022_s0 + $0x5c] ss:$20 sps:$4 sm:$0xff]   ;;  %v1510_v3 = vld [vmem:[%s2022_s0 + $0x38] ss:$20 sps:$4 sm:$0xff]  }
  0x17   :  { %1194 = vmatpush3.bf16.msra.mxu0 %v1443_v13  ;;  %1427 = vmatpush3.bf16.msra.mxu1 %v1443_v13  ;;  %v1511_v4 = vld [vmem:[%s2022_s0 + $0x84] ss:$20 sps:$4 sm:$0xff]   ;;  %v1514_v6 = vld [vmem:[%s2022_s0 + $0x60] ss:$20 sps:$4 sm:$0xff]   ;;  %v1517_v8 = vld [vmem:[%s2022_s0 + $0xa8] ss:$20 sps:$4 sm:$0xff]  }
  0x18   :  { %1195 = vmatprep.subr.bf16.mxu0 %v1444_v14  ;;  %1420 = vmatprep.subr.bf16.mxu1 %v1444_v14  ;;  %v1515_v7 = vld [vmem:[%s2022_s0 + $0xac] ss:$20 sps:$4 sm:$0xff]   ;;  %v1518_v9 = vld [vmem:[%s2022_s0 + $0x88] ss:$20 sps:$4 sm:$0xff]   ;;  %v1521_v11 = vld [vmem:[%s2022_s0 + $0xd0] ss:$20 sps:$4 sm:$0xff]  }
  0x19   :  { %v1519_v10 = vld [vmem:[%s2022_s0 + $0xd4] ss:$20 sps:$4 sm:$0xff]   ;;  %v1522_v12 = vld [vmem:[%s2022_s0 + $0xb0] ss:$20 sps:$4 sm:$0xff]   ;;  %v1525_v14 = vld [vmem:[%s2022_s0 + $0xf8] ss:$20 sps:$4 sm:$0xff]  }
  0x1a   :  { %v1523_v13 = vld [vmem:[%s2022_s0 + $0xfc] ss:$20 sps:$4 sm:$0xff]  }
  0x1b   :  { %1196 = vmatpush3.bf16.msra.mxu0 %v1445_v15  ;;  %1428 = vmatpush3.bf16.msra.mxu1 %v1445_v15  ;;  %v1526_v15 = vld [vmem:[%s2022_s0 + $0xd8] ss:$20 sps:$4 sm:$0xff]  }
  0x1c   :  { %1197 = vmatprep.subr.bf16.mxu0 %v1446_v16  ;;  %1421 = vmatprep.subr.bf16.mxu1 %v1446_v16  ;;  %v1527_v16 = vld [vmem:[%s2022_s0 + $0x124] ss:$20 sps:$4 sm:$0xff]  }
  0x1f   :  { %1198 = vmatpush3.bf16.msra.mxu0 %v1447_v17  ;;  %1429 = vmatpush3.bf16.msra.mxu1 %v1447_v17  ;;  %v1529_v17 = vld [vmem:[%s2022_s0 + $0x120] ss:$20 sps:$4 sm:$0xff]  }
  0x20   :  { %1362 = vmatprep.subr.bf16.mxu0 %v1543_v24  ;;  %1265 = vmatprep.subr.bf16.mxu1 %v1455_v18  ;;  %v1530_v18 = vld [vmem:[%s2022_s0 + $0x100] ss:$20 sps:$4 sm:$0xff]  }
  0x22   :  { %707 = vmatmul.mubr.bf16.vlgmr.msra.gmra.mrb[0].mxu0 %v1448_v19  ;;  %755 = vmatmul.mubr.bf16.vlgmr.msra.gmra.mrb[0].mxu1 %v1451_v20  ;;  %v1531_v19 = vld [vmem:[%s2022_s0 + $0x14c] ss:$20 sps:$4 sm:$0xff]   ;;  %v1533_v20 = vld [vmem:[%s2022_s0 + $0x148] ss:$20 sps:$4 sm:$0xff]  }
  0x23   :  { %1363 = vmatpush3.bf16.msra.mxu0 %v1454_v21  ;;  %1266 = vmatpush3.bf16.msra.mxu1 %v1456_v22  ;;  %v1534_v21 = vld [vmem:[%s2022_s0 + $0x128] ss:$20 sps:$4 sm:$0xff]  }
  0x24   :  { %714 = vmatprep.mubr.bf16.mxu0 %v1457_v23  ;;  %762 = vmatprep.mubr.bf16.mxu1 %v1459_v25  ;;  %v1535_v22 = vld [vmem:[%s2022_s0 + $0x174] ss:$20 sps:$4 sm:$0xff]   ;;  %v76_v23 = vld [vmem:[%s2022_s0 + $0x198] sm:$0x11]  ;;  %v1537_v25 = vld [vmem:[%s2022_s0 + $0x170] ss:$20 sps:$4 sm:$0xff]  }
  0x25   :  { %1267 = vmatprep.subr.bf16.mxu1 %v1463_v26  ;;  %1364 = vmatprep.subr.bf16.mxu0 %v1543_v24  ;;  %v1538_v26 = vld [vmem:[%s2022_s0 + $0x150] ss:$20 sps:$4 sm:$0xff]  }
  0x27   :  { %1268 = vmatpush3.bf16.msra.mxu1 %v1464_v27  ;;  %1365 = vmatpush3.bf16.msra.mxu0 %v1466_v28  ;;  %v1134_v27 = vcombine.high %v76_v23, %v76_v23  ;;  %v1133_v28 = vcombine.low %v76_v23, %v76_v23 }
  0x28   :  { %1269 = vmatprep.subr.bf16.mxu1 %v1465_v30  ;;  %1366 = vmatprep.subr.bf16.mxu0 %v1543_v24  ;;  %v1542_v30 = vld [vmem:[%s2022_s0 + $0x1a0] ss:$0 sps:$4 sm:$0x11]  }
  0x2a   :  { %715 = vmatmul.mubr.bf16.gmra.mrb[4].mxu0 %v1461_v29  ;;  %763 = vmatmul.mubr.bf16.gmra.mrb[4].mxu1 %v1462_v31  ;;  %v1541_v29 = vld [vmem:[%s2022_s0 + $0x178] ss:$20 sps:$4 sm:$0xff]  }
  0x2b   :  { %1270 = vmatpush3.bf16.msra.mxu1 %v1467_v32  ;;  %722 = vmatprep.mubr.bf16.mxu0 %v1468_v33 }
  0x2c   :  { %770 = vmatprep.mubr.bf16.mxu1 %v1470_v34  ;;  %1271 = vmatprep.subr.bf16.mxu1 %v1474_v35 }
  0x2d   :  { %1367 = vmatpush3.bf16.msra.mxu0 %v1484_v36 }
  0x2e   :  { %1368 = vmatprep.subr.bf16.mxu0 %v1543_v24 }
  0x2f   :  { %1272 = vmatpush3.bf16.msra.mxu1 %v1475_v37 }
  0x30   :  { %1273 = vmatprep.subr.bf16.mxu1 %v1480_v40 }
  0x31   :  { %1369 = vmatpush3.bf16.msra.mxu0 %v1496_v44 }
  0x32   :  { %723 = vmatmul.mubr.bf16.gmra.mrb[8].mxu0 %v1472_v38  ;;  %771 = vmatmul.mubr.bf16.gmra.mrb[8].mxu1 %v1473_v39 }
  0x33   :  { %730 = vmatprep.mubr.bf16.mxu0 %v1476_v41  ;;  %778 = vmatprep.mubr.bf16.mxu1 %v1478_v42 }
  0x34   :  { %1274 = vmatpush3.bf16.msra.mxu1 %v1483_v43 }
  0x35   :  { %1275 = vmatprep.subr.bf16.mxu1 %v1485_v45 }
  0x38   :  { %1276 = vmatpush3.bf16.msra.mxu1 %v1486_v46 }
  0x39   :  { %1277 = vmatprep.subr.bf16.mxu1 %v1492_v48 }
  0x3a   :  { %731 = vmatmul.mubr.bf16.gmra.mrb[12].mxu0 %v1481_v49  ;;  %779 = vmatmul.mubr.bf16.gmra.mrb[12].mxu1 %v1482_v50 }
  0x3b   :  { %738 = vmatprep.mubr.bf16.mxu0 %v1487_v51  ;;  %786 = vmatprep.mubr.bf16.mxu1 %v1132_v52 }
  0x3c   :  { %1278 = vmatpush3.bf16.msra.mxu1 %v1493_v53 }
  0x3d   :  { %1279 = vmatprep.subr.bf16.mxu1 %v1494_v54 }
  0x40   :  { %1280 = vmatpush3.bf16.msra.mxu1 %v1495_v55 }
  0x42   :  { %739 = vmatmul.mubr.bf16.gmra.mrb[16].mxu0 %v1490_v56  ;;  %787 = vmatmul.mubr.bf16.gmra.mrb[16].mxu1 %v1131_v57 }
  0x43   :  { %746 = vmatprep.mubr.bf16.mxu0 %v1497_v58  ;;  %826 = vmatprep.mubr.bf16.mxu1 %v1501_v59 }
  0x4a   :  { %747 = vmatmul.mubr.bf16.gmra.mrb[20].mxu0 %v1502_v61  ;;  %827 = vmatmul.mubr.bf16.vlgmr.msra.gmra.mrb[20].mxu1 %v1499_v60 }
  0x4b   :  { %834 = vmatprep.mubr.bf16.mxu1 %v1503_v62  ;;  %1370 = vmatprep.mubr.msk.bf16.mxu0 %vm1544_vm0, %v1543_v24  ;;  %v1890_v62 = vld [vmem:[%s2023_s2] ss:$0 sm:$0xff] }
  0x52   :  { %835 = vmatmul.mubr.bf16.gmra.mrb[24].mxu1 %v1505_v63  ;;  %1371 = vmatmul.mubr.msk.bf16.vlgmr.msra.gmra.mrb[24].mxu0 %vm640_vm1, %v1506_v0 }
  0x53   :  { %842 = vmatprep.mubr.bf16.mxu1 %v1507_v1  ;;  %1374 = vmatprep.mubr.msk.bf16.mxu0 %vm1544_vm0, %v1543_v24 }
  0x5a   :  { %843 = vmatmul.mubr.bf16.gmra.mrb[28].mxu1 %v1509_v2  ;;  %1375 = vmatmul.mubr.msk.bf16.gmra.mrb[28].mxu0 %vm640_vm1, %v1510_v3 }
  0x5b   :  { %850 = vmatprep.mubr.bf16.mxu1 %v1511_v4  ;;  %1378 = vmatprep.mubr.msk.bf16.mxu0 %vm1544_vm0, %v1543_v24 }
  0x62   :  { %851 = vmatmul.mubr.bf16.gmra.mrb[32].mxu1 %v1513_v5  ;;  %1379 = vmatmul.mubr.msk.bf16.gmra.mrb[32].mxu0 %vm640_vm1, %v1514_v6 }
  0x63   :  { %858 = vmatprep.mubr.bf16.mxu1 %v1515_v7  ;;  %1382 = vmatprep.mubr.msk.bf16.mxu0 %vm1544_vm0, %v1543_v24 }
  0x6a   :  { %859 = vmatmul.mubr.bf16.gmra.mrb[36].mxu1 %v1517_v8  ;;  %1383 = vmatmul.mubr.msk.bf16.gmra.mrb[36].mxu0 %vm640_vm1, %v1518_v9 }
  0x6b   :  { %866 = vmatprep.mubr.bf16.mxu1 %v1519_v10  ;;  %1386 = vmatprep.mubr.msk.bf16.mxu0 %vm1544_vm0, %v1543_v24 }
  0x72   :  { %867 = vmatmul.mubr.bf16.gmra.mrb[40].mxu1 %v1521_v11  ;;  %1387 = vmatmul.mubr.msk.bf16.gmra.mrb[40].mxu0 %vm640_vm1, %v1522_v12 }
  0x73   :  { %874 = vmatprep.mubr.bf16.mxu1 %v1523_v13  ;;  %1390 = vmatprep.mubr.msk.bf16.mxu0 %vm1544_vm0, %v1543_v24 }
  0x7a   :  { %875 = vmatmul.mubr.bf16.gmra.mrb[44].mxu1 %v1525_v14  ;;  %1391 = vmatmul.mubr.msk.bf16.gmra.mrb[44].mxu0 %vm640_vm1, %v1526_v15 }
  0x7b   :  { %882 = vmatprep.mubr.bf16.mxu1 %v1527_v16  ;;  %1394 = vmatprep.mubr.msk.bf16.mxu0 %vm1544_vm0, %v1543_v24 }
  0x82   :  { %883 = vmatmul.mubr.bf16.gmra.mrb[48].mxu1 %v1529_v17  ;;  %1395 = vmatmul.mubr.msk.bf16.gmra.mrb[48].mxu0 %vm640_vm1, %v1530_v18 }
  0x83   :  { %890 = vmatprep.mubr.bf16.mxu1 %v1531_v19  ;;  %1398 = vmatprep.mubr.msk.bf16.mxu0 %vm1544_vm0, %v1543_v24 }
  0x8a   :  { %891 = vmatmul.mubr.bf16.gmra.mrb[52].mxu1 %v1533_v20  ;;  %1399 = vmatmul.mubr.msk.bf16.gmra.mrb[52].mxu0 %vm640_vm1, %v1534_v21 }
  0x8b   :  { %898 = vmatprep.mubr.bf16.mxu1 %v1535_v22  ;;  %1402 = vmatprep.mubr.msk.bf16.mxu0 %vm1544_vm0, %v1543_v24 }
  0x92   :  { %899 = vmatmul.mubr.bf16.gmra.mrb[56].mxu1 %v1537_v25  ;;  %1403 = vmatmul.mubr.msk.bf16.gmra.mrb[56].mxu0 %vm640_vm1, %v1538_v26 }
  0x93   :  { %906 = vmatprep.mubr.bf16.mxu1 %v1134_v27  ;;  %1406 = vmatprep.mubr.msk.bf16.mxu0 %vm1544_vm0, %v1543_v24 }
  0x9a   :  { %907 = vmatmul.mubr.bf16.gmra.mrb[60].mxu1 %v1133_v28  ;;  %1407 = vmatmul.mubr.msk.bf16.gmra.mrb[60].mxu0 %vm640_vm1, %v1541_v29 }
  0x9b   :  { %1410 = vmatprep.mubr.msk.bf16.mxu0 %vm1544_vm0, %v1543_v24 }
  0xa2   :  { %1411 = vmatmul.mubr.msk.bf16.gmra.mrb[64].mxu0 %vm640_vm1, %v1542_v30 }
  0xf5   :  { %v1199_v31 = vpop.f32.mrb[0].mxu0  ;;  %v1235_v32 = vpop.f32.mrb[0].mxu1 }
  0xf6   :  { %v1200_v33 = vpop.f32.mrb[1].mxu0  ;;  %v1236_v34 = vpop.f32.mrb[1].mxu1 }
  0xf7   :  { %v1869_v35 = vadd.f32 %v1200_v33, %v1199_v31  ;;  %v1202_v36 = vpop.f32.mrb[2].mxu0  ;;  %v1871_v37 = vadd.f32 %v1236_v34, %v1235_v32  ;;  %v1238_v38 = vpop.f32.mrb[2].mxu1 }
  0xf8   :  { %v1203_v39 = vpop.f32.mrb[3].mxu0  ;;  %v1239_v40 = vpop.f32.mrb[3].mxu1 }
  0xf9   :  { %v1873_v41 = vadd.f32 %v1203_v39, %v1202_v36  ;;  %v1875_v24 = vadd.f32 %v1239_v40, %v1238_v38  ;;  %v709_v38 = vadd.f32 %v1869_v35, %v1890_v62 }
  0xfd   :  { %v1205_v42 = vpop.f32.mrb[4].mxu0  ;;  %v1241_v43 = vpop.f32.mrb[4].mxu1 }
  0xfe   :  { %v1206_v44 = vpop.f32.mrb[5].mxu0  ;;  %v1242_v45 = vpop.f32.mrb[5].mxu1 }
  0xff   :  { %v1877_v46 = vadd.f32 %v1206_v44, %v1205_v42  ;;  %v1208_v47 = vpop.f32.mrb[6].mxu0  ;;  %v1879_v48 = vadd.f32 %v1242_v45, %v1241_v43  ;;  %v1244_v49 = vpop.f32.mrb[6].mxu1 }
 0x100   :  { %v1209_v50 = vpop.f32.mrb[7].mxu0  ;;  %v1245_v51 = vpop.f32.mrb[7].mxu1 }
 0x101   :  { %v1881_v52 = vadd.f32 %v1209_v50, %v1208_v47  ;;  %v1883_v53 = vadd.f32 %v1245_v51, %v1244_v49  ;;  %v712_v47 = vadd.f32 %v1873_v41, %v1890_v62 }
 0x105   :  { %v1211_v54 = vpop.f32.mrb[8].mxu0  ;;  %v1247_v55 = vpop.f32.mrb[8].mxu1 }
 0x106   :  { %v1212_v56 = vpop.f32.mrb[9].mxu0  ;;  %v1248_v57 = vpop.f32.mrb[9].mxu1 }
 0x107   :  { %v1885_v58 = vadd.f32 %v1212_v56, %v1211_v54  ;;  %v1214_v59 = vpop.f32.mrb[10].mxu0  ;;  %v1249_v60 = vadd.f32 %v1248_v57, %v1247_v55  ;;  %v1250_v61 = vpop.f32.mrb[10].mxu1 }
 0x108   :  { %v1215_v63 = vpop.f32.mrb[11].mxu0  ;;  %v1251_v0 = vpop.f32.mrb[11].mxu1 }
 0x109   :  { %v1893_v1 = vadd.f32 %v1249_v60, %v1890_v62  ;;  %v1895_v2 = vadd.f32 %v1215_v63, %v1214_v59  ;;  %v1252_v3 = vadd.f32 %v1251_v0, %v1250_v61  ;;  %v717_v60 = vadd.f32 %v1877_v46, %v1890_v62 }
 0x10b   :  { %v1898_v4 = vadd.f32 %v1252_v3, %v1890_v62 }
 0x10d   :  { %v1217_v5 = vpop.f32.mrb[12].mxu0  ;;  %v1253_v6 = vpop.f32.mrb[12].mxu1 }
 0x10e   :  { %v1218_v7 = vpop.f32.mrb[13].mxu0  ;;  %v1254_v8 = vpop.f32.mrb[13].mxu1 }
 0x10f   :  { %v1900_v9 = vadd.f32 %v1218_v7, %v1217_v5  ;;  %v1220_v10 = vpop.f32.mrb[14].mxu0  ;;  %v1255_v11 = vadd.f32 %v1254_v8, %v1253_v6  ;;  %v1256_v12 = vpop.f32.mrb[14].mxu1  ;;  %v720_v7 = vadd.f32 %v1881_v52, %v1890_v62  ;;  %v725_v52 = vadd.f32 %v1885_v58, %v1890_v62 }
 0x110   :  { %v1221_v13 = vpop.f32.mrb[15].mxu0  ;;  %v1257_v14 = vpop.f32.mrb[15].mxu1 }
 0x111   :  { %v1903_v15 = vadd.f32 %v1255_v11, %v1890_v62  ;;  %v1905_v16 = vadd.f32 %v1221_v13, %v1220_v10  ;;  %v1258_v17 = vadd.f32 %v1257_v14, %v1256_v12 }
 0x113   :  { %v1908_v18 = vadd.f32 %v1258_v17, %v1890_v62 }
 0x115   :  { %v1223_v19 = vpop.f32.mrb[16].mxu0  ;;  %v1259_v20 = vpop.f32.mrb[16].mxu1 }
 0x116   :  { %v1224_v21 = vpop.f32.mrb[17].mxu0  ;;  %v1260_v22 = vpop.f32.mrb[17].mxu1 }
 0x117   :  { %v1910_v23 = vadd.f32 %v1224_v21, %v1223_v19  ;;  %v1226_v25 = vpop.f32.mrb[18].mxu0  ;;  %v1261_v26 = vadd.f32 %v1260_v22, %v1259_v20  ;;  %v1262_v27 = vpop.f32.mrb[18].mxu1 }
 0x118   :  { %v1227_v28 = vpop.f32.mrb[19].mxu0  ;;  %v1263_v29 = vpop.f32.mrb[19].mxu1 }
 0x119   :  { %v1913_v30 = vadd.f32 %v1261_v26, %v1890_v62  ;;  %v1915_v31 = vadd.f32 %v1227_v28, %v1226_v25  ;;  %v728_v29 = vadd.f32 %v1895_v2, %v1890_v62  ;;  %v733_v2 = vadd.f32 %v1900_v9, %v1890_v62 }
 0x11d   :  { %v1229_v32 = vpop.f32.mrb[20].mxu0  ;;  %v1281_v33 = vpop.f32.mrb[20].mxu1 }
 0x11e   :  { %v1230_v34 = vpop.f32.mrb[21].mxu0  ;;  %v1282_v36 = vpop.f32.mrb[21].mxu1 }
 0x11f   :  { %v1919_v39 = vadd.f32 %v1230_v34, %v1229_v32  ;;  %v1283_v40 = vadd.f32 %v1282_v36, %v1281_v33  ;;  %v1232_v42 = vpop.f32.mrb[22].mxu0  ;;  %v1284_v43 = vpop.f32.mrb[22].mxu1 }
 0x120   :  { %v1233_v44 = vpop.f32.mrb[23].mxu0  ;;  %v1285_v45 = vpop.f32.mrb[23].mxu1 }
 0x121   :  { %v1923_v49 = vadd.f32 %v1233_v44, %v1232_v42  ;;  %v1286_v50 = vadd.f32 %v1285_v45, %v1284_v43  ;;  %v829_v51 = vadd.f32 %v1283_v40, %v709_v38 }
 0x123   :  { %v832_v54 = vadd.f32 %v1286_v50, %v712_v47 }
 0x125   :  { %v1287_v55 = vpop.f32.mrb[24].mxu1  ;;  %v948_v56 = vpop.f32.mrb[24].mxu0 }
 0x126   :  { %v949_v57 = vadd.f32 %v948_v56, %v829_v51  ;;  %v1288_v59 = vpop.f32.mrb[25].mxu1  ;;  %v1372_v35 = vpop.f32.mrb[25].mxu0  ;;  %v736_v56 = vadd.f32 %v1905_v16, %v1890_v62  ;;  %v741_v16 = vadd.f32 %v1910_v23, %v1890_v62 }
 0x127   :  { %v1289_v61 = vadd.f32 %v1288_v59, %v1287_v55  ;;  %v1290_v63 = vpop.f32.mrb[26].mxu1  ;;  %v951_v0 = vpop.f32.mrb[26].mxu0 }
 0x128   :  { %v1034_v3 = vmax.f32 %v949_v57, 0.0  ;;  %v952_v5 = vadd.f32 %v951_v0, %v832_v54  ;;  %v1291_v6 = vpop.f32.mrb[27].mxu1  ;;  %v1373_v41 = vpop.f32.mrb[27].mxu0 }
 0x129   :  { %v1292_v8 = vadd.f32 %v1291_v6, %v1290_v63  ;;  %v837_v10 = vadd.f32 %v1289_v61, %v717_v60 }
 0x12a   :  { %1055 = vst [vmem:[%s2024_s3] sm:$0xff] %v1034_v3  ;;  %v1035_v11 = vmax.f32 %v952_v5, 0.0 }
 0x12b   :  { %v840_v12 = vadd.f32 %v1292_v8, %v720_v7 }
 0x12c   :  { %1056 = vst [vmem:[%s2024_s3 + $0x8] sm:$0xff] %v1035_v11 }
 0x12d   :  { %v1293_v46 = vpop.f32.mrb[28].mxu1  ;;  %v956_v13 = vpop.f32.mrb[28].mxu0 }
 0x12e   :  { %v957_v14 = vadd.f32 %v956_v13, %v837_v10  ;;  %v1294_v17 = vpop.f32.mrb[29].mxu1  ;;  %v1376_v19 = vpop.f32.mrb[29].mxu0 }
 0x12f   :  { %v1295_v20 = vadd.f32 %v1294_v17, %v1293_v46  ;;  %v1296_v21 = vpop.f32.mrb[30].mxu1  ;;  %v959_v22 = vpop.f32.mrb[30].mxu0 }
 0x130   :  { %v1036_v25 = vmax.f32 %v957_v14, 0.0  ;;  %v960_v26 = vadd.f32 %v959_v22, %v840_v12  ;;  %v1297_v27 = vpop.f32.mrb[31].mxu1  ;;  %v1377_v28 = vpop.f32.mrb[31].mxu0  ;;  %v744_v12 = vadd.f32 %v1915_v31, %v1890_v62  ;;  %v749_v31 = vadd.f32 %v1919_v39, %v1890_v62 }
 0x131   :  { %v1298_v32 = vadd.f32 %v1297_v27, %v1296_v21  ;;  %v845_v33 = vadd.f32 %v1295_v20, %v725_v52 }
 0x132   :  { %1057 = vst [vmem:[%s2024_s3 + $0x10] sm:$0xff] %v1036_v25  ;;  %v1037_v34 = vmax.f32 %v960_v26, 0.0 }
 0x133   :  { %v848_v36 = vadd.f32 %v1298_v32, %v728_v29 }
 0x134   :  { %1058 = vst [vmem:[%s2024_s3 + $0x18] sm:$0xff] %v1037_v34 }
 0x135   :  { %v1299_v58 = vpop.f32.mrb[32].mxu1  ;;  %v964_v38 = vpop.f32.mrb[32].mxu0 }
 0x136   :  { %v965_v40 = vadd.f32 %v964_v38, %v845_v33  ;;  %v1300_v42 = vpop.f32.mrb[33].mxu1  ;;  %v1380_v43 = vpop.f32.mrb[33].mxu0  ;;  %v752_v33 = vadd.f32 %v1923_v49, %v1890_v62  ;;  %v757_v49 = vadd.f32 %v1871_v37, %v1890_v62 }
 0x137   :  { %v1301_v44 = vadd.f32 %v1300_v42, %v1299_v58  ;;  %v1302_v45 = vpop.f32.mrb[34].mxu1  ;;  %v967_v47 = vpop.f32.mrb[34].mxu0 }
 0x138   :  { %v1038_v50 = vmax.f32 %v965_v40, 0.0  ;;  %v968_v51 = vadd.f32 %v967_v47, %v848_v36  ;;  %v1303_v54 = vpop.f32.mrb[35].mxu1  ;;  %v1381_v55 = vpop.f32.mrb[35].mxu0 }
 0x139   :  { %v1304_v57 = vadd.f32 %v1303_v54, %v1302_v45  ;;  %v853_v59 = vadd.f32 %v1301_v44, %v733_v2 }
 0x13a   :  { %1059 = vst [vmem:[%s2024_s3 + $0x20] sm:$0xff] %v1038_v50  ;;  %v1039_v35 = vmax.f32 %v968_v51, 0.0 }
 0x13b   :  { %v856_v60 = vadd.f32 %v1304_v57, %v736_v56  ;;  %v760_v56 = vadd.f32 %v1875_v24, %v1890_v62  ;;  %v765_v24 = vadd.f32 %v1879_v48, %v1890_v62 }
 0x13c   :  { %1060 = vst [vmem:[%s2024_s3 + $0x28] sm:$0xff] %v1039_v35 }
 0x13d   :  { %v1305_v9 = vpop.f32.mrb[36].mxu1  ;;  %v972_v61 = vpop.f32.mrb[36].mxu0 }
 0x13e   :  { %v973_v63 = vadd.f32 %v972_v61, %v853_v59  ;;  %v1306_v0 = vpop.f32.mrb[37].mxu1  ;;  %v1384_v3 = vpop.f32.mrb[37].mxu0 }
 0x13f   :  { %v1307_v5 = vadd.f32 %v1306_v0, %v1305_v9  ;;  %v1308_v6 = vpop.f32.mrb[38].mxu1  ;;  %v975_v41 = vpop.f32.mrb[38].mxu0 }
 0x140   :  { %v1040_v7 = vmax.f32 %v973_v63, 0.0  ;;  %v976_v8 = vadd.f32 %v975_v41, %v856_v60  ;;  %v1309_v10 = vpop.f32.mrb[39].mxu1  ;;  %v1385_v11 = vpop.f32.mrb[39].mxu0 }
 0x141   :  { %v1310_v46 = vadd.f32 %v1309_v10, %v1308_v6  ;;  %v861_v13 = vadd.f32 %v1307_v5, %v741_v16  ;;  %v768_v10 = vadd.f32 %v1883_v53, %v1890_v62 }
 0x142   :  { %1061 = vst [vmem:[%s2024_s3 + $0x30] sm:$0xff] %v1040_v7  ;;  %v1041_v14 = vmax.f32 %v976_v8, 0.0 }
 0x143   :  { %v864_v17 = vadd.f32 %v1310_v46, %v744_v12 }
 0x144   :  { %1062 = vst [vmem:[%s2024_s3 + $0x38] sm:$0xff] %v1041_v14 }
 0x145   :  { %v1311_v23 = vpop.f32.mrb[40].mxu1  ;;  %v980_v19 = vpop.f32.mrb[40].mxu0 }
 0x146   :  { %v981_v52 = vadd.f32 %v980_v19, %v861_v13  ;;  %v1312_v20 = vpop.f32.mrb[41].mxu1  ;;  %v1388_v21 = vpop.f32.mrb[41].mxu0 }
 0x147   :  { %v1313_v22 = vadd.f32 %v1312_v20, %v1311_v23  ;;  %v1314_v25 = vpop.f32.mrb[42].mxu1  ;;  %v983_v26 = vpop.f32.mrb[42].mxu0 }
 0x148   :  { %v1042_v27 = vmax.f32 %v981_v52, 0.0  ;;  %v984_v28 = vadd.f32 %v983_v26, %v864_v17  ;;  %v1315_v29 = vpop.f32.mrb[43].mxu1  ;;  %v1389_v32 = vpop.f32.mrb[43].mxu0 }
 0x149   :  { %v1316_v34 = vadd.f32 %v1315_v29, %v1314_v25  ;;  %v869_v36 = vadd.f32 %v1313_v22, %v749_v31 }
 0x14a   :  { %1063 = vst [vmem:[%s2024_s3 + $0x40] sm:$0xff] %v1042_v27  ;;  %v1043_v58 = vmax.f32 %v984_v28, 0.0 }
 0x14b   :  { %v872_v38 = vadd.f32 %v1316_v34, %v752_v33 }
 0x14c   :  { %1064 = vst [vmem:[%s2024_s3 + $0x48] sm:$0xff] %v1043_v58 }
 0x14d   :  { %v1317_v39 = vpop.f32.mrb[44].mxu1  ;;  %v988_v40 = vpop.f32.mrb[44].mxu0 }
 0x14e   :  { %v989_v42 = vadd.f32 %v988_v40, %v869_v36  ;;  %v1318_v43 = vpop.f32.mrb[45].mxu1  ;;  %v1392_v2 = vpop.f32.mrb[45].mxu0 }
 0x14f   :  { %v1319_v44 = vadd.f32 %v1318_v43, %v1317_v39  ;;  %v1320_v45 = vpop.f32.mrb[46].mxu1  ;;  %v991_v47 = vpop.f32.mrb[46].mxu0 }
 0x150   :  { %v1044_v50 = vmax.f32 %v989_v42, 0.0  ;;  %v992_v51 = vadd.f32 %v991_v47, %v872_v38  ;;  %v1321_v54 = vpop.f32.mrb[47].mxu1  ;;  %v1393_v55 = vpop.f32.mrb[47].mxu0 }
 0x151   :  { %v1322_v57 = vadd.f32 %v1321_v54, %v1320_v45  ;;  %v877_v59 = vadd.f32 %v1319_v44, %v757_v49 }
 0x152   :  { %1065 = vst [vmem:[%s2024_s3 + $0x50] sm:$0xff] %v1044_v50  ;;  %v1045_v35 = vmax.f32 %v992_v51, 0.0 }
 0x153   :  { %v880_v60 = vadd.f32 %v1322_v57, %v760_v56 }
 0x154   :  { %1066 = vst [vmem:[%s2024_s3 + $0x58] sm:$0xff] %v1045_v35 }
 0x155   :  { %v1323_v37 = vpop.f32.mrb[48].mxu1  ;;  %v996_v9 = vpop.f32.mrb[48].mxu0 }
 0x156   :  { %v997_v61 = vadd.f32 %v996_v9, %v877_v59  ;;  %v1324_v63 = vpop.f32.mrb[49].mxu1  ;;  %v1396_v0 = vpop.f32.mrb[49].mxu0 }
 0x157   :  { %v1325_v3 = vadd.f32 %v1324_v63, %v1323_v37  ;;  %v1326_v16 = vpop.f32.mrb[50].mxu1  ;;  %v999_v5 = vpop.f32.mrb[50].mxu0 }
 0x158   :  { %v1046_v6 = vmax.f32 %v997_v61, 0.0  ;;  %v1000_v41 = vadd.f32 %v999_v5, %v880_v60  ;;  %v1327_v7 = vpop.f32.mrb[51].mxu1  ;;  %v1397_v8 = vpop.f32.mrb[51].mxu0 }
 0x159   :  { %v1328_v11 = vadd.f32 %v1327_v7, %v1326_v16  ;;  %v885_v12 = vadd.f32 %v1325_v3, %v765_v24 }
 0x15a   :  { %1067 = vst [vmem:[%s2024_s3 + $0x60] sm:$0xff] %v1046_v6  ;;  %v1047_v46 = vmax.f32 %v1000_v41, 0.0 }
 0x15b   :  { %v888_v13 = vadd.f32 %v1328_v11, %v768_v10 }
 0x15c   :  { %1068 = vst [vmem:[%s2024_s3 + $0x68] sm:$0xff] %v1047_v46 }
 0x15d   :  { %v1329_v48 = vpop.f32.mrb[52].mxu1  ;;  %v1004_v14 = vpop.f32.mrb[52].mxu0 }
 0x15e   :  { %v1005_v17 = vadd.f32 %v1004_v14, %v885_v12  ;;  %v1330_v23 = vpop.f32.mrb[53].mxu1  ;;  %v1400_v19 = vpop.f32.mrb[53].mxu0 }
 0x15f   :  { %v1331_v52 = vadd.f32 %v1330_v23, %v1329_v48  ;;  %v1332_v20 = vpop.f32.mrb[54].mxu1  ;;  %v1007_v53 = vpop.f32.mrb[54].mxu0 }
 0x160   :  { %v1048_v62 = vmax.f32 %v1005_v17, 0.0  ;;  %v1008_v21 = vadd.f32 %v1007_v53, %v888_v13  ;;  %v1333_v31 = vpop.f32.mrb[55].mxu1  ;;  %v1401_v22 = vpop.f32.mrb[55].mxu0 }
 0x161   :  { %v1334_v25 = vadd.f32 %v1333_v31, %v1332_v20  ;;  %v893_v26 = vadd.f32 %v1331_v52, %v1893_v1 }
 0x162   :  { %1069 = vst [vmem:[%s2024_s3 + $0x70] sm:$0xff] %v1048_v62  ;;  %v1049_v27 = vmax.f32 %v1008_v21, 0.0 }
 0x163   :  { %v896_v28 = vadd.f32 %v1334_v25, %v1898_v4 }
 0x164   :  { %1070 = vst [vmem:[%s2024_s3 + $0x78] sm:$0xff] %v1049_v27 }
 0x165   :  { %v1335_v29 = vpop.f32.mrb[56].mxu1  ;;  %v1012_v32 = vpop.f32.mrb[56].mxu0 }
 0x166   :  { %v1013_v33 = vadd.f32 %v1012_v32, %v893_v26  ;;  %v1336_v34 = vpop.f32.mrb[57].mxu1  ;;  %v1404_v36 = vpop.f32.mrb[57].mxu0 }
 0x167   :  { %v1337_v58 = vadd.f32 %v1336_v34, %v1335_v29  ;;  %v1338_v38 = vpop.f32.mrb[58].mxu1  ;;  %v1015_v39 = vpop.f32.mrb[58].mxu0 }
 0x168   :  { %v1050_v1 = vmax.f32 %v1013_v33, 0.0  ;;  %v1016_v40 = vadd.f32 %v1015_v39, %v896_v28  ;;  %v1339_v42 = vpop.f32.mrb[59].mxu1  ;;  %v1405_v43 = vpop.f32.mrb[59].mxu0 }
 0x169   :  { %v1340_v2 = vadd.f32 %v1339_v42, %v1338_v38  ;;  %v901_v49 = vadd.f32 %v1337_v58, %v1903_v15 }
 0x16a   :  { %1071 = vst [vmem:[%s2024_s3 + $0x80] sm:$0xff] %v1050_v1  ;;  %v1051_v4 = vmax.f32 %v1016_v40, 0.0 }
 0x16b   :  { %v904_v44 = vadd.f32 %v1340_v2, %v1908_v18 }
 0x16c   :  { %1072 = vst [vmem:[%s2024_s3 + $0x88] sm:$0xff] %v1051_v4 }
 0x16d   :  { %v1341_v45 = vpop.f32.mrb[60].mxu1  ;;  %v1020_v47 = vpop.f32.mrb[60].mxu0 }
 0x16e   :  { %v1021_v50 = vadd.f32 %v1020_v47, %v901_v49  ;;  %v1342_v51 = vpop.f32.mrb[61].mxu1  ;;  %v1408_v54 = vpop.f32.mrb[61].mxu0 }
 0x16f   :  { %v1343_v55 = vadd.f32 %v1342_v51, %v1341_v45  ;;  %v1023_v56 = vpop.f32.mrb[62].mxu0  ;;  %v1344_v57 = vpop.f32.mrb[62].mxu1 }
 0x170   :  { %v1052_v15 = vmax.f32 %v1021_v50, 0.0  ;;  %v1024_v59 = vadd.f32 %v1023_v56, %v904_v44  ;;  %v1409_v35 = vpop.f32.mrb[63].mxu0  ;;  %v1345_v60 = vpop.f32.mrb[63].mxu1 }
 0x171   :  { %v909_v37 = vadd.f32 %v1343_v55, %v1913_v30 }
 0x172   :  { %1073 = vst [vmem:[%s2024_s3 + $0x90] sm:$0xff] %v1052_v15  ;;  %v1053_v18 = vmax.f32 %v1024_v59, 0.0 }
 0x174   :  { %1074 = vst [vmem:[%s2024_s3 + $0x98] sm:$0xff] %v1053_v18 }
 0x175   :  { %v1028_v9 = vpop.f32.mrb[64].mxu0 }
 0x176   :  { %v1029_v61 = vadd.f32 %v1028_v9, %v909_v37  ;;  %v1412_v63 = vpop.f32.mrb[65].mxu0 }
 0x177   :  { %v1031_v0 = vpop.f32.mrb[66].mxu0 }
 0x178   :  { %v1054_v24 = vmax.f32 %v1029_v61, 0.0  ;;  %v1413_v3 = vpop.f32.mrb[67].mxu0 }
 0x17a   :  { %1075 = vst [vmem:[%s2024_s3 + $0xa0] sm:$0x3] %v1054_v24 }

// kernel: fcn_forward.5
= control target key start
LH: loop header
LB: loop body
LE: loop exit
PB: predicated region body
PF: predicated region fallthrough
CT: control target
= control target key end

     0   :  { %s5175_s1 = inlined_call_operand.vmem [shape: bf16[4096,128], index: 1, kind: input, shape index: {}]   ;;  %s5176_s0 = inlined_call_operand.vmem [shape: bf16[18,4096], index: 0, kind: input, shape index: {}]   ;;  %s5177_s2 = inlined_call_operand.vmem [shape: f32[1,128], index: 2, kind: input, shape index: {}]   ;;  %s5178_s3 = inlined_call_operand.vmem [shape: f32[18,128], index: 3, kind: output, shape index: {}]  }
   0x1   :  { %v3937_v0 = vld [vmem:[%s5175_s1 + $0x40] sm:$0xff]   ;;  %v3941_v4 = vld [vmem:[%s5175_s1 + $0x48] sm:$0xff]   ;;  %v3945_v8 = vld [vmem:[%s5175_s1 + $0x50] sm:$0xff]  }
   0x2   :  { %v3938_v1 = vld [vmem:[%s5175_s1 + $0xc0] sm:$0xff]   ;;  %3489 = vmatprep.subr.bf16.mxu0 %v3937_v0  ;;  %v3942_v5 = vld [vmem:[%s5175_s1 + $0xc8] sm:$0xff]   ;;  %v3946_v9 = vld [vmem:[%s5175_s1 + $0xd0] sm:$0xff]  }
   0x3   :  { %v3939_v2 = vld [vmem:[%s5175_s1] sm:$0xff]   ;;  %3517 = vmatprep.subr.bf16.mxu1 %v3938_v1  ;;  %v3943_v6 = vld [vmem:[%s5175_s1 + $0x8] sm:$0xff]   ;;  %v3947_v10 = vld [vmem:[%s5175_s1 + $0x10] sm:$0xff]  }
   0x4   :  { %v3940_v3 = vld [vmem:[%s5175_s1 + $0x80] sm:$0xff]   ;;  %3490 = vmatpush3.bf16.msra.mxu0 %v3939_v2  ;;  %v3944_v7 = vld [vmem:[%s5175_s1 + $0x88] sm:$0xff]   ;;  %v3948_v11 = vld [vmem:[%s5175_s1 + $0x90] sm:$0xff]  }
   0x5   :  { %3518 = vmatpush3.bf16.msra.mxu1 %v3940_v3  ;;  %3491 = vmatprep.subr.bf16.mxu0 %v3941_v4  ;;  %v3949_v12 = vld [vmem:[%s5175_s1 + $0x58] sm:$0xff]   ;;  %v3953_v16 = vld [vmem:[%s5175_s1 + $0x60] sm:$0xff]   ;;  %v3957_v20 = vld [vmem:[%s5175_s1 + $0x68] sm:$0xff]  }
   0x6   :  { %3519 = vmatprep.subr.bf16.mxu1 %v3942_v5  ;;  %v3950_v13 = vld [vmem:[%s5175_s1 + $0xd8] sm:$0xff]   ;;  %v3954_v17 = vld [vmem:[%s5175_s1 + $0xe0] sm:$0xff]   ;;  %v3958_v21 = vld [vmem:[%s5175_s1 + $0xe8] sm:$0xff]  }
   0x7   :  { %v3951_v14 = vld [vmem:[%s5175_s1 + $0x18] sm:$0xff]   ;;  %v3955_v18 = vld [vmem:[%s5175_s1 + $0x20] sm:$0xff]   ;;  %v3959_v22 = vld [vmem:[%s5175_s1 + $0x28] sm:$0xff]  }
   0x8   :  { %3492 = vmatpush3.bf16.msra.mxu0 %v3943_v6  ;;  %v3952_v15 = vld [vmem:[%s5175_s1 + $0x98] sm:$0xff]   ;;  %v3956_v19 = vld [vmem:[%s5175_s1 + $0xa0] sm:$0xff]   ;;  %v3960_v23 = vld [vmem:[%s5175_s1 + $0xa8] sm:$0xff]  }
   0x9   :  { %3520 = vmatpush3.bf16.msra.mxu1 %v3944_v7  ;;  %3493 = vmatprep.subr.bf16.mxu0 %v3945_v8  ;;  %v3961_v24 = vld [vmem:[%s5175_s1 + $0x70] sm:$0xff]   ;;  %v3965_v28 = vld [vmem:[%s5175_s1 + $0x78] sm:$0xff]   ;;  %v15_v32 = vld [vmem:[%s5176_s0] sm:$0xff] }
   0xa   :  { %3521 = vmatprep.subr.bf16.mxu1 %v3946_v9  ;;  %v3962_v25 = vld [vmem:[%s5175_s1 + $0xf0] sm:$0xff]   ;;  %v3966_v29 = vld [vmem:[%s5175_s1 + $0xf8] sm:$0xff]   ;;  %v31_v33 = vld [vmem:[%s5176_s0 + $0x80] sm:$0xff] }
   0xb   :  { %v3963_v26 = vld [vmem:[%s5175_s1 + $0x30] sm:$0xff]   ;;  %v3967_v30 = vld [vmem:[%s5175_s1 + $0x38] sm:$0xff]   ;;  %v16_v34 = vld [vmem:[%s5176_s0 + $0x8] sm:$0xff]  ;;  %v3169_v35 = vcombine.low %v15_v32, %v31_v33  ;;  %v3170_v36 = vcombine.high %v15_v32, %v31_v33 }
   0xc   :  { %3494 = vmatpush3.bf16.msra.mxu0 %v3947_v10  ;;  %v3964_v27 = vld [vmem:[%s5175_s1 + $0xb0] sm:$0xff]   ;;  %v3968_v31 = vld [vmem:[%s5175_s1 + $0xb8] sm:$0xff]   ;;  %v32_v37 = vld [vmem:[%s5176_s0 + $0x88] sm:$0xff] }
   0xd   :  { %3522 = vmatpush3.bf16.msra.mxu1 %v3948_v11  ;;  %3495 = vmatprep.subr.bf16.mxu0 %v3949_v12  ;;  %v3171_v38 = vcombine.low %v16_v34, %v32_v37  ;;  %v3172_v39 = vcombine.high %v16_v34, %v32_v37  ;;  %v3969_v40 = vld [vmem:[%s5175_s1 + $0x140] sm:$0xff]   ;;  %v3973_v44 = vld [vmem:[%s5175_s1 + $0x148] sm:$0xff]   ;;  %v3977_v48 = vld [vmem:[%s5175_s1 + $0x150] sm:$0xff]  }
   0xe   :  { %3523 = vmatprep.subr.bf16.mxu1 %v3950_v13  ;;  %2422 = vmatprep.mubr.bf16.mxu0 %v3170_v36  ;;  %v3970_v41 = vld [vmem:[%s5175_s1 + $0x1c0] sm:$0xff]   ;;  %v3974_v45 = vld [vmem:[%s5175_s1 + $0x1c8] sm:$0xff]   ;;  %v3978_v49 = vld [vmem:[%s5175_s1 + $0x1d0] sm:$0xff]  }
   0xf   :  { %2470 = vmatprep.mubr.bf16.mxu1 %v3172_v39  ;;  %v3971_v42 = vld [vmem:[%s5175_s1 + $0x100] sm:$0xff]   ;;  %v3975_v46 = vld [vmem:[%s5175_s1 + $0x108] sm:$0xff]   ;;  %v3979_v50 = vld [vmem:[%s5175_s1 + $0x110] sm:$0xff]  }
  0x10   :  { %3496 = vmatpush3.bf16.msra.mxu0 %v3951_v14  ;;  %v3972_v43 = vld [vmem:[%s5175_s1 + $0x180] sm:$0xff]   ;;  %v3976_v47 = vld [vmem:[%s5175_s1 + $0x188] sm:$0xff]   ;;  %v3980_v51 = vld [vmem:[%s5175_s1 + $0x190] sm:$0xff]  }
  0x11   :  { %3524 = vmatpush3.bf16.msra.mxu1 %v3952_v15  ;;  %3497 = vmatprep.subr.bf16.mxu0 %v3953_v16  ;;  %v3981_v52 = vld [vmem:[%s5175_s1 + $0x158] sm:$0xff]   ;;  %v3985_v56 = vld [vmem:[%s5175_s1 + $0x160] sm:$0xff]   ;;  %v3989_v60 = vld [vmem:[%s5175_s1 + $0x168] sm:$0xff]  }
  0x12   :  { %3525 = vmatprep.subr.bf16.mxu1 %v3954_v17  ;;  %v3982_v53 = vld [vmem:[%s5175_s1 + $0x1d8] sm:$0xff]   ;;  %v3986_v57 = vld [vmem:[%s5175_s1 + $0x1e0] sm:$0xff]   ;;  %v3990_v61 = vld [vmem:[%s5175_s1 + $0x1e8] sm:$0xff]  }
  0x13   :  { %v3983_v54 = vld [vmem:[%s5175_s1 + $0x118] sm:$0xff]   ;;  %v3987_v58 = vld [vmem:[%s5175_s1 + $0x120] sm:$0xff]   ;;  %v3992_v0 = vld [vmem:[%s5175_s1 + $0x128] sm:$0xff]  }
  0x14   :  { %3498 = vmatpush3.bf16.msra.mxu0 %v3955_v18  ;;  %v3984_v55 = vld [vmem:[%s5175_s1 + $0x198] sm:$0xff]   ;;  %v3988_v59 = vld [vmem:[%s5175_s1 + $0x1a0] sm:$0xff]   ;;  %v3993_v2 = vld [vmem:[%s5175_s1 + $0x1a8] sm:$0xff]  }
  0x15   :  { %3526 = vmatpush3.bf16.msra.mxu1 %v3956_v19  ;;  %3499 = vmatprep.subr.bf16.mxu0 %v3957_v20  ;;  %v47_v62 = vld [vmem:[%s5176_s0 + $0x100] sm:$0x11]  ;;  %v48_v3 = vld [vmem:[%s5176_s0 + $0x108] sm:$0x11]  ;;  %v3997_v6 = vld [vmem:[%s5175_s1 + $0x170] sm:$0xff]  }
  0x16   :  { %3527 = vmatprep.subr.bf16.mxu1 %v3958_v21  ;;  %v3202_v63 = vcombine.high %v47_v62, %v47_v62  ;;  %v3201_v1 = vcombine.low %v47_v62, %v47_v62  ;;  %v3204_v4 = vcombine.high %v48_v3, %v48_v3  ;;  %v3203_v5 = vcombine.low %v48_v3, %v48_v3  ;;  %v3998_v7 = vld [vmem:[%s5175_s1 + $0x1f0] sm:$0xff]   ;;  %v4001_v10 = vld [vmem:[%s5175_s1 + $0x178] sm:$0xff]   ;;  %v20_v62 = vld [vmem:[%s5176_s0 + $0x28] sm:$0xff] }
  0x17   :  { %v3999_v8 = vld [vmem:[%s5175_s1 + $0x130] sm:$0xff]   ;;  %v4002_v11 = vld [vmem:[%s5175_s1 + $0x1f8] sm:$0xff]  }
  0x18   :  { %3500 = vmatpush3.bf16.msra.mxu0 %v3959_v22  ;;  %v4000_v9 = vld [vmem:[%s5175_s1 + $0x1b0] sm:$0xff]   ;;  %v4003_v12 = vld [vmem:[%s5175_s1 + $0x138] sm:$0xff]   ;;  %v4005_v22 = vld [vmem:[%s5175_s1 + $0x240] sm:$0xff]  }
  0x19   :  { %3528 = vmatpush3.bf16.msra.mxu1 %v3960_v23  ;;  %3501 = vmatprep.subr.bf16.mxu0 %v3961_v24  ;;  %v4004_v13 = vld [vmem:[%s5175_s1 + $0x1b8] sm:$0xff]   ;;  %v17_v14 = vld [vmem:[%s5176_s0 + $0x10] sm:$0xff]  ;;  %v4006_v23 = vld [vmem:[%s5175_s1 + $0x2c0] sm:$0xff]  }
  0x1a   :  { %3529 = vmatprep.subr.bf16.mxu1 %v3962_v25  ;;  %v33_v15 = vld [vmem:[%s5176_s0 + $0x90] sm:$0xff]  ;;  %v18_v16 = vld [vmem:[%s5176_s0 + $0x18] sm:$0xff]  ;;  %v4007_v24 = vld [vmem:[%s5175_s1 + $0x200] sm:$0xff]  }
  0x1b   :  { %v3173_v17 = vcombine.low %v17_v14, %v33_v15  ;;  %v3174_v18 = vcombine.high %v17_v14, %v33_v15  ;;  %v34_v19 = vld [vmem:[%s5176_s0 + $0x98] sm:$0xff]  ;;  %v4008_v25 = vld [vmem:[%s5175_s1 + $0x280] sm:$0xff]   ;;  %v4015_v33 = vld [vmem:[%s5175_s1 + $0x250] sm:$0xff]  }
  0x1c   :  { %3502 = vmatpush3.bf16.msra.mxu0 %v3963_v26  ;;  %v3175_v20 = vcombine.low %v18_v16, %v34_v19  ;;  %v3176_v21 = vcombine.high %v18_v16, %v34_v19  ;;  %v4009_v26 = vld [vmem:[%s5175_s1 + $0x248] sm:$0xff]   ;;  %v4016_v34 = vld [vmem:[%s5175_s1 + $0x2d0] sm:$0xff]  }
  0x1d   :  { %3530 = vmatpush3.bf16.msra.mxu1 %v3964_v27  ;;  %3503 = vmatprep.subr.bf16.mxu0 %v3965_v28  ;;  %v4010_v27 = vld [vmem:[%s5175_s1 + $0x2c8] sm:$0xff]   ;;  %v4018_v37 = vld [vmem:[%s5175_s1 + $0x210] sm:$0xff]  }
  0x1e   :  { %3531 = vmatprep.subr.bf16.mxu1 %v3966_v29  ;;  %v4011_v28 = vld [vmem:[%s5175_s1 + $0x208] sm:$0xff]   ;;  %v4019_v39 = vld [vmem:[%s5175_s1 + $0x290] sm:$0xff]  }
  0x1f   :  { %v4012_v29 = vld [vmem:[%s5175_s1 + $0x288] sm:$0xff]   ;;  %v4051_v15 = vld [vmem:[%s5175_s1 + $0x350] sm:$0xff]  }
  0x20   :  { %3504 = vmatpush3.bf16.msra.mxu0 %v3967_v30  ;;  %v49_v30 = vld [vmem:[%s5176_s0 + $0x110] sm:$0x11] }
  0x21   :  { %3532 = vmatpush3.bf16.msra.mxu1 %v3968_v31  ;;  %3545 = vmatprep.subr.bf16.mxu0 %v3969_v40  ;;  %v3206_v31 = vcombine.high %v49_v30, %v49_v30  ;;  %v3205_v32 = vcombine.low %v49_v30, %v49_v30  ;;  %v4021_v40 = vld [vmem:[%s5175_s1 + $0x258] sm:$0xff]   ;;  %v4052_v16 = vld [vmem:[%s5175_s1 + $0x3d0] sm:$0xff]   ;;  %v4065_v30 = vld [vmem:[%s5175_s1 + $0x368] sm:$0xff]  }
  0x22   :  { %3573 = vmatprep.subr.bf16.mxu1 %v3970_v41  ;;  %v4022_v41 = vld [vmem:[%s5175_s1 + $0x2d8] sm:$0xff]   ;;  %v4054_v19 = vld [vmem:[%s5175_s1 + $0x310] sm:$0xff]  }
  0x23   :  { %2423 = vmatmul.mubr.bf16.vlgmr.msra.gmra.mrb[0].mxu0 %v3169_v35  ;;  %v50_v35 = vld [vmem:[%s5176_s0 + $0x118] sm:$0x11] }
  0x24   :  { %2471 = vmatmul.mubr.bf16.vlgmr.msra.gmra.mrb[0].mxu1 %v3171_v38  ;;  %3546 = vmatpush3.bf16.msra.mxu0 %v3971_v42  ;;  %v3208_v36 = vcombine.high %v50_v35, %v50_v35  ;;  %v3207_v38 = vcombine.low %v50_v35, %v50_v35  ;;  %v4023_v42 = vld [vmem:[%s5175_s1 + $0x218] sm:$0xff]   ;;  %v4070_v35 = vld [vmem:[%s5175_s1 + $0x3f0] sm:$0xff]  }
  0x25   :  { %3574 = vmatpush3.bf16.msra.mxu1 %v3972_v43  ;;  %3547 = vmatprep.subr.bf16.mxu0 %v3973_v44  ;;  %v4024_v43 = vld [vmem:[%s5175_s1 + $0x298] sm:$0xff]   ;;  %v4025_v44 = vld [vmem:[%s5175_s1 + $0x260] sm:$0xff]  }
  0x26   :  { %3575 = vmatprep.subr.bf16.mxu1 %v3974_v45  ;;  %2430 = vmatprep.mubr.bf16.mxu0 %v3202_v63  ;;  %v4026_v45 = vld [vmem:[%s5175_s1 + $0x2e0] sm:$0xff]  }
  0x27   :  { %2478 = vmatprep.mubr.bf16.mxu1 %v3204_v4  ;;  %v4041_v4 = vld [vmem:[%s5175_s1 + $0x340] sm:$0xff]  }
  0x28   :  { %3548 = vmatpush3.bf16.msra.mxu0 %v3975_v46  ;;  %v4027_v46 = vld [vmem:[%s5175_s1 + $0x220] sm:$0xff]  }
  0x29   :  { %3576 = vmatpush3.bf16.msra.mxu1 %v3976_v47  ;;  %3549 = vmatprep.subr.bf16.mxu0 %v3977_v48  ;;  %v4028_v47 = vld [vmem:[%s5175_s1 + $0x2a0] sm:$0xff]   ;;  %v4029_v48 = vld [vmem:[%s5175_s1 + $0x268] sm:$0xff]  }
  0x2a   :  { %3577 = vmatprep.subr.bf16.mxu1 %v3978_v49  ;;  %v4030_v49 = vld [vmem:[%s5175_s1 + $0x2e8] sm:$0xff]  }
  0x2b   :  { %2431 = vmatmul.mubr.bf16.gmra.mrb[4].mxu0 %v3201_v1  ;;  %v36_v1 = vld [vmem:[%s5176_s0 + $0xa8] sm:$0xff] }
  0x2c   :  { %3550 = vmatpush3.bf16.msra.mxu0 %v3979_v50  ;;  %2479 = vmatmul.mubr.bf16.gmra.mrb[4].mxu1 %v3203_v5  ;;  %v4031_v50 = vld [vmem:[%s5175_s1 + $0x228] sm:$0xff]   ;;  %v3180_v3 = vcombine.high %v20_v62, %v36_v1  ;;  %v4042_v5 = vld [vmem:[%s5175_s1 + $0x3c0] sm:$0xff]  }
  0x2d   :  { %3578 = vmatpush3.bf16.msra.mxu1 %v3980_v51  ;;  %3551 = vmatprep.subr.bf16.mxu0 %v3981_v52  ;;  %v4032_v51 = vld [vmem:[%s5175_s1 + $0x2a8] sm:$0xff]   ;;  %v4033_v52 = vld [vmem:[%s5175_s1 + $0x270] sm:$0xff]  }
  0x2e   :  { %3579 = vmatprep.subr.bf16.mxu1 %v3982_v53  ;;  %2518 = vmatprep.mubr.bf16.mxu0 %v3174_v18  ;;  %v4034_v53 = vld [vmem:[%s5175_s1 + $0x2f0] sm:$0xff]  }
  0x2f   :  { %2566 = vmatprep.mubr.bf16.mxu1 %v3176_v21  ;;  %v4055_v21 = vld [vmem:[%s5175_s1 + $0x390] sm:$0xff]  }
  0x30   :  { %3552 = vmatpush3.bf16.msra.mxu0 %v3983_v54  ;;  %v4035_v54 = vld [vmem:[%s5175_s1 + $0x230] sm:$0xff]  }
  0x31   :  { %3580 = vmatpush3.bf16.msra.mxu1 %v3984_v55  ;;  %3553 = vmatprep.subr.bf16.mxu0 %v3985_v56  ;;  %v4036_v55 = vld [vmem:[%s5175_s1 + $0x2b0] sm:$0xff]   ;;  %v4037_v56 = vld [vmem:[%s5175_s1 + $0x278] sm:$0xff]  }
  0x32   :  { %3581 = vmatprep.subr.bf16.mxu1 %v3986_v57  ;;  %v4038_v57 = vld [vmem:[%s5175_s1 + $0x2f8] sm:$0xff]  }
  0x34   :  { %3554 = vmatpush3.bf16.msra.mxu0 %v3987_v58  ;;  %v4039_v58 = vld [vmem:[%s5175_s1 + $0x238] sm:$0xff]  }
  0x35   :  { %3582 = vmatpush3.bf16.msra.mxu1 %v3988_v59  ;;  %3555 = vmatprep.subr.bf16.mxu0 %v3989_v60  ;;  %v4040_v59 = vld [vmem:[%s5175_s1 + $0x2b8] sm:$0xff]   ;;  %v19_v60 = vld [vmem:[%s5176_s0 + $0x20] sm:$0xff] }
  0x36   :  { %3583 = vmatprep.subr.bf16.mxu1 %v3990_v61  ;;  %v35_v61 = vld [vmem:[%s5176_s0 + $0xa0] sm:$0xff] }
  0x37   :  { %v3177_v63 = vcombine.low %v19_v60, %v35_v61 }
  0x38   :  { %3556 = vmatpush3.bf16.msra.mxu0 %v3992_v0  ;;  %v3178_v0 = vcombine.high %v19_v60, %v35_v61  ;;  %v4087_v61 = vld [vmem:[%s5175_s1 + $0x450] sm:$0xff]  }
  0x39   :  { %3584 = vmatpush3.bf16.msra.mxu1 %v3993_v2  ;;  %3557 = vmatprep.subr.bf16.mxu0 %v3997_v6  ;;  %v3179_v2 = vcombine.low %v20_v62, %v36_v1  ;;  %v4043_v6 = vld [vmem:[%s5175_s1 + $0x300] sm:$0xff]   ;;  %v4088_v62 = vld [vmem:[%s5175_s1 + $0x4d0] sm:$0xff]  }
  0x3a   :  { %3585 = vmatprep.subr.bf16.mxu1 %v3998_v7  ;;  %v4044_v7 = vld [vmem:[%s5175_s1 + $0x380] sm:$0xff]   ;;  %v4090_v1 = vld [vmem:[%s5175_s1 + $0x410] sm:$0xff]  }
  0x3c   :  { %3558 = vmatpush3.bf16.msra.mxu0 %v3999_v8  ;;  %v4045_v8 = vld [vmem:[%s5175_s1 + $0x348] sm:$0xff]  }
  0x3d   :  { %3586 = vmatpush3.bf16.msra.mxu1 %v4000_v9  ;;  %3559 = vmatprep.subr.bf16.mxu0 %v4001_v10  ;;  %v4046_v9 = vld [vmem:[%s5175_s1 + $0x3c8] sm:$0xff]  }
  0x3e   :  { %3587 = vmatprep.subr.bf16.mxu1 %v4002_v11  ;;  %v4047_v10 = vld [vmem:[%s5175_s1 + $0x308] sm:$0xff]  }
  0x3f   :  { %v4048_v11 = vld [vmem:[%s5175_s1 + $0x388] sm:$0xff]  }
  0x40   :  { %3560 = vmatpush3.bf16.msra.mxu0 %v4003_v12  ;;  %v51_v12 = vld [vmem:[%s5176_s0 + $0x120] sm:$0x11] }
  0x41   :  { %3588 = vmatpush3.bf16.msra.mxu1 %v4004_v13  ;;  %3601 = vmatprep.subr.bf16.mxu0 %v4005_v22  ;;  %v3210_v13 = vcombine.high %v51_v12, %v51_v12  ;;  %v3209_v14 = vcombine.low %v51_v12, %v51_v12  ;;  %v4057_v22 = vld [vmem:[%s5175_s1 + $0x358] sm:$0xff]   ;;  %v4101_v12 = vld [vmem:[%s5175_s1 + $0x468] sm:$0xff]  }
  0x42   :  { %3629 = vmatprep.subr.bf16.mxu1 %v4006_v23  ;;  %v4058_v23 = vld [vmem:[%s5175_s1 + $0x3d8] sm:$0xff]  }
  0x43   :  { %2519 = vmatmul.mubr.bf16.vlgmr.msra.gmra.mrb[8].mxu0 %v3173_v17  ;;  %v52_v17 = vld [vmem:[%s5176_s0 + $0x128] sm:$0x11] }
  0x44   :  { %2567 = vmatmul.mubr.bf16.vlgmr.msra.gmra.mrb[8].mxu1 %v3175_v20  ;;  %3602 = vmatpush3.bf16.msra.mxu0 %v4007_v24  ;;  %v3212_v18 = vcombine.high %v52_v17, %v52_v17  ;;  %v3211_v20 = vcombine.low %v52_v17, %v52_v17  ;;  %v4059_v24 = vld [vmem:[%s5175_s1 + $0x318] sm:$0xff]   ;;  %v4106_v17 = vld [vmem:[%s5175_s1 + $0x4f0] sm:$0xff]  }
  0x45   :  { %3630 = vmatpush3.bf16.msra.mxu1 %v4008_v25  ;;  %3603 = vmatprep.subr.bf16.mxu0 %v4009_v26  ;;  %v4060_v25 = vld [vmem:[%s5175_s1 + $0x398] sm:$0xff]   ;;  %v4061_v26 = vld [vmem:[%s5175_s1 + $0x360] sm:$0xff]  }
  0x46   :  { %3631 = vmatprep.subr.bf16.mxu1 %v4010_v27  ;;  %2526 = vmatprep.mubr.bf16.mxu0 %v3206_v31  ;;  %v4062_v27 = vld [vmem:[%s5175_s1 + $0x3e0] sm:$0xff]   ;;  %v4066_v31 = vld [vmem:[%s5175_s1 + $0x3e8] sm:$0xff]  }
  0x47   :  { %2574 = vmatprep.mubr.bf16.mxu1 %v3208_v36  ;;  %v4071_v36 = vld [vmem:[%s5175_s1 + $0x330] sm:$0xff]  }
  0x48   :  { %3604 = vmatpush3.bf16.msra.mxu0 %v4011_v28  ;;  %v4063_v28 = vld [vmem:[%s5175_s1 + $0x320] sm:$0xff]  }
  0x49   :  { %3632 = vmatpush3.bf16.msra.mxu1 %v4012_v29  ;;  %3605 = vmatprep.subr.bf16.mxu0 %v4015_v33  ;;  %v4064_v29 = vld [vmem:[%s5175_s1 + $0x3a0] sm:$0xff]   ;;  %v4068_v33 = vld [vmem:[%s5175_s1 + $0x3a8] sm:$0xff]  }
  0x4a   :  { %3633 = vmatprep.subr.bf16.mxu1 %v4016_v34  ;;  %v4069_v34 = vld [vmem:[%s5175_s1 + $0x370] sm:$0xff]  }
  0x4b   :  { %2527 = vmatmul.mubr.bf16.gmra.mrb[12].mxu0 %v3205_v32  ;;  %v4067_v32 = vld [vmem:[%s5175_s1 + $0x328] sm:$0xff]  }
  0x4c   :  { %3606 = vmatpush3.bf16.msra.mxu0 %v4018_v37  ;;  %2575 = vmatmul.mubr.bf16.gmra.mrb[12].mxu1 %v3207_v38  ;;  %v4072_v37 = vld [vmem:[%s5175_s1 + $0x3b0] sm:$0xff]   ;;  %v4073_v38 = vld [vmem:[%s5175_s1 + $0x378] sm:$0xff]  }
  0x4d   :  { %3634 = vmatpush3.bf16.msra.mxu1 %v4019_v39  ;;  %3607 = vmatprep.subr.bf16.mxu0 %v4021_v40  ;;  %v4074_v39 = vld [vmem:[%s5175_s1 + $0x3f8] sm:$0xff]  }
  0x4e   :  { %3635 = vmatprep.subr.bf16.mxu1 %v4022_v41  ;;  %2614 = vmatprep.mubr.bf16.mxu0 %v3178_v0  ;;  %v4075_v40 = vld [vmem:[%s5175_s1 + $0x338] sm:$0xff]  }
  0x4f   :  { %2662 = vmatprep.mubr.bf16.mxu1 %v3180_v3  ;;  %v4076_v41 = vld [vmem:[%s5175_s1 + $0x3b8] sm:$0xff]   ;;  %v4091_v3 = vld [vmem:[%s5175_s1 + $0x490] sm:$0xff]  }
  0x50   :  { %3608 = vmatpush3.bf16.msra.mxu0 %v4023_v42  ;;  %v21_v42 = vld [vmem:[%s5176_s0 + $0x30] sm:$0xff] }
  0x51   :  { %3636 = vmatpush3.bf16.msra.mxu1 %v4024_v43  ;;  %3609 = vmatprep.subr.bf16.mxu0 %v4025_v44  ;;  %v37_v43 = vld [vmem:[%s5176_s0 + $0xb0] sm:$0xff]  ;;  %v22_v44 = vld [vmem:[%s5176_s0 + $0x38] sm:$0xff] }
  0x52   :  { %3637 = vmatprep.subr.bf16.mxu1 %v4026_v45  ;;  %v3181_v45 = vcombine.low %v21_v42, %v37_v43 }
  0x54   :  { %3610 = vmatpush3.bf16.msra.mxu0 %v4027_v46  ;;  %v3182_v46 = vcombine.high %v21_v42, %v37_v43  ;;  %v4123_v43 = vld [vmem:[%s5175_s1 + $0x550] sm:$0xff]  }
  0x55   :  { %3638 = vmatpush3.bf16.msra.mxu1 %v4028_v47  ;;  %3611 = vmatprep.subr.bf16.mxu0 %v4029_v48  ;;  %v38_v47 = vld [vmem:[%s5176_s0 + $0xb8] sm:$0xff] }
  0x56   :  { %3639 = vmatprep.subr.bf16.mxu1 %v4030_v49  ;;  %v3183_v48 = vcombine.low %v22_v44, %v38_v47  ;;  %v3184_v49 = vcombine.high %v22_v44, %v38_v47  ;;  %v4124_v44 = vld [vmem:[%s5175_s1 + $0x5d0] sm:$0xff]  }
  0x57   :  { %v4126_v47 = vld [vmem:[%s5175_s1 + $0x510] sm:$0xff]  }
  0x58   :  { %3612 = vmatpush3.bf16.msra.mxu0 %v4031_v50  ;;  %v4077_v50 = vld [vmem:[%s5175_s1 + $0x440] sm:$0xff]  }
  0x59   :  { %3640 = vmatpush3.bf16.msra.mxu1 %v4032_v51  ;;  %3613 = vmatprep.subr.bf16.mxu0 %v4033_v52  ;;  %v4078_v51 = vld [vmem:[%s5175_s1 + $0x4c0] sm:$0xff]  }
  0x5a   :  { %3641 = vmatprep.subr.bf16.mxu1 %v4034_v53  ;;  %v4079_v52 = vld [vmem:[%s5175_s1 + $0x400] sm:$0xff]  }
  0x5b   :  { %v4080_v53 = vld [vmem:[%s5175_s1 + $0x480] sm:$0xff]  }
  0x5c   :  { %3614 = vmatpush3.bf16.msra.mxu0 %v4035_v54  ;;  %v4081_v54 = vld [vmem:[%s5175_s1 + $0x448] sm:$0xff]  }
  0x5d   :  { %3642 = vmatpush3.bf16.msra.mxu1 %v4036_v55  ;;  %3615 = vmatprep.subr.bf16.mxu0 %v4037_v56  ;;  %v4082_v55 = vld [vmem:[%s5175_s1 + $0x4c8] sm:$0xff]  }
  0x5e   :  { %3643 = vmatprep.subr.bf16.mxu1 %v4038_v57  ;;  %v4083_v56 = vld [vmem:[%s5175_s1 + $0x408] sm:$0xff]  }
  0x5f   :  { %v4084_v57 = vld [vmem:[%s5175_s1 + $0x488] sm:$0xff]  }
  0x60   :  { %3616 = vmatpush3.bf16.msra.mxu0 %v4039_v58  ;;  %v53_v58 = vld [vmem:[%s5176_s0 + $0x130] sm:$0x11] }
  0x61   :  { %3644 = vmatpush3.bf16.msra.mxu1 %v4040_v59  ;;  %3657 = vmatprep.subr.bf16.mxu0 %v4041_v4  ;;  %v3214_v59 = vcombine.high %v53_v58, %v53_v58  ;;  %v3213_v60 = vcombine.low %v53_v58, %v53_v58  ;;  %v4093_v4 = vld [vmem:[%s5175_s1 + $0x458] sm:$0xff]   ;;  %v4137_v58 = vld [vmem:[%s5175_s1 + $0x568] sm:$0xff]  }
  0x62   :  { %3685 = vmatprep.subr.bf16.mxu1 %v4042_v5  ;;  %v4094_v5 = vld [vmem:[%s5175_s1 + $0x4d8] sm:$0xff]  }
  0x63   :  { %2615 = vmatmul.mubr.bf16.vlgmr.msra.gmra.mrb[16].mxu0 %v3177_v63  ;;  %v54_v63 = vld [vmem:[%s5176_s0 + $0x138] sm:$0x11] }
  0x64   :  { %2663 = vmatmul.mubr.bf16.vlgmr.msra.gmra.mrb[16].mxu1 %v3179_v2  ;;  %3658 = vmatpush3.bf16.msra.mxu0 %v4043_v6  ;;  %v3216_v0 = vcombine.high %v54_v63, %v54_v63  ;;  %v3215_v2 = vcombine.low %v54_v63, %v54_v63  ;;  %v4095_v6 = vld [vmem:[%s5175_s1 + $0x418] sm:$0xff]   ;;  %v4142_v63 = vld [vmem:[%s5175_s1 + $0x5f0] sm:$0xff]  }
  0x65   :  { %3686 = vmatpush3.bf16.msra.mxu1 %v4044_v7  ;;  %3659 = vmatprep.subr.bf16.mxu0 %v4045_v8  ;;  %v4096_v7 = vld [vmem:[%s5175_s1 + $0x498] sm:$0xff]   ;;  %v4097_v8 = vld [vmem:[%s5175_s1 + $0x460] sm:$0xff]  }
  0x66   :  { %3687 = vmatprep.subr.bf16.mxu1 %v4046_v9  ;;  %2622 = vmatprep.mubr.bf16.mxu0 %v3210_v13  ;;  %v4098_v9 = vld [vmem:[%s5175_s1 + $0x4e0] sm:$0xff]   ;;  %v4102_v13 = vld [vmem:[%s5175_s1 + $0x4e8] sm:$0xff]  }
  0x67   :  { %2670 = vmatprep.mubr.bf16.mxu1 %v3212_v18  ;;  %v4107_v18 = vld [vmem:[%s5175_s1 + $0x430] sm:$0xff]  }
  0x68   :  { %3660 = vmatpush3.bf16.msra.mxu0 %v4047_v10  ;;  %v4099_v10 = vld [vmem:[%s5175_s1 + $0x420] sm:$0xff]  }
  0x69   :  { %3688 = vmatpush3.bf16.msra.mxu1 %v4048_v11  ;;  %3661 = vmatprep.subr.bf16.mxu0 %v4051_v15  ;;  %v4100_v11 = vld [vmem:[%s5175_s1 + $0x4a0] sm:$0xff]   ;;  %v4104_v15 = vld [vmem:[%s5175_s1 + $0x4a8] sm:$0xff]  }
  0x6a   :  { %3689 = vmatprep.subr.bf16.mxu1 %v4052_v16  ;;  %v4105_v16 = vld [vmem:[%s5175_s1 + $0x470] sm:$0xff]  }
  0x6b   :  { %2623 = vmatmul.mubr.bf16.gmra.mrb[20].mxu0 %v3209_v14  ;;  %v4103_v14 = vld [vmem:[%s5175_s1 + $0x428] sm:$0xff]  }
  0x6c   :  { %3662 = vmatpush3.bf16.msra.mxu0 %v4054_v19  ;;  %2671 = vmatmul.mubr.bf16.gmra.mrb[20].mxu1 %v3211_v20  ;;  %v4108_v19 = vld [vmem:[%s5175_s1 + $0x4b0] sm:$0xff]   ;;  %v4109_v20 = vld [vmem:[%s5175_s1 + $0x478] sm:$0xff]  }
  0x6d   :  { %3690 = vmatpush3.bf16.msra.mxu1 %v4055_v21  ;;  %3663 = vmatprep.subr.bf16.mxu0 %v4057_v22  ;;  %v4110_v21 = vld [vmem:[%s5175_s1 + $0x4f8] sm:$0xff]  }
  0x6e   :  { %3691 = vmatprep.subr.bf16.mxu1 %v4058_v23  ;;  %2710 = vmatprep.mubr.bf16.mxu0 %v3182_v46  ;;  %v4111_v22 = vld [vmem:[%s5175_s1 + $0x438] sm:$0xff]  }
  0x6f   :  { %2758 = vmatprep.mubr.bf16.mxu1 %v3184_v49  ;;  %v4112_v23 = vld [vmem:[%s5175_s1 + $0x4b8] sm:$0xff]   ;;  %v4127_v49 = vld [vmem:[%s5175_s1 + $0x590] sm:$0xff]  }
  0x70   :  { %3664 = vmatpush3.bf16.msra.mxu0 %v4059_v24  ;;  %v23_v24 = vld [vmem:[%s5176_s0 + $0x40] sm:$0xff] }
  0x71   :  { %3692 = vmatpush3.bf16.msra.mxu1 %v4060_v25  ;;  %3665 = vmatprep.subr.bf16.mxu0 %v4061_v26  ;;  %v39_v25 = vld [vmem:[%s5176_s0 + $0xc0] sm:$0xff]  ;;  %v24_v26 = vld [vmem:[%s5176_s0 + $0x48] sm:$0xff] }
  0x72   :  { %3693 = vmatprep.subr.bf16.mxu1 %v4062_v27  ;;  %v3185_v27 = vcombine.low %v23_v24, %v39_v25 }
  0x74   :  { %3666 = vmatpush3.bf16.msra.mxu0 %v4063_v28  ;;  %v3186_v28 = vcombine.high %v23_v24, %v39_v25  ;;  %v4159_v25 = vld [vmem:[%s5175_s1 + $0x650] sm:$0xff]  }
  0x75   :  { %3694 = vmatpush3.bf16.msra.mxu1 %v4064_v29  ;;  %3667 = vmatprep.subr.bf16.mxu0 %v4065_v30  ;;  %v40_v29 = vld [vmem:[%s5176_s0 + $0xc8] sm:$0xff] }
  0x76   :  { %3695 = vmatprep.subr.bf16.mxu1 %v4066_v31  ;;  %v3187_v30 = vcombine.low %v24_v26, %v40_v29  ;;  %v3188_v31 = vcombine.high %v24_v26, %v40_v29  ;;  %v4160_v26 = vld [vmem:[%s5175_s1 + $0x6d0] sm:$0xff]  }
  0x77   :  { %v4162_v29 = vld [vmem:[%s5175_s1 + $0x610] sm:$0xff]  }
  0x78   :  { %3668 = vmatpush3.bf16.msra.mxu0 %v4067_v32  ;;  %v4113_v32 = vld [vmem:[%s5175_s1 + $0x540] sm:$0xff]  }
  0x79   :  { %3696 = vmatpush3.bf16.msra.mxu1 %v4068_v33  ;;  %3669 = vmatprep.subr.bf16.mxu0 %v4069_v34  ;;  %v4114_v33 = vld [vmem:[%s5175_s1 + $0x5c0] sm:$0xff]  }
  0x7a   :  { %3697 = vmatprep.subr.bf16.mxu1 %v4070_v35  ;;  %v4115_v34 = vld [vmem:[%s5175_s1 + $0x500] sm:$0xff]  }
  0x7b   :  { %v4116_v35 = vld [vmem:[%s5175_s1 + $0x580] sm:$0xff]  }
  0x7c   :  { %3670 = vmatpush3.bf16.msra.mxu0 %v4071_v36  ;;  %v4117_v36 = vld [vmem:[%s5175_s1 + $0x548] sm:$0xff]  }
  0x7d   :  { %3698 = vmatpush3.bf16.msra.mxu1 %v4072_v37  ;;  %3671 = vmatprep.subr.bf16.mxu0 %v4073_v38  ;;  %v4118_v37 = vld [vmem:[%s5175_s1 + $0x5c8] sm:$0xff]  }
  0x7e   :  { %3699 = vmatprep.subr.bf16.mxu1 %v4074_v39  ;;  %v4119_v38 = vld [vmem:[%s5175_s1 + $0x508] sm:$0xff]  }
  0x7f   :  { %v4120_v39 = vld [vmem:[%s5175_s1 + $0x588] sm:$0xff]  }
  0x80   :  { %3672 = vmatpush3.bf16.msra.mxu0 %v4075_v40  ;;  %v55_v40 = vld [vmem:[%s5176_s0 + $0x140] sm:$0x11] }
  0x81   :  { %3700 = vmatpush3.bf16.msra.mxu1 %v4076_v41  ;;  %3713 = vmatprep.subr.bf16.mxu0 %v4077_v50  ;;  %v3218_v41 = vcombine.high %v55_v40, %v55_v40  ;;  %v3217_v42 = vcombine.low %v55_v40, %v55_v40  ;;  %v4129_v50 = vld [vmem:[%s5175_s1 + $0x558] sm:$0xff]   ;;  %v4173_v40 = vld [vmem:[%s5175_s1 + $0x668] sm:$0xff]  }
  0x82   :  { %3741 = vmatprep.subr.bf16.mxu1 %v4078_v51  ;;  %v4130_v51 = vld [vmem:[%s5175_s1 + $0x5d8] sm:$0xff]  }
  0x83   :  { %2711 = vmatmul.mubr.bf16.vlgmr.msra.gmra.mrb[24].mxu0 %v3181_v45  ;;  %v56_v45 = vld [vmem:[%s5176_s0 + $0x148] sm:$0x11] }
  0x84   :  { %2759 = vmatmul.mubr.bf16.vlgmr.msra.gmra.mrb[24].mxu1 %v3183_v48  ;;  %3714 = vmatpush3.bf16.msra.mxu0 %v4079_v52  ;;  %v3220_v46 = vcombine.high %v56_v45, %v56_v45  ;;  %v3219_v48 = vcombine.low %v56_v45, %v56_v45  ;;  %v4131_v52 = vld [vmem:[%s5175_s1 + $0x518] sm:$0xff]   ;;  %v4178_v45 = vld [vmem:[%s5175_s1 + $0x6f0] sm:$0xff]  }
  0x85   :  { %3742 = vmatpush3.bf16.msra.mxu1 %v4080_v53  ;;  %3715 = vmatprep.subr.bf16.mxu0 %v4081_v54  ;;  %v4132_v53 = vld [vmem:[%s5175_s1 + $0x598] sm:$0xff]   ;;  %v4133_v54 = vld [vmem:[%s5175_s1 + $0x560] sm:$0xff]  }
  0x86   :  { %3743 = vmatprep.subr.bf16.mxu1 %v4082_v55  ;;  %2718 = vmatprep.mubr.bf16.mxu0 %v3214_v59  ;;  %v4134_v55 = vld [vmem:[%s5175_s1 + $0x5e0] sm:$0xff]   ;;  %v4138_v59 = vld [vmem:[%s5175_s1 + $0x5e8] sm:$0xff]  }
  0x87   :  { %2766 = vmatprep.mubr.bf16.mxu1 %v3216_v0  ;;  %v4143_v0 = vld [vmem:[%s5175_s1 + $0x530] sm:$0xff]  }
  0x88   :  { %3716 = vmatpush3.bf16.msra.mxu0 %v4083_v56  ;;  %v4135_v56 = vld [vmem:[%s5175_s1 + $0x520] sm:$0xff]  }
  0x89   :  { %3744 = vmatpush3.bf16.msra.mxu1 %v4084_v57  ;;  %3717 = vmatprep.subr.bf16.mxu0 %v4087_v61  ;;  %v4136_v57 = vld [vmem:[%s5175_s1 + $0x5a0] sm:$0xff]   ;;  %v4140_v61 = vld [vmem:[%s5175_s1 + $0x5a8] sm:$0xff]  }
  0x8a   :  { %3745 = vmatprep.subr.bf16.mxu1 %v4088_v62  ;;  %v4141_v62 = vld [vmem:[%s5175_s1 + $0x570] sm:$0xff]  }
  0x8b   :  { %2719 = vmatmul.mubr.bf16.gmra.mrb[28].mxu0 %v3213_v60  ;;  %v4139_v60 = vld [vmem:[%s5175_s1 + $0x528] sm:$0xff]  }
  0x8c   :  { %3718 = vmatpush3.bf16.msra.mxu0 %v4090_v1  ;;  %2767 = vmatmul.mubr.bf16.gmra.mrb[28].mxu1 %v3215_v2  ;;  %v4144_v1 = vld [vmem:[%s5175_s1 + $0x5b0] sm:$0xff]   ;;  %v4145_v2 = vld [vmem:[%s5175_s1 + $0x578] sm:$0xff]  }
  0x8d   :  { %3746 = vmatpush3.bf16.msra.mxu1 %v4091_v3  ;;  %3719 = vmatprep.subr.bf16.mxu0 %v4093_v4  ;;  %v4146_v3 = vld [vmem:[%s5175_s1 + $0x5f8] sm:$0xff]  }
  0x8e   :  { %3747 = vmatprep.subr.bf16.mxu1 %v4094_v5  ;;  %2806 = vmatprep.mubr.bf16.mxu0 %v3186_v28  ;;  %v4147_v4 = vld [vmem:[%s5175_s1 + $0x538] sm:$0xff]  }
  0x8f   :  { %2854 = vmatprep.mubr.bf16.mxu1 %v3188_v31  ;;  %v4148_v5 = vld [vmem:[%s5175_s1 + $0x5b8] sm:$0xff]   ;;  %v4163_v31 = vld [vmem:[%s5175_s1 + $0x690] sm:$0xff]  }
  0x90   :  { %3720 = vmatpush3.bf16.msra.mxu0 %v4095_v6  ;;  %v25_v6 = vld [vmem:[%s5176_s0 + $0x50] sm:$0xff] }
  0x91   :  { %3748 = vmatpush3.bf16.msra.mxu1 %v4096_v7  ;;  %3721 = vmatprep.subr.bf16.mxu0 %v4097_v8  ;;  %v41_v7 = vld [vmem:[%s5176_s0 + $0xd0] sm:$0xff]  ;;  %v26_v8 = vld [vmem:[%s5176_s0 + $0x58] sm:$0xff] }
  0x92   :  { %3749 = vmatprep.subr.bf16.mxu1 %v4098_v9  ;;  %v3189_v9 = vcombine.low %v25_v6, %v41_v7 }
  0x94   :  { %3722 = vmatpush3.bf16.msra.mxu0 %v4099_v10  ;;  %v3190_v10 = vcombine.high %v25_v6, %v41_v7  ;;  %v4195_v7 = vld [vmem:[%s5175_s1 + $0x750] sm:$0xff]  }
  0x95   :  { %3750 = vmatpush3.bf16.msra.mxu1 %v4100_v11  ;;  %3723 = vmatprep.subr.bf16.mxu0 %v4101_v12  ;;  %v42_v11 = vld [vmem:[%s5176_s0 + $0xd8] sm:$0xff] }
  0x96   :  { %3751 = vmatprep.subr.bf16.mxu1 %v4102_v13  ;;  %v3191_v12 = vcombine.low %v26_v8, %v42_v11  ;;  %v3192_v13 = vcombine.high %v26_v8, %v42_v11  ;;  %v4196_v8 = vld [vmem:[%s5175_s1 + $0x7d0] sm:$0xff]  }
  0x98   :  { %3724 = vmatpush3.bf16.msra.mxu0 %v4103_v14  ;;  %v4149_v14 = vld [vmem:[%s5175_s1 + $0x640] sm:$0xff]  }
  0x99   :  { %3752 = vmatpush3.bf16.msra.mxu1 %v4104_v15  ;;  %3725 = vmatprep.subr.bf16.mxu0 %v4105_v16  ;;  %v4150_v15 = vld [vmem:[%s5175_s1 + $0x6c0] sm:$0xff]  }
  0x9a   :  { %3753 = vmatprep.subr.bf16.mxu1 %v4106_v17  ;;  %v4151_v16 = vld [vmem:[%s5175_s1 + $0x600] sm:$0xff]  }
  0x9b   :  { %v4152_v17 = vld [vmem:[%s5175_s1 + $0x680] sm:$0xff]  }
  0x9c   :  { %3726 = vmatpush3.bf16.msra.mxu0 %v4107_v18  ;;  %v4153_v18 = vld [vmem:[%s5175_s1 + $0x648] sm:$0xff]  }
  0x9d   :  { %3754 = vmatpush3.bf16.msra.mxu1 %v4108_v19  ;;  %3727 = vmatprep.subr.bf16.mxu0 %v4109_v20  ;;  %v4154_v19 = vld [vmem:[%s5175_s1 + $0x6c8] sm:$0xff]  }
  0x9e   :  { %3755 = vmatprep.subr.bf16.mxu1 %v4110_v21  ;;  %v4155_v20 = vld [vmem:[%s5175_s1 + $0x608] sm:$0xff]  }
  0x9f   :  { %v4156_v21 = vld [vmem:[%s5175_s1 + $0x688] sm:$0xff]  }
  0xa0   :  { %3728 = vmatpush3.bf16.msra.mxu0 %v4111_v22  ;;  %v57_v22 = vld [vmem:[%s5176_s0 + $0x150] sm:$0x11] }
  0xa1   :  { %3756 = vmatpush3.bf16.msra.mxu1 %v4112_v23  ;;  %3769 = vmatprep.subr.bf16.mxu0 %v4113_v32  ;;  %v3222_v23 = vcombine.high %v57_v22, %v57_v22  ;;  %v3221_v24 = vcombine.low %v57_v22, %v57_v22  ;;  %v4165_v32 = vld [vmem:[%s5175_s1 + $0x658] sm:$0xff]  }
  0xa2   :  { %3797 = vmatprep.subr.bf16.mxu1 %v4114_v33  ;;  %v4166_v33 = vld [vmem:[%s5175_s1 + $0x6d8] sm:$0xff]  }
  0xa3   :  { %2807 = vmatmul.mubr.bf16.vlgmr.msra.gmra.mrb[32].mxu0 %v3185_v27  ;;  %v58_v27 = vld [vmem:[%s5176_s0 + $0x158] sm:$0x11] }
  0xa4   :  { %2855 = vmatmul.mubr.bf16.vlgmr.msra.gmra.mrb[32].mxu1 %v3187_v30  ;;  %3770 = vmatpush3.bf16.msra.mxu0 %v4115_v34  ;;  %v3224_v28 = vcombine.high %v58_v27, %v58_v27  ;;  %v3223_v30 = vcombine.low %v58_v27, %v58_v27  ;;  %v4167_v34 = vld [vmem:[%s5175_s1 + $0x618] sm:$0xff]   ;;  %v4205_v27 = vld [vmem:[%s5175_s1 + $0x760] sm:$0xff]  }
  0xa5   :  { %3798 = vmatpush3.bf16.msra.mxu1 %v4116_v35  ;;  %3771 = vmatprep.subr.bf16.mxu0 %v4117_v36  ;;  %v4168_v35 = vld [vmem:[%s5175_s1 + $0x698] sm:$0xff]   ;;  %v4169_v36 = vld [vmem:[%s5175_s1 + $0x660] sm:$0xff]  }
  0xa6   :  { %3799 = vmatprep.subr.bf16.mxu1 %v4118_v37  ;;  %2814 = vmatprep.mubr.bf16.mxu0 %v3218_v41  ;;  %v4170_v37 = vld [vmem:[%s5175_s1 + $0x6e0] sm:$0xff]   ;;  %v4174_v41 = vld [vmem:[%s5175_s1 + $0x6e8] sm:$0xff]  }
  0xa7   :  { %2862 = vmatprep.mubr.bf16.mxu1 %v3220_v46  ;;  %v4179_v46 = vld [vmem:[%s5175_s1 + $0x630] sm:$0xff]  }
  0xa8   :  { %3772 = vmatpush3.bf16.msra.mxu0 %v4119_v38  ;;  %v4171_v38 = vld [vmem:[%s5175_s1 + $0x620] sm:$0xff]  }
  0xa9   :  { %3800 = vmatpush3.bf16.msra.mxu1 %v4120_v39  ;;  %3773 = vmatprep.subr.bf16.mxu0 %v4123_v43  ;;  %v4172_v39 = vld [vmem:[%s5175_s1 + $0x6a0] sm:$0xff]   ;;  %v4176_v43 = vld [vmem:[%s5175_s1 + $0x6a8] sm:$0xff]  }
  0xaa   :  { %3801 = vmatprep.subr.bf16.mxu1 %v4124_v44  ;;  %v4177_v44 = vld [vmem:[%s5175_s1 + $0x670] sm:$0xff]  }
  0xab   :  { %2815 = vmatmul.mubr.bf16.gmra.mrb[36].mxu0 %v3217_v42  ;;  %v4175_v42 = vld [vmem:[%s5175_s1 + $0x628] sm:$0xff]  }
  0xac   :  { %3774 = vmatpush3.bf16.msra.mxu0 %v4126_v47  ;;  %2863 = vmatmul.mubr.bf16.gmra.mrb[36].mxu1 %v3219_v48  ;;  %v4180_v47 = vld [vmem:[%s5175_s1 + $0x6b0] sm:$0xff]   ;;  %v4181_v48 = vld [vmem:[%s5175_s1 + $0x678] sm:$0xff]  }
  0xad   :  { %3802 = vmatpush3.bf16.msra.mxu1 %v4127_v49  ;;  %3775 = vmatprep.subr.bf16.mxu0 %v4129_v50  ;;  %v4182_v49 = vld [vmem:[%s5175_s1 + $0x6f8] sm:$0xff]  }
  0xae   :  { %3803 = vmatprep.subr.bf16.mxu1 %v4130_v51  ;;  %2902 = vmatprep.mubr.bf16.mxu0 %v3190_v10  ;;  %v4183_v50 = vld [vmem:[%s5175_s1 + $0x638] sm:$0xff]  }
  0xaf   :  { %2950 = vmatprep.mubr.bf16.mxu1 %v3192_v13  ;;  %v4184_v51 = vld [vmem:[%s5175_s1 + $0x6b8] sm:$0xff]  }
  0xb0   :  { %3776 = vmatpush3.bf16.msra.mxu0 %v4131_v52  ;;  %v27_v52 = vld [vmem:[%s5176_s0 + $0x60] sm:$0xff] }
  0xb1   :  { %3804 = vmatpush3.bf16.msra.mxu1 %v4132_v53  ;;  %3777 = vmatprep.subr.bf16.mxu0 %v4133_v54  ;;  %v43_v53 = vld [vmem:[%s5176_s0 + $0xe0] sm:$0xff]  ;;  %v28_v54 = vld [vmem:[%s5176_s0 + $0x68] sm:$0xff] }
  0xb2   :  { %3805 = vmatprep.subr.bf16.mxu1 %v4134_v55  ;;  %v3193_v55 = vcombine.low %v27_v52, %v43_v53 }
  0xb4   :  { %3778 = vmatpush3.bf16.msra.mxu0 %v4135_v56  ;;  %v3194_v56 = vcombine.high %v27_v52, %v43_v53  ;;  %v45_v52 = vld [vmem:[%s5176_s0 + $0xf0] sm:$0xff] }
  0xb5   :  { %3806 = vmatpush3.bf16.msra.mxu1 %v4136_v57  ;;  %3779 = vmatprep.subr.bf16.mxu0 %v4137_v58  ;;  %v44_v57 = vld [vmem:[%s5176_s0 + $0xe8] sm:$0xff] }
  0xb6   :  { %3807 = vmatprep.subr.bf16.mxu1 %v4138_v59  ;;  %v3195_v58 = vcombine.low %v28_v54, %v44_v57  ;;  %v3196_v59 = vcombine.high %v28_v54, %v44_v57  ;;  %v46_v57 = vld [vmem:[%s5176_s0 + $0xf8] sm:$0xff] }
  0xb8   :  { %3780 = vmatpush3.bf16.msra.mxu0 %v4139_v60  ;;  %v4185_v60 = vld [vmem:[%s5175_s1 + $0x740] sm:$0xff]  }
  0xb9   :  { %3808 = vmatpush3.bf16.msra.mxu1 %v4140_v61  ;;  %3781 = vmatprep.subr.bf16.mxu0 %v4141_v62  ;;  %v4186_v61 = vld [vmem:[%s5175_s1 + $0x7c0] sm:$0xff]  }
  0xba   :  { %3809 = vmatprep.subr.bf16.mxu1 %v4142_v63  ;;  %v4187_v62 = vld [vmem:[%s5175_s1 + $0x700] sm:$0xff]  }
  0xbb   :  { %v4188_v63 = vld [vmem:[%s5175_s1 + $0x780] sm:$0xff]  }
  0xbc   :  { %3782 = vmatpush3.bf16.msra.mxu0 %v4143_v0  ;;  %v4189_v0 = vld [vmem:[%s5175_s1 + $0x748] sm:$0xff]  }
  0xbd   :  { %3810 = vmatpush3.bf16.msra.mxu1 %v4144_v1  ;;  %3783 = vmatprep.subr.bf16.mxu0 %v4145_v2  ;;  %v4190_v1 = vld [vmem:[%s5175_s1 + $0x7c8] sm:$0xff]  }
  0xbe   :  { %3811 = vmatprep.subr.bf16.mxu1 %v4146_v3  ;;  %v4191_v2 = vld [vmem:[%s5175_s1 + $0x708] sm:$0xff]  }
  0xbf   :  { %v4192_v3 = vld [vmem:[%s5175_s1 + $0x788] sm:$0xff]  }
  0xc0   :  { %3784 = vmatpush3.bf16.msra.mxu0 %v4147_v4  ;;  %v59_v4 = vld [vmem:[%s5176_s0 + $0x160] sm:$0x11] }
  0xc1   :  { %3812 = vmatpush3.bf16.msra.mxu1 %v4148_v5  ;;  %3825 = vmatprep.subr.bf16.mxu0 %v4149_v14  ;;  %v3226_v5 = vcombine.high %v59_v4, %v59_v4  ;;  %v3225_v6 = vcombine.low %v59_v4, %v59_v4 }
  0xc2   :  { %3853 = vmatprep.subr.bf16.mxu1 %v4150_v15  ;;  %v4199_v15 = vld [vmem:[%s5175_s1 + $0x790] sm:$0xff]  }
  0xc3   :  { %2903 = vmatmul.mubr.bf16.vlgmr.msra.gmra.mrb[40].mxu0 %v3189_v9  ;;  %v60_v9 = vld [vmem:[%s5176_s0 + $0x168] sm:$0x11] }
  0xc4   :  { %2951 = vmatmul.mubr.bf16.vlgmr.msra.gmra.mrb[40].mxu1 %v3191_v12  ;;  %3826 = vmatpush3.bf16.msra.mxu0 %v4151_v16  ;;  %v3228_v11 = vcombine.high %v60_v9, %v60_v9  ;;  %v4198_v12 = vld [vmem:[%s5175_s1 + $0x710] sm:$0xff]   ;;  %v3227_v13 = vcombine.low %v60_v9, %v60_v9 }
  0xc5   :  { %3854 = vmatpush3.bf16.msra.mxu1 %v4152_v17  ;;  %3827 = vmatprep.subr.bf16.mxu0 %v4153_v18  ;;  %v4201_v17 = vld [vmem:[%s5175_s1 + $0x758] sm:$0xff]  }
  0xc6   :  { %3855 = vmatprep.subr.bf16.mxu1 %v4154_v19  ;;  %2910 = vmatprep.mubr.bf16.mxu0 %v3222_v23  ;;  %v4203_v23 = vld [vmem:[%s5175_s1 + $0x718] sm:$0xff]  }
  0xc7   :  { %2958 = vmatprep.mubr.bf16.mxu1 %v3224_v28 }
  0xc8   :  { %3828 = vmatpush3.bf16.msra.mxu0 %v4155_v20  ;;  %v4202_v20 = vld [vmem:[%s5175_s1 + $0x7d8] sm:$0xff]  }
  0xc9   :  { %3856 = vmatpush3.bf16.msra.mxu1 %v4156_v21  ;;  %3829 = vmatprep.subr.bf16.mxu0 %v4159_v25  ;;  %v4204_v25 = vld [vmem:[%s5175_s1 + $0x798] sm:$0xff]  }
  0xca   :  { %3857 = vmatprep.subr.bf16.mxu1 %v4160_v26 }
  0xcb   :  { %2911 = vmatmul.mubr.bf16.gmra.mrb[44].mxu0 %v3221_v24 }
  0xcc   :  { %3830 = vmatpush3.bf16.msra.mxu0 %v4162_v29  ;;  %2959 = vmatmul.mubr.bf16.gmra.mrb[44].mxu1 %v3223_v30  ;;  %v4206_v30 = vld [vmem:[%s5175_s1 + $0x7e0] sm:$0xff]  }
  0xcd   :  { %3858 = vmatpush3.bf16.msra.mxu1 %v4163_v31  ;;  %3831 = vmatprep.subr.bf16.mxu0 %v4165_v32  ;;  %v4207_v32 = vld [vmem:[%s5175_s1 + $0x720] sm:$0xff]  }
  0xce   :  { %3859 = vmatprep.subr.bf16.mxu1 %v4166_v33  ;;  %2998 = vmatprep.mubr.bf16.mxu0 %v3194_v56  ;;  %v4208_v33 = vld [vmem:[%s5175_s1 + $0x7a0] sm:$0xff]   ;;  %v30_v56 = vld [vmem:[%s5176_s0 + $0x78] sm:$0xff] }
  0xcf   :  { %3046 = vmatprep.mubr.bf16.mxu1 %v3196_v59 }
  0xd0   :  { %3832 = vmatpush3.bf16.msra.mxu0 %v4167_v34  ;;  %v3168_v34 = vld [vmem:[%s5177_s2] ss:$0 sm:$0xff] }
  0xd1   :  { %3860 = vmatpush3.bf16.msra.mxu1 %v4168_v35  ;;  %3833 = vmatprep.subr.bf16.mxu0 %v4169_v36  ;;  %v4209_v36 = vld [vmem:[%s5175_s1 + $0x768] sm:$0xff]  }
  0xd2   :  { %3861 = vmatprep.subr.bf16.mxu1 %v4170_v37 }
  0xd4   :  { %3834 = vmatpush3.bf16.msra.mxu0 %v4171_v38  ;;  %v4210_v38 = vld [vmem:[%s5175_s1 + $0x7e8] sm:$0xff]  }
  0xd5   :  { %3862 = vmatpush3.bf16.msra.mxu1 %v4172_v39  ;;  %3835 = vmatprep.subr.bf16.mxu0 %v4173_v40  ;;  %v4211_v40 = vld [vmem:[%s5175_s1 + $0x728] sm:$0xff]  }
  0xd6   :  { %3863 = vmatprep.subr.bf16.mxu1 %v4174_v41 }
  0xd8   :  { %3836 = vmatpush3.bf16.msra.mxu0 %v4175_v42  ;;  %v4212_v42 = vld [vmem:[%s5175_s1 + $0x7a8] sm:$0xff]  }
  0xd9   :  { %3864 = vmatpush3.bf16.msra.mxu1 %v4176_v43  ;;  %3837 = vmatprep.subr.bf16.mxu0 %v4177_v44  ;;  %v4213_v43 = vld [vmem:[%s5175_s1 + $0x770] sm:$0xff]  }
  0xda   :  { %3865 = vmatprep.subr.bf16.mxu1 %v4178_v45  ;;  %v4214_v44 = vld [vmem:[%s5175_s1 + $0x7f0] sm:$0xff]  }
  0xdb   :  { %v4215_v45 = vld [vmem:[%s5175_s1 + $0x730] sm:$0xff]  }
  0xdc   :  { %3838 = vmatpush3.bf16.msra.mxu0 %v4179_v46  ;;  %v4216_v46 = vld [vmem:[%s5175_s1 + $0x7b0] sm:$0xff]  }
  0xdd   :  { %3866 = vmatpush3.bf16.msra.mxu1 %v4180_v47  ;;  %3839 = vmatprep.subr.bf16.mxu0 %v4181_v48  ;;  %v4217_v47 = vld [vmem:[%s5175_s1 + $0x778] sm:$0xff]  }
  0xde   :  { %3867 = vmatprep.subr.bf16.mxu1 %v4182_v49  ;;  %v4218_v48 = vld [vmem:[%s5175_s1 + $0x7f8] sm:$0xff]  }
  0xdf   :  { %v4219_v49 = vld [vmem:[%s5175_s1 + $0x738] sm:$0xff]  }
  0xe0   :  { %3840 = vmatpush3.bf16.msra.mxu0 %v4183_v50  ;;  %v4220_v50 = vld [vmem:[%s5175_s1 + $0x7b8] sm:$0xff]  }
  0xe1   :  { %3868 = vmatpush3.bf16.msra.mxu1 %v4184_v51  ;;  %3881 = vmatprep.subr.bf16.mxu0 %v4185_v60  ;;  %v29_v51 = vld [vmem:[%s5176_s0 + $0x70] sm:$0xff]  ;;  %v3199_v60 = vcombine.low %v30_v56, %v46_v57 }
  0xe2   :  { %3909 = vmatprep.subr.bf16.mxu1 %v4186_v61  ;;  %v3197_v54 = vcombine.low %v29_v51, %v45_v52  ;;  %v3200_v61 = vcombine.high %v30_v56, %v46_v57 }
  0xe3   :  { %2999 = vmatmul.mubr.bf16.vlgmr.msra.gmra.mrb[48].mxu0 %v3193_v55  ;;  %v3198_v55 = vcombine.high %v29_v51, %v45_v52 }
  0xe4   :  { %3047 = vmatmul.mubr.bf16.vlgmr.msra.gmra.mrb[48].mxu1 %v3195_v58  ;;  %3882 = vmatpush3.bf16.msra.mxu0 %v4187_v62  ;;  %v61_v58 = vld [vmem:[%s5176_s0 + $0x170] sm:$0x11] }
  0xe5   :  { %3910 = vmatpush3.bf16.msra.mxu1 %v4188_v63  ;;  %3883 = vmatprep.subr.bf16.mxu0 %v4189_v0  ;;  %v3230_v62 = vcombine.high %v61_v58, %v61_v58  ;;  %v62_v63 = vld [vmem:[%s5176_s0 + $0x178] sm:$0x11] }
  0xe6   :  { %3911 = vmatprep.subr.bf16.mxu1 %v4190_v1  ;;  %3006 = vmatprep.mubr.bf16.mxu0 %v3226_v5 }
  0xe7   :  { %3054 = vmatprep.mubr.bf16.mxu1 %v3228_v11  ;;  %v3229_v11 = vcombine.low %v61_v58, %v61_v58 }
  0xe8   :  { %3884 = vmatpush3.bf16.msra.mxu0 %v4191_v2  ;;  %v3232_v2 = vcombine.high %v62_v63, %v62_v63 }
  0xe9   :  { %3912 = vmatpush3.bf16.msra.mxu1 %v4192_v3  ;;  %3885 = vmatprep.subr.bf16.mxu0 %v4195_v7 }
  0xea   :  { %3913 = vmatprep.subr.bf16.mxu1 %v4196_v8 }
  0xeb   :  { %3007 = vmatmul.mubr.bf16.gmra.mrb[52].mxu0 %v3225_v6 }
  0xec   :  { %3886 = vmatpush3.bf16.msra.mxu0 %v4198_v12  ;;  %3055 = vmatmul.mubr.bf16.gmra.mrb[52].mxu1 %v3227_v13  ;;  %v3231_v12 = vcombine.low %v62_v63, %v62_v63 }
  0xed   :  { %3914 = vmatpush3.bf16.msra.mxu1 %v4199_v15  ;;  %3887 = vmatprep.subr.bf16.mxu0 %v4201_v17 }
  0xee   :  { %3915 = vmatprep.subr.bf16.mxu1 %v4202_v20  ;;  %3094 = vmatprep.mubr.bf16.mxu0 %v3198_v55 }
  0xef   :  { %3142 = vmatprep.mubr.bf16.mxu1 %v3200_v61 }
  0xf0   :  { %3888 = vmatpush3.bf16.msra.mxu0 %v4203_v23 }
  0xf1   :  { %3916 = vmatpush3.bf16.msra.mxu1 %v4204_v25  ;;  %3889 = vmatprep.subr.bf16.mxu0 %v4205_v27 }
  0xf2   :  { %3917 = vmatprep.subr.bf16.mxu1 %v4206_v30 }
  0xf4   :  { %3890 = vmatpush3.bf16.msra.mxu0 %v4207_v32 }
  0xf5   :  { %3918 = vmatpush3.bf16.msra.mxu1 %v4208_v33  ;;  %3891 = vmatprep.subr.bf16.mxu0 %v4209_v36 }
  0xf6   :  { %v3505_v10 = vpop.f32.mrb[0].mxu0  ;;  %3919 = vmatprep.subr.bf16.mxu1 %v4210_v38 }
  0xf7   :  { %v3533_v14 = vpop.f32.mrb[0].mxu1  ;;  %v3506_v16 = vpop.f32.mrb[1].mxu0 }
  0xf8   :  { %v3507_v18 = vadd.f32 %v3506_v16, %v3505_v10  ;;  %v3534_v19 = vpop.f32.mrb[1].mxu1  ;;  %v3508_v22 = vpop.f32.mrb[2].mxu0  ;;  %3892 = vmatpush3.bf16.msra.mxu0 %v4211_v40 }
  0xf9   :  { %v3535_v21 = vadd.f32 %v3534_v19, %v3533_v14  ;;  %v3536_v24 = vpop.f32.mrb[2].mxu1  ;;  %v3509_v26 = vpop.f32.mrb[3].mxu0  ;;  %3920 = vmatpush3.bf16.msra.mxu1 %v4212_v42  ;;  %3893 = vmatprep.subr.bf16.mxu0 %v4213_v43 }
  0xfa   :  { %v3510_v28 = vadd.f32 %v3509_v26, %v3508_v22  ;;  %v3537_v29 = vpop.f32.mrb[3].mxu1  ;;  %v2425_v35 = vadd.f32 %v3507_v18, %v3168_v34  ;;  %3921 = vmatprep.subr.bf16.mxu1 %v4214_v44 }
  0xfb   :  { %v3538_v31 = vadd.f32 %v3537_v29, %v3536_v24 }
  0xfc   :  { %v2428_v37 = vadd.f32 %v3510_v28, %v3168_v34  ;;  %v5112_v39 = vadd.f32 %v3535_v21, %v2425_v35  ;;  %3894 = vmatpush3.bf16.msra.mxu0 %v4215_v45 }
  0xfd   :  { %3922 = vmatpush3.bf16.msra.mxu1 %v4216_v46  ;;  %3895 = vmatprep.subr.bf16.mxu0 %v4217_v47 }
  0xfe   :  { %v5117_v41 = vadd.f32 %v3538_v31, %v2428_v37  ;;  %3923 = vmatprep.subr.bf16.mxu1 %v4218_v48  ;;  %v3511_v53 = vpop.f32.mrb[4].mxu0 }
  0xff   :  { %v3512_v59 = vpop.f32.mrb[5].mxu0  ;;  %v3539_v1 = vpop.f32.mrb[4].mxu1 }
 0x100   :  { %3896 = vmatpush3.bf16.msra.mxu0 %v4219_v49  ;;  %v3514_v0 = vpop.f32.mrb[6].mxu0  ;;  %v3513_v3 = vadd.f32 %v3512_v59, %v3511_v53  ;;  %v3540_v5 = vpop.f32.mrb[5].mxu1 }
 0x101   :  { %3924 = vmatpush3.bf16.msra.mxu1 %v4220_v50  ;;  %v3515_v4 = vpop.f32.mrb[7].mxu0  ;;  %v3541_v6 = vadd.f32 %v3540_v5, %v3539_v1  ;;  %v3542_v7 = vpop.f32.mrb[6].mxu1 }
 0x102   :  { %v2433_v8 = vadd.f32 %v3513_v3, %v3168_v34  ;;  %v3543_v9 = vpop.f32.mrb[7].mxu1 }
 0x103   :  { %3095 = vmatmul.mubr.bf16.vlgmr.msra.gmra.mrb[56].mxu0 %v3197_v54 }
 0x104   :  { %3143 = vmatmul.mubr.bf16.vlgmr.msra.gmra.mrb[56].mxu1 %v3199_v60  ;;  %3102 = vmatprep.mubr.bf16.mxu0 %v3230_v62  ;;  %v2481_v10 = vadd.f32 %v3541_v6, %v2433_v8 }
 0x105   :  { %3150 = vmatprep.mubr.bf16.mxu1 %v3232_v2 }
 0x10b   :  { %3103 = vmatmul.mubr.bf16.gmra.mrb[60].mxu0 %v3229_v11 }
 0x10c   :  { %3151 = vmatmul.mubr.bf16.gmra.mrb[60].mxu1 %v3231_v12 }
 0x116   :  { %v3561_v13 = vpop.f32.mrb[8].mxu0 }
 0x117   :  { %v3589_v14 = vpop.f32.mrb[8].mxu1  ;;  %v3562_v15 = vpop.f32.mrb[9].mxu0 }
 0x118   :  { %v3563_v16 = vadd.f32 %v3562_v15, %v3561_v13  ;;  %v3590_v17 = vpop.f32.mrb[9].mxu1  ;;  %v3564_v18 = vpop.f32.mrb[10].mxu0 }
 0x119   :  { %v3591_v19 = vadd.f32 %v3590_v17, %v3589_v14  ;;  %v3592_v20 = vpop.f32.mrb[10].mxu1  ;;  %v3565_v21 = vpop.f32.mrb[11].mxu0 }
 0x11a   :  { %v2521_v22 = vadd.f32 %v3563_v16, %v5112_v39  ;;  %v3566_v23 = vadd.f32 %v3565_v21, %v3564_v18  ;;  %v3593_v24 = vpop.f32.mrb[11].mxu1 }
 0x11b   :  { %v3594_v25 = vadd.f32 %v3593_v24, %v3592_v20 }
 0x11c   :  { %v2569_v26 = vadd.f32 %v3591_v19, %v2521_v22  ;;  %v2524_v27 = vadd.f32 %v3566_v23, %v5117_v41 }
 0x11e   :  { %v2572_v28 = vadd.f32 %v3594_v25, %v2524_v27  ;;  %v3567_v29 = vpop.f32.mrb[12].mxu0 }
 0x11f   :  { %v3568_v30 = vpop.f32.mrb[13].mxu0  ;;  %v3595_v33 = vpop.f32.mrb[12].mxu1 }
 0x120   :  { %v3569_v31 = vadd.f32 %v3568_v30, %v3567_v29  ;;  %v3570_v32 = vpop.f32.mrb[14].mxu0  ;;  %v3596_v36 = vpop.f32.mrb[13].mxu1 }
 0x121   :  { %v3571_v34 = vpop.f32.mrb[15].mxu0  ;;  %v3597_v37 = vadd.f32 %v3596_v36, %v3595_v33  ;;  %v3598_v38 = vpop.f32.mrb[14].mxu1 }
 0x122   :  { %v2529_v35 = vadd.f32 %v3569_v31, %v2481_v10  ;;  %v3599_v40 = vpop.f32.mrb[15].mxu1 }
 0x124   :  { %v2577_v42 = vadd.f32 %v3597_v37, %v2529_v35 }
 0x136   :  { %v3617_v39 = vpop.f32.mrb[16].mxu0 }
 0x137   :  { %v3645_v43 = vpop.f32.mrb[16].mxu1  ;;  %v3618_v44 = vpop.f32.mrb[17].mxu0 }
 0x138   :  { %v3619_v45 = vadd.f32 %v3618_v44, %v3617_v39  ;;  %v3646_v46 = vpop.f32.mrb[17].mxu1  ;;  %v3620_v47 = vpop.f32.mrb[18].mxu0 }
 0x139   :  { %v3647_v41 = vadd.f32 %v3646_v46, %v3645_v43  ;;  %v3648_v48 = vpop.f32.mrb[18].mxu1  ;;  %v3621_v49 = vpop.f32.mrb[19].mxu0 }
 0x13a   :  { %v2617_v50 = vadd.f32 %v3619_v45, %v2569_v26  ;;  %v3622_v51 = vadd.f32 %v3621_v49, %v3620_v47  ;;  %v3649_v52 = vpop.f32.mrb[19].mxu1 }
 0x13b   :  { %v3650_v53 = vadd.f32 %v3649_v52, %v3648_v48 }
 0x13c   :  { %v2665_v54 = vadd.f32 %v3647_v41, %v2617_v50  ;;  %v2620_v55 = vadd.f32 %v3622_v51, %v2572_v28 }
 0x13e   :  { %v2668_v56 = vadd.f32 %v3650_v53, %v2620_v55  ;;  %v3623_v57 = vpop.f32.mrb[20].mxu0 }
 0x13f   :  { %v3624_v58 = vpop.f32.mrb[21].mxu0  ;;  %v3651_v61 = vpop.f32.mrb[20].mxu1 }
 0x140   :  { %v3625_v59 = vadd.f32 %v3624_v58, %v3623_v57  ;;  %v3626_v60 = vpop.f32.mrb[22].mxu0  ;;  %v3652_v0 = vpop.f32.mrb[21].mxu1 }
 0x141   :  { %v3627_v62 = vpop.f32.mrb[23].mxu0  ;;  %v3653_v1 = vadd.f32 %v3652_v0, %v3651_v61  ;;  %v3654_v2 = vpop.f32.mrb[22].mxu1 }
 0x142   :  { %v2625_v63 = vadd.f32 %v3625_v59, %v2577_v42  ;;  %v3655_v3 = vpop.f32.mrb[23].mxu1 }
 0x144   :  { %v2673_v4 = vadd.f32 %v3653_v1, %v2625_v63 }
 0x156   :  { %v3673_v5 = vpop.f32.mrb[24].mxu0 }
 0x157   :  { %v3701_v6 = vpop.f32.mrb[24].mxu1  ;;  %v3674_v7 = vpop.f32.mrb[25].mxu0 }
 0x158   :  { %v3675_v8 = vadd.f32 %v3674_v7, %v3673_v5  ;;  %v3702_v9 = vpop.f32.mrb[25].mxu1  ;;  %v3676_v10 = vpop.f32.mrb[26].mxu0 }
 0x159   :  { %v3703_v11 = vadd.f32 %v3702_v9, %v3701_v6  ;;  %v3704_v12 = vpop.f32.mrb[26].mxu1  ;;  %v3677_v13 = vpop.f32.mrb[27].mxu0 }
 0x15a   :  { %v2713_v14 = vadd.f32 %v3675_v8, %v2665_v54  ;;  %v3678_v15 = vadd.f32 %v3677_v13, %v3676_v10  ;;  %v3705_v16 = vpop.f32.mrb[27].mxu1 }
 0x15b   :  { %v3706_v17 = vadd.f32 %v3705_v16, %v3704_v12 }
 0x15c   :  { %v2761_v18 = vadd.f32 %v3703_v11, %v2713_v14  ;;  %v2716_v19 = vadd.f32 %v3678_v15, %v2668_v56 }
 0x15e   :  { %v2764_v20 = vadd.f32 %v3706_v17, %v2716_v19  ;;  %v3679_v21 = vpop.f32.mrb[28].mxu0 }
 0x15f   :  { %v3680_v22 = vpop.f32.mrb[29].mxu0  ;;  %v3707_v25 = vpop.f32.mrb[28].mxu1 }
 0x160   :  { %v3681_v23 = vadd.f32 %v3680_v22, %v3679_v21  ;;  %v3682_v24 = vpop.f32.mrb[30].mxu0  ;;  %v3708_v28 = vpop.f32.mrb[29].mxu1 }
 0x161   :  { %v3683_v26 = vpop.f32.mrb[31].mxu0  ;;  %v3709_v29 = vadd.f32 %v3708_v28, %v3707_v25  ;;  %v3710_v30 = vpop.f32.mrb[30].mxu1 }
 0x162   :  { %v2721_v27 = vadd.f32 %v3681_v23, %v2673_v4  ;;  %v3711_v31 = vpop.f32.mrb[31].mxu1 }
 0x164   :  { %v2769_v32 = vadd.f32 %v3709_v29, %v2721_v27 }
 0x176   :  { %v3729_v33 = vpop.f32.mrb[32].mxu0 }
 0x177   :  { %v3757_v34 = vpop.f32.mrb[32].mxu1  ;;  %v3730_v35 = vpop.f32.mrb[33].mxu0 }
 0x178   :  { %v3731_v36 = vadd.f32 %v3730_v35, %v3729_v33  ;;  %v3758_v37 = vpop.f32.mrb[33].mxu1  ;;  %v3732_v38 = vpop.f32.mrb[34].mxu0 }
 0x179   :  { %v3759_v40 = vadd.f32 %v3758_v37, %v3757_v34  ;;  %v3760_v42 = vpop.f32.mrb[34].mxu1  ;;  %v3733_v39 = vpop.f32.mrb[35].mxu0 }
 0x17a   :  { %v2809_v43 = vadd.f32 %v3731_v36, %v2761_v18  ;;  %v3734_v44 = vadd.f32 %v3733_v39, %v3732_v38  ;;  %v3761_v45 = vpop.f32.mrb[35].mxu1 }
 0x17b   :  { %v3762_v46 = vadd.f32 %v3761_v45, %v3760_v42 }
 0x17c   :  { %v2857_v47 = vadd.f32 %v3759_v40, %v2809_v43  ;;  %v2812_v41 = vadd.f32 %v3734_v44, %v2764_v20 }
 0x17e   :  { %v2860_v48 = vadd.f32 %v3762_v46, %v2812_v41  ;;  %v3735_v49 = vpop.f32.mrb[36].mxu0 }
 0x17f   :  { %v3736_v50 = vpop.f32.mrb[37].mxu0  ;;  %v3763_v53 = vpop.f32.mrb[36].mxu1 }
 0x180   :  { %v3737_v51 = vadd.f32 %v3736_v50, %v3735_v49  ;;  %v3738_v52 = vpop.f32.mrb[38].mxu0  ;;  %v3764_v56 = vpop.f32.mrb[37].mxu1 }
 0x181   :  { %v3739_v54 = vpop.f32.mrb[39].mxu0  ;;  %v3765_v57 = vadd.f32 %v3764_v56, %v3763_v53  ;;  %v3766_v58 = vpop.f32.mrb[38].mxu1 }
 0x182   :  { %v2817_v55 = vadd.f32 %v3737_v51, %v2769_v32  ;;  %v3767_v59 = vpop.f32.mrb[39].mxu1 }
 0x184   :  { %v2865_v60 = vadd.f32 %v3765_v57, %v2817_v55 }
 0x196   :  { %v3785_v61 = vpop.f32.mrb[40].mxu0 }
 0x197   :  { %v3813_v62 = vpop.f32.mrb[40].mxu1  ;;  %v3786_v63 = vpop.f32.mrb[41].mxu0 }
 0x198   :  { %v3787_v0 = vadd.f32 %v3786_v63, %v3785_v61  ;;  %v3814_v1 = vpop.f32.mrb[41].mxu1  ;;  %v3788_v2 = vpop.f32.mrb[42].mxu0 }
 0x199   :  { %v3815_v3 = vadd.f32 %v3814_v1, %v3813_v62  ;;  %v3816_v4 = vpop.f32.mrb[42].mxu1  ;;  %v3789_v5 = vpop.f32.mrb[43].mxu0 }
 0x19a   :  { %v2905_v6 = vadd.f32 %v3787_v0, %v2857_v47  ;;  %v3790_v7 = vadd.f32 %v3789_v5, %v3788_v2  ;;  %v3817_v8 = vpop.f32.mrb[43].mxu1 }
 0x19b   :  { %v3818_v9 = vadd.f32 %v3817_v8, %v3816_v4 }
 0x19c   :  { %v2953_v10 = vadd.f32 %v3815_v3, %v2905_v6  ;;  %v2908_v11 = vadd.f32 %v3790_v7, %v2860_v48 }
 0x19e   :  { %v2956_v12 = vadd.f32 %v3818_v9, %v2908_v11  ;;  %v3791_v13 = vpop.f32.mrb[44].mxu0 }
 0x19f   :  { %v3792_v14 = vpop.f32.mrb[45].mxu0  ;;  %v3819_v17 = vpop.f32.mrb[44].mxu1 }
 0x1a0   :  { %v3793_v15 = vadd.f32 %v3792_v14, %v3791_v13  ;;  %v3794_v16 = vpop.f32.mrb[46].mxu0  ;;  %v3820_v20 = vpop.f32.mrb[45].mxu1 }
 0x1a1   :  { %v3795_v18 = vpop.f32.mrb[47].mxu0  ;;  %v3821_v21 = vadd.f32 %v3820_v20, %v3819_v17  ;;  %v3822_v22 = vpop.f32.mrb[46].mxu1 }
 0x1a2   :  { %v2913_v19 = vadd.f32 %v3793_v15, %v2865_v60  ;;  %v3823_v23 = vpop.f32.mrb[47].mxu1 }
 0x1a4   :  { %v2961_v24 = vadd.f32 %v3821_v21, %v2913_v19 }
 0x1b6   :  { %v3841_v25 = vpop.f32.mrb[48].mxu0 }
 0x1b7   :  { %v3869_v26 = vpop.f32.mrb[48].mxu1  ;;  %v3842_v27 = vpop.f32.mrb[49].mxu0 }
 0x1b8   :  { %v3843_v28 = vadd.f32 %v3842_v27, %v3841_v25  ;;  %v3870_v29 = vpop.f32.mrb[49].mxu1  ;;  %v3844_v30 = vpop.f32.mrb[50].mxu0 }
 0x1b9   :  { %v3871_v31 = vadd.f32 %v3870_v29, %v3869_v26  ;;  %v3872_v32 = vpop.f32.mrb[50].mxu1  ;;  %v3845_v33 = vpop.f32.mrb[51].mxu0 }
 0x1ba   :  { %v3001_v34 = vadd.f32 %v3843_v28, %v2953_v10  ;;  %v3846_v35 = vadd.f32 %v3845_v33, %v3844_v30  ;;  %v3873_v36 = vpop.f32.mrb[51].mxu1 }
 0x1bb   :  { %v3874_v37 = vadd.f32 %v3873_v36, %v3872_v32 }
 0x1bc   :  { %v3049_v38 = vadd.f32 %v3871_v31, %v3001_v34  ;;  %v3004_v40 = vadd.f32 %v3846_v35, %v2956_v12 }
 0x1be   :  { %v3052_v42 = vadd.f32 %v3874_v37, %v3004_v40  ;;  %v3847_v39 = vpop.f32.mrb[52].mxu0 }
 0x1bf   :  { %v3848_v43 = vpop.f32.mrb[53].mxu0  ;;  %v3875_v46 = vpop.f32.mrb[52].mxu1 }
 0x1c0   :  { %v3849_v44 = vadd.f32 %v3848_v43, %v3847_v39  ;;  %v3850_v45 = vpop.f32.mrb[54].mxu0  ;;  %v3876_v48 = vpop.f32.mrb[53].mxu1 }
 0x1c1   :  { %v3851_v47 = vpop.f32.mrb[55].mxu0  ;;  %v3877_v49 = vadd.f32 %v3876_v48, %v3875_v46  ;;  %v3878_v50 = vpop.f32.mrb[54].mxu1 }
 0x1c2   :  { %v3009_v41 = vadd.f32 %v3849_v44, %v2961_v24  ;;  %v3879_v51 = vpop.f32.mrb[55].mxu1 }
 0x1c4   :  { %v3057_v52 = vadd.f32 %v3877_v49, %v3009_v41 }
 0x1d6   :  { %v3897_v53 = vpop.f32.mrb[56].mxu0 }
 0x1d7   :  { %v3925_v54 = vpop.f32.mrb[56].mxu1  ;;  %v3898_v55 = vpop.f32.mrb[57].mxu0 }
 0x1d8   :  { %v3899_v56 = vadd.f32 %v3898_v55, %v3897_v53  ;;  %v3926_v57 = vpop.f32.mrb[57].mxu1  ;;  %v3900_v58 = vpop.f32.mrb[58].mxu0 }
 0x1d9   :  { %v3927_v59 = vadd.f32 %v3926_v57, %v3925_v54  ;;  %v3928_v60 = vpop.f32.mrb[58].mxu1  ;;  %v3901_v61 = vpop.f32.mrb[59].mxu0 }
 0x1da   :  { %v3097_v62 = vadd.f32 %v3899_v56, %v3049_v38  ;;  %v3902_v63 = vadd.f32 %v3901_v61, %v3900_v58  ;;  %v3929_v0 = vpop.f32.mrb[59].mxu1 }
 0x1db   :  { %v3930_v1 = vadd.f32 %v3929_v0, %v3928_v60 }
 0x1dc   :  { %v3145_v2 = vadd.f32 %v3927_v59, %v3097_v62  ;;  %v3100_v3 = vadd.f32 %v3902_v63, %v3052_v42 }
 0x1de   :  { %v3158_v4 = vmax.f32 %v3145_v2, 0.0  ;;  %v3148_v5 = vadd.f32 %v3930_v1, %v3100_v3  ;;  %v3903_v6 = vpop.f32.mrb[60].mxu0 }
 0x1df   :  { %v3931_v7 = vpop.f32.mrb[60].mxu1  ;;  %v3904_v8 = vpop.f32.mrb[61].mxu0 }
 0x1e0   :  { %3161 = vst [vmem:[%s5178_s3] sm:$0xff] %v3158_v4  ;;  %v3159_v9 = vmax.f32 %v3148_v5, 0.0  ;;  %v3905_v10 = vadd.f32 %v3904_v8, %v3903_v6  ;;  %v3932_v11 = vpop.f32.mrb[61].mxu1  ;;  %v3906_v12 = vpop.f32.mrb[62].mxu0 }
 0x1e1   :  { %v3933_v13 = vadd.f32 %v3932_v11, %v3931_v7  ;;  %v3934_v14 = vpop.f32.mrb[62].mxu1  ;;  %v3907_v15 = vpop.f32.mrb[63].mxu0 }
 0x1e2   :  { %3162 = vst [vmem:[%s5178_s3 + $0x8] sm:$0xff] %v3159_v9  ;;  %v3105_v16 = vadd.f32 %v3905_v10, %v3057_v52  ;;  %v3935_v17 = vpop.f32.mrb[63].mxu1 }
 0x1e4   :  { %v3153_v18 = vadd.f32 %v3933_v13, %v3105_v16 }
 0x1e6   :  { %v3160_v19 = vmax.f32 %v3153_v18, 0.0 }
 0x1e8   :  { %3163 = vst [vmem:[%s5178_s3 + $0x10] sm:$0x3] %v3160_v19 }

// kernel: fcn_forward.6
= control target key start
LH: loop header
LB: loop body
LE: loop exit
PB: predicated region body
PF: predicated region fallthrough
CT: control target
= control target key end

     0   :  { %s5497_s1 = inlined_call_operand.vmem [shape: bf16[3200,256], index: 1, kind: input, shape index: {}]   ;;  %s5498_s0 = inlined_call_operand.vmem [shape: bf16[8,3200], index: 0, kind: input, shape index: {}]   ;;  %s5499_s2 = inlined_call_operand.vmem [shape: f32[1,256], index: 2, kind: input, shape index: {}]   ;;  %s5500_s3 = inlined_call_operand.vmem [shape: f32[8,256], index: 3, kind: output, shape index: {}]  }
   0x1   :  { %v3543_v0 = vld [vmem:[%s5497_s1 + $0x4] ss:$8 sps:$4 sm:$0xff]   ;;  %v3547_v2 = vld [vmem:[%s5497_s1] ss:$8 sps:$4 sm:$0xff]   ;;  %v3549_v4 = vld [vmem:[%s5497_s1 + $0x14] ss:$8 sps:$4 sm:$0xff]  }
   0x2   :  { %v3545_v1 = vld [vmem:[%s5497_s1 + $0x604] ss:$8 sps:$4 sm:$0xff]   ;;  %2528 = vmatprep.subr.bf16.mxu1 %v3543_v0  ;;  %v3548_v3 = vld [vmem:[%s5497_s1 + $0x600] ss:$8 sps:$4 sm:$0xff]   ;;  %v3551_v5 = vld [vmem:[%s5497_s1 + $0x614] ss:$8 sps:$4 sm:$0xff]  }
   0x3   :  { %2774 = vmatprep.subr.bf16.mxu0 %v3545_v1  ;;  %2529 = vmatpush1.bf16.msra.mxu1 %v3547_v2  ;;  %v3553_v6 = vld [vmem:[%s5497_s1 + $0x10] ss:$8 sps:$4 sm:$0xff]   ;;  %v3555_v8 = vld [vmem:[%s5497_s1 + $0x24] ss:$8 sps:$4 sm:$0xff]   ;;  %v3559_v10 = vld [vmem:[%s5497_s1 + $0x20] ss:$8 sps:$4 sm:$0xff]  }
   0x4   :  { %2775 = vmatpush1.bf16.msra.mxu0 %v3548_v3  ;;  %2530 = vmatprep.subr.bf16.mxu1 %v3549_v4  ;;  %v3554_v7 = vld [vmem:[%s5497_s1 + $0x610] ss:$8 sps:$4 sm:$0xff]   ;;  %v3557_v9 = vld [vmem:[%s5497_s1 + $0x624] ss:$8 sps:$4 sm:$0xff]   ;;  %v3560_v11 = vld [vmem:[%s5497_s1 + $0x620] ss:$8 sps:$4 sm:$0xff]  }
   0x5   :  { %2776 = vmatprep.subr.bf16.mxu0 %v3551_v5  ;;  %v3561_v12 = vld [vmem:[%s5497_s1 + $0x34] ss:$8 sps:$4 sm:$0xff]   ;;  %v3565_v14 = vld [vmem:[%s5497_s1 + $0x30] ss:$8 sps:$4 sm:$0xff]   ;;  %v3567_v16 = vld [vmem:[%s5497_s1 + $0x44] ss:$8 sps:$4 sm:$0xff]  }
   0x6   :  { %v3563_v13 = vld [vmem:[%s5497_s1 + $0x634] ss:$8 sps:$4 sm:$0xff]   ;;  %v3566_v15 = vld [vmem:[%s5497_s1 + $0x630] ss:$8 sps:$4 sm:$0xff]   ;;  %v3569_v17 = vld [vmem:[%s5497_s1 + $0x644] ss:$8 sps:$4 sm:$0xff]  }
   0x7   :  { %2531 = vmatpush1.bf16.msra.mxu1 %v3553_v6  ;;  %v3571_v18 = vld [vmem:[%s5497_s1 + $0x40] ss:$8 sps:$4 sm:$0xff]   ;;  %v3573_v20 = vld [vmem:[%s5497_s1 + $0x54] ss:$8 sps:$4 sm:$0xff]   ;;  %v3577_v22 = vld [vmem:[%s5497_s1 + $0x50] ss:$8 sps:$4 sm:$0xff]  }
   0x8   :  { %2777 = vmatpush1.bf16.msra.mxu0 %v3554_v7  ;;  %2532 = vmatprep.subr.bf16.mxu1 %v3555_v8  ;;  %v3572_v19 = vld [vmem:[%s5497_s1 + $0x640] ss:$8 sps:$4 sm:$0xff]   ;;  %v3575_v21 = vld [vmem:[%s5497_s1 + $0x654] ss:$8 sps:$4 sm:$0xff]   ;;  %v3578_v23 = vld [vmem:[%s5497_s1 + $0x650] ss:$8 sps:$4 sm:$0xff]  }
   0x9   :  { %2778 = vmatprep.subr.bf16.mxu0 %v3557_v9  ;;  %v3579_v24 = vld [vmem:[%s5497_s1 + $0x64] ss:$8 sps:$4 sm:$0xff]   ;;  %v3583_v26 = vld [vmem:[%s5497_s1 + $0x60] ss:$8 sps:$4 sm:$0xff]   ;;  %v3585_v28 = vld [vmem:[%s5497_s1 + $0x74] ss:$8 sps:$4 sm:$0xff]  }
   0xa   :  { %v3581_v25 = vld [vmem:[%s5497_s1 + $0x664] ss:$8 sps:$4 sm:$0xff]   ;;  %v3584_v27 = vld [vmem:[%s5497_s1 + $0x660] ss:$8 sps:$4 sm:$0xff]   ;;  %v3587_v29 = vld [vmem:[%s5497_s1 + $0x674] ss:$8 sps:$4 sm:$0xff]  }
   0xb   :  { %2533 = vmatpush1.bf16.msra.mxu1 %v3559_v10  ;;  %v3589_v30 = vld [vmem:[%s5497_s1 + $0x70] ss:$8 sps:$4 sm:$0xff]   ;;  %v3591_v32 = vld [vmem:[%s5497_s1 + $0x84] ss:$8 sps:$4 sm:$0xff]   ;;  %v3595_v34 = vld [vmem:[%s5497_s1 + $0x80] ss:$8 sps:$4 sm:$0xff]  }
   0xc   :  { %2779 = vmatpush1.bf16.msra.mxu0 %v3560_v11  ;;  %2534 = vmatprep.subr.bf16.mxu1 %v3561_v12  ;;  %v3590_v31 = vld [vmem:[%s5497_s1 + $0x670] ss:$8 sps:$4 sm:$0xff]   ;;  %v3593_v33 = vld [vmem:[%s5497_s1 + $0x684] ss:$8 sps:$4 sm:$0xff]   ;;  %v3596_v35 = vld [vmem:[%s5497_s1 + $0x680] ss:$8 sps:$4 sm:$0xff]  }
   0xd   :  { %2780 = vmatprep.subr.bf16.mxu0 %v3563_v13  ;;  %v3597_v36 = vld [vmem:[%s5497_s1 + $0x94] ss:$8 sps:$4 sm:$0xff]   ;;  %v3601_v38 = vld [vmem:[%s5497_s1 + $0x90] ss:$8 sps:$4 sm:$0xff]   ;;  %v3603_v40 = vld [vmem:[%s5497_s1 + $0xa4] ss:$8 sps:$4 sm:$0xff]  }
   0xe   :  { %v3599_v37 = vld [vmem:[%s5497_s1 + $0x694] ss:$8 sps:$4 sm:$0xff]   ;;  %v3602_v39 = vld [vmem:[%s5497_s1 + $0x690] ss:$8 sps:$4 sm:$0xff]   ;;  %v3605_v41 = vld [vmem:[%s5497_s1 + $0x6a4] ss:$8 sps:$4 sm:$0xff]  }
   0xf   :  { %2535 = vmatpush1.bf16.msra.mxu1 %v3565_v14  ;;  %v3607_v42 = vld [vmem:[%s5497_s1 + $0xa0] ss:$8 sps:$4 sm:$0xff]   ;;  %v3609_v44 = vld [vmem:[%s5497_s1 + $0xb4] ss:$8 sps:$4 sm:$0xff]   ;;  %v3613_v47 = vld [vmem:[%s5497_s1 + $0xb0] ss:$8 sps:$4 sm:$0xff]  }
  0x10   :  { %2781 = vmatpush1.bf16.msra.mxu0 %v3566_v15  ;;  %2536 = vmatprep.subr.bf16.mxu1 %v3567_v16  ;;  %v3608_v43 = vld [vmem:[%s5497_s1 + $0x6a0] ss:$8 sps:$4 sm:$0xff]   ;;  %v3611_v45 = vld [vmem:[%s5497_s1 + $0x6b4] ss:$8 sps:$4 sm:$0xff]   ;;  %v3614_v49 = vld [vmem:[%s5497_s1 + $0x6b0] ss:$8 sps:$4 sm:$0xff]  }
  0x11   :  { %2782 = vmatprep.subr.bf16.mxu0 %v3569_v17  ;;  %v15_v46 = vld [vmem:[%s5498_s0] sm:$0xff]  ;;  %v21_v50 = vld [vmem:[%s5498_s0 + $0x30] sm:$0xff] }
  0x12   :  { %v3070_v48 = vcombine.high %v15_v46, %v15_v46  ;;  %v3615_v51 = vld [vmem:[%s5497_s1 + $0xc4] ss:$8 sps:$4 sm:$0xff]   ;;  %v3082_v53 = vcombine.high %v21_v50, %v21_v50  ;;  %v3619_v54 = vld [vmem:[%s5497_s1 + $0xc0] ss:$8 sps:$4 sm:$0xff]   ;;  %v3621_v56 = vld [vmem:[%s5497_s1 + $0xd4] ss:$8 sps:$4 sm:$0xff]   ;;  %v3069_v6 = vcombine.low %v15_v46, %v15_v46  ;;  %v3081_v7 = vcombine.low %v21_v50, %v21_v50 }
  0x13   :  { %2537 = vmatpush1.bf16.msra.mxu1 %v3571_v18  ;;  %v3617_v52 = vld [vmem:[%s5497_s1 + $0x6c4] ss:$8 sps:$4 sm:$0xff]   ;;  %v3620_v55 = vld [vmem:[%s5497_s1 + $0x6c0] ss:$8 sps:$4 sm:$0xff]   ;;  %v3623_v57 = vld [vmem:[%s5497_s1 + $0x6d4] ss:$8 sps:$4 sm:$0xff]  }
  0x14   :  { %2783 = vmatpush1.bf16.msra.mxu0 %v3572_v19  ;;  %2538 = vmatprep.subr.bf16.mxu1 %v3573_v20  ;;  %v3625_v58 = vld [vmem:[%s5497_s1 + $0xd0] ss:$8 sps:$4 sm:$0xff]   ;;  %v3627_v60 = vld [vmem:[%s5497_s1 + $0xe4] ss:$8 sps:$4 sm:$0xff]   ;;  %v3631_v62 = vld [vmem:[%s5497_s1 + $0xe0] ss:$8 sps:$4 sm:$0xff]  }
  0x15   :  { %2784 = vmatprep.subr.bf16.mxu0 %v3575_v21  ;;  %2560 = vmatprep.mubr.bf16.mxu1 %v3070_v48  ;;  %v3626_v59 = vld [vmem:[%s5497_s1 + $0x6d0] ss:$8 sps:$4 sm:$0xff]   ;;  %v3629_v61 = vld [vmem:[%s5497_s1 + $0x6e4] ss:$8 sps:$4 sm:$0xff]   ;;  %v3632_v63 = vld [vmem:[%s5497_s1 + $0x6e0] ss:$8 sps:$4 sm:$0xff]  }
  0x16   :  { %2806 = vmatprep.mubr.bf16.mxu0 %v3082_v53  ;;  %v3633_v0 = vld [vmem:[%s5497_s1 + $0xf4] ss:$8 sps:$4 sm:$0xff]   ;;  %v3637_v2 = vld [vmem:[%s5497_s1 + $0xf0] ss:$8 sps:$4 sm:$0xff]   ;;  %v3643_v4 = vld [vmem:[%s5497_s1 + $0x104] ss:$8 sps:$4 sm:$0xff]  }
  0x17   :  { %2539 = vmatpush1.bf16.msra.mxu1 %v3577_v22  ;;  %v3635_v1 = vld [vmem:[%s5497_s1 + $0x6f4] ss:$8 sps:$4 sm:$0xff]   ;;  %v3638_v3 = vld [vmem:[%s5497_s1 + $0x6f0] ss:$8 sps:$4 sm:$0xff]   ;;  %v3648_v5 = vld [vmem:[%s5497_s1 + $0x704] ss:$8 sps:$4 sm:$0xff]  }
  0x18   :  { %2785 = vmatpush1.bf16.msra.mxu0 %v3578_v23  ;;  %2540 = vmatprep.subr.bf16.mxu1 %v3579_v24  ;;  %v3641_v8 = vld [vmem:[%s5497_s1 + $0x100] ss:$8 sps:$4 sm:$0xff]   ;;  %v3651_v10 = vld [vmem:[%s5497_s1 + $0x114] ss:$8 sps:$4 sm:$0xff]   ;;  %v3649_v12 = vld [vmem:[%s5497_s1 + $0x110] ss:$8 sps:$4 sm:$0xff]  }
  0x19   :  { %2786 = vmatprep.subr.bf16.mxu0 %v3581_v25  ;;  %v3646_v9 = vld [vmem:[%s5497_s1 + $0x700] ss:$8 sps:$4 sm:$0xff]   ;;  %v3654_v11 = vld [vmem:[%s5497_s1 + $0x714] ss:$8 sps:$4 sm:$0xff]   ;;  %v3652_v13 = vld [vmem:[%s5497_s1 + $0x710] ss:$8 sps:$4 sm:$0xff]  }
  0x1a   :  { %v3657_v14 = vld [vmem:[%s5497_s1 + $0x124] ss:$8 sps:$4 sm:$0xff]   ;;  %v3655_v16 = vld [vmem:[%s5497_s1 + $0x120] ss:$8 sps:$4 sm:$0xff]   ;;  %v3663_v18 = vld [vmem:[%s5497_s1 + $0x134] ss:$8 sps:$4 sm:$0xff]  }
  0x1b   :  { %2541 = vmatpush1.bf16.msra.mxu1 %v3583_v26  ;;  %v3660_v15 = vld [vmem:[%s5497_s1 + $0x724] ss:$8 sps:$4 sm:$0xff]   ;;  %v3658_v17 = vld [vmem:[%s5497_s1 + $0x720] ss:$8 sps:$4 sm:$0xff]   ;;  %v3666_v19 = vld [vmem:[%s5497_s1 + $0x734] ss:$8 sps:$4 sm:$0xff]  }
  0x1c   :  { %2787 = vmatpush1.bf16.msra.mxu0 %v3584_v27  ;;  %2542 = vmatprep.subr.bf16.mxu1 %v3585_v28  ;;  %v3661_v20 = vld [vmem:[%s5497_s1 + $0x130] ss:$8 sps:$4 sm:$0xff]   ;;  %v3669_v22 = vld [vmem:[%s5497_s1 + $0x144] ss:$8 sps:$4 sm:$0xff]   ;;  %v3667_v24 = vld [vmem:[%s5497_s1 + $0x140] ss:$8 sps:$4 sm:$0xff]  }
  0x1d   :  { %2788 = vmatprep.subr.bf16.mxu0 %v3587_v29  ;;  %v3664_v21 = vld [vmem:[%s5497_s1 + $0x730] ss:$8 sps:$4 sm:$0xff]   ;;  %v3672_v23 = vld [vmem:[%s5497_s1 + $0x744] ss:$8 sps:$4 sm:$0xff]   ;;  %v3670_v25 = vld [vmem:[%s5497_s1 + $0x740] ss:$8 sps:$4 sm:$0xff]  }
  0x1e   :  { %v3675_v26 = vld [vmem:[%s5497_s1 + $0x154] ss:$8 sps:$4 sm:$0xff]   ;;  %v3673_v28 = vld [vmem:[%s5497_s1 + $0x150] ss:$8 sps:$4 sm:$0xff]   ;;  %v3705_v50 = vld [vmem:[%s5497_s1 + $0x1a4] ss:$8 sps:$4 sm:$0xff]  }
  0x1f   :  { %2543 = vmatpush1.bf16.msra.mxu1 %v3589_v30  ;;  %v3678_v27 = vld [vmem:[%s5497_s1 + $0x754] ss:$8 sps:$4 sm:$0xff]   ;;  %v3676_v29 = vld [vmem:[%s5497_s1 + $0x750] ss:$8 sps:$4 sm:$0xff]   ;;  %v3681_v30 = vld [vmem:[%s5497_s1 + $0x164] ss:$8 sps:$4 sm:$0xff]  }
  0x20   :  { %2789 = vmatpush1.bf16.msra.mxu0 %v3590_v31  ;;  %2544 = vmatprep.subr.bf16.mxu1 %v3591_v32  ;;  %v3684_v31 = vld [vmem:[%s5497_s1 + $0x764] ss:$8 sps:$4 sm:$0xff]   ;;  %v3699_v46 = vld [vmem:[%s5497_s1 + $0x194] ss:$8 sps:$4 sm:$0xff]   ;;  %v3697_v48 = vld [vmem:[%s5497_s1 + $0x190] ss:$8 sps:$4 sm:$0xff]  }
  0x21   :  { %2790 = vmatprep.subr.bf16.mxu0 %v3593_v33  ;;  %v4468_v32 = vld [vmem:[%s5498_s0 + $0x8] sm:$0xff] }
  0x22   :  { %v3679_v33 = vld [vmem:[%s5497_s1 + $0x160] ss:$8 sps:$4 sm:$0xff]  }
  0x23   :  { %2545 = vmatpush1.bf16.msra.mxu1 %v3595_v34  ;;  %v3682_v34 = vld [vmem:[%s5497_s1 + $0x760] ss:$8 sps:$4 sm:$0xff]  }
  0x24   :  { %2791 = vmatpush1.bf16.msra.mxu0 %v3596_v35  ;;  %2546 = vmatprep.subr.bf16.mxu1 %v3597_v36  ;;  %v3072_v35 = vcombine.high %v4468_v32, %v4468_v32  ;;  %v4481_v36 = vld [vmem:[%s5498_s0 + $0x38] sm:$0xff]  ;;  %v3706_v53 = vld [vmem:[%s5497_s1 + $0x7a0] ss:$8 sps:$4 sm:$0xff]  }
  0x25   :  { %2792 = vmatprep.subr.bf16.mxu0 %v3599_v37  ;;  %v3687_v37 = vld [vmem:[%s5497_s1 + $0x174] ss:$8 sps:$4 sm:$0xff]  }
  0x27   :  { %2547 = vmatpush1.bf16.msra.mxu1 %v3601_v38  ;;  %v3084_v38 = vcombine.high %v4481_v36, %v4481_v36 }
  0x28   :  { %2793 = vmatpush1.bf16.msra.mxu0 %v3602_v39  ;;  %2548 = vmatprep.subr.bf16.mxu1 %v3603_v40  ;;  %v3690_v39 = vld [vmem:[%s5497_s1 + $0x774] ss:$8 sps:$4 sm:$0xff]   ;;  %v3685_v40 = vld [vmem:[%s5497_s1 + $0x170] ss:$8 sps:$4 sm:$0xff]  }
  0x29   :  { %2794 = vmatprep.subr.bf16.mxu0 %v3605_v41  ;;  %v3688_v41 = vld [vmem:[%s5497_s1 + $0x770] ss:$8 sps:$4 sm:$0xff]  }
  0x2b   :  { %2549 = vmatpush1.bf16.msra.mxu1 %v3607_v42  ;;  %v3693_v42 = vld [vmem:[%s5497_s1 + $0x184] ss:$8 sps:$4 sm:$0xff]  }
  0x2c   :  { %2795 = vmatpush1.bf16.msra.mxu0 %v3608_v43  ;;  %2550 = vmatprep.subr.bf16.mxu1 %v3609_v44  ;;  %v3696_v43 = vld [vmem:[%s5497_s1 + $0x784] ss:$8 sps:$4 sm:$0xff]   ;;  %v3691_v44 = vld [vmem:[%s5497_s1 + $0x180] ss:$8 sps:$4 sm:$0xff]  }
  0x2d   :  { %2796 = vmatprep.subr.bf16.mxu0 %v3611_v45  ;;  %v3694_v45 = vld [vmem:[%s5497_s1 + $0x780] ss:$8 sps:$4 sm:$0xff]  }
  0x2f   :  { %2551 = vmatpush1.bf16.msra.mxu1 %v3613_v47  ;;  %v3702_v47 = vld [vmem:[%s5497_s1 + $0x794] ss:$8 sps:$4 sm:$0xff]  }
  0x30   :  { %2797 = vmatpush1.bf16.msra.mxu0 %v3614_v49  ;;  %2552 = vmatprep.subr.bf16.mxu1 %v3615_v51  ;;  %v3700_v49 = vld [vmem:[%s5497_s1 + $0x790] ss:$8 sps:$4 sm:$0xff]   ;;  %v3708_v51 = vld [vmem:[%s5497_s1 + $0x7a4] ss:$8 sps:$4 sm:$0xff]  }
  0x31   :  { %2798 = vmatprep.subr.bf16.mxu0 %v3617_v52  ;;  %v3703_v52 = vld [vmem:[%s5497_s1 + $0x1a0] ss:$8 sps:$4 sm:$0xff]  }
  0x33   :  { %2553 = vmatpush1.bf16.msra.mxu1 %v3619_v54  ;;  %v3711_v54 = vld [vmem:[%s5497_s1 + $0x1b4] ss:$8 sps:$4 sm:$0xff]  }
  0x34   :  { %2799 = vmatpush1.bf16.msra.mxu0 %v3620_v55  ;;  %2554 = vmatprep.subr.bf16.mxu1 %v3621_v56  ;;  %v3714_v55 = vld [vmem:[%s5497_s1 + $0x7b4] ss:$8 sps:$4 sm:$0xff]   ;;  %v3709_v56 = vld [vmem:[%s5497_s1 + $0x1b0] ss:$8 sps:$4 sm:$0xff]  }
  0x35   :  { %2800 = vmatprep.subr.bf16.mxu0 %v3623_v57  ;;  %v3712_v57 = vld [vmem:[%s5497_s1 + $0x7b0] ss:$8 sps:$4 sm:$0xff]  }
  0x37   :  { %2555 = vmatpush1.bf16.msra.mxu1 %v3625_v58  ;;  %v3717_v58 = vld [vmem:[%s5497_s1 + $0x1c4] ss:$8 sps:$4 sm:$0xff]  }
  0x38   :  { %2801 = vmatpush1.bf16.msra.mxu0 %v3626_v59  ;;  %2556 = vmatprep.subr.bf16.mxu1 %v3627_v60  ;;  %v3720_v59 = vld [vmem:[%s5497_s1 + $0x7c4] ss:$8 sps:$4 sm:$0xff]   ;;  %v3715_v60 = vld [vmem:[%s5497_s1 + $0x1c0] ss:$8 sps:$4 sm:$0xff]  }
  0x39   :  { %2802 = vmatprep.subr.bf16.mxu0 %v3629_v61  ;;  %v3718_v61 = vld [vmem:[%s5497_s1 + $0x7c0] ss:$8 sps:$4 sm:$0xff]  }
  0x3b   :  { %2557 = vmatpush1.bf16.msra.mxu1 %v3631_v62  ;;  %v3723_v62 = vld [vmem:[%s5497_s1 + $0x1d4] ss:$8 sps:$4 sm:$0xff]  }
  0x3c   :  { %2803 = vmatpush1.bf16.msra.mxu0 %v3632_v63  ;;  %2558 = vmatprep.subr.bf16.mxu1 %v3633_v0  ;;  %v3726_v63 = vld [vmem:[%s5497_s1 + $0x7d4] ss:$8 sps:$4 sm:$0xff]   ;;  %v3721_v0 = vld [vmem:[%s5497_s1 + $0x1d0] ss:$8 sps:$4 sm:$0xff]  }
  0x3d   :  { %2804 = vmatprep.subr.bf16.mxu0 %v3635_v1  ;;  %v3724_v1 = vld [vmem:[%s5497_s1 + $0x7d0] ss:$8 sps:$4 sm:$0xff]  }
  0x3f   :  { %2559 = vmatpush1.bf16.msra.mxu1 %v3637_v2  ;;  %v3729_v2 = vld [vmem:[%s5497_s1 + $0x1e4] ss:$8 sps:$4 sm:$0xff]  }
  0x40   :  { %2805 = vmatpush1.bf16.msra.mxu0 %v3638_v3  ;;  %2569 = vmatprep.subr.bf16.mxu1 %v3643_v4  ;;  %v3732_v3 = vld [vmem:[%s5497_s1 + $0x7e4] ss:$8 sps:$4 sm:$0xff]   ;;  %v3727_v4 = vld [vmem:[%s5497_s1 + $0x1e0] ss:$8 sps:$4 sm:$0xff]  }
  0x41   :  { %2815 = vmatprep.subr.bf16.mxu0 %v3648_v5  ;;  %v3730_v5 = vld [vmem:[%s5497_s1 + $0x7e0] ss:$8 sps:$4 sm:$0xff]  }
  0x42   :  { %2561 = vmatmul.mubr.bf16.vlgmr.msra.gmra.mrb[0].mxu1 %v3069_v6  ;;  %v3735_v6 = vld [vmem:[%s5497_s1 + $0x1f4] ss:$8 sps:$4 sm:$0xff]  }
  0x43   :  { %2807 = vmatmul.mubr.bf16.vlgmr.msra.gmra.mrb[0].mxu0 %v3081_v7  ;;  %2570 = vmatpush1.bf16.msra.mxu1 %v3641_v8  ;;  %v3738_v7 = vld [vmem:[%s5497_s1 + $0x7f4] ss:$8 sps:$4 sm:$0xff]   ;;  %v3733_v8 = vld [vmem:[%s5497_s1 + $0x1f0] ss:$8 sps:$4 sm:$0xff]  }
  0x44   :  { %2816 = vmatpush1.bf16.msra.mxu0 %v3646_v9  ;;  %2571 = vmatprep.subr.bf16.mxu1 %v3651_v10  ;;  %v3736_v9 = vld [vmem:[%s5497_s1 + $0x7f0] ss:$8 sps:$4 sm:$0xff]   ;;  %v3743_v10 = vld [vmem:[%s5497_s1 + $0x204] ss:$8 sps:$4 sm:$0xff]  }
  0x45   :  { %2817 = vmatprep.subr.bf16.mxu0 %v3654_v11  ;;  %2601 = vmatprep.mubr.bf16.mxu1 %v3072_v35  ;;  %v3748_v11 = vld [vmem:[%s5497_s1 + $0x804] ss:$8 sps:$4 sm:$0xff]   ;;  %v3770_v35 = vld [vmem:[%s5497_s1 + $0x840] ss:$8 sps:$4 sm:$0xff]  }
  0x46   :  { %2847 = vmatprep.mubr.bf16.mxu0 %v3084_v38  ;;  %v3773_v38 = vld [vmem:[%s5497_s1 + $0x250] ss:$8 sps:$4 sm:$0xff]  }
  0x47   :  { %2572 = vmatpush1.bf16.msra.mxu1 %v3649_v12  ;;  %v3071_v12 = vcombine.low %v4468_v32, %v4468_v32  ;;  %v3769_v32 = vld [vmem:[%s5497_s1 + $0x244] ss:$8 sps:$4 sm:$0xff]  }
  0x48   :  { %2818 = vmatpush1.bf16.msra.mxu0 %v3652_v13  ;;  %2573 = vmatprep.subr.bf16.mxu1 %v3657_v14  ;;  %v3741_v13 = vld [vmem:[%s5497_s1 + $0x200] ss:$8 sps:$4 sm:$0xff]   ;;  %v3083_v14 = vcombine.low %v4481_v36, %v4481_v36  ;;  %v3775_v36 = vld [vmem:[%s5497_s1 + $0x254] ss:$8 sps:$4 sm:$0xff]  }
  0x49   :  { %2819 = vmatprep.subr.bf16.mxu0 %v3660_v15  ;;  %v3746_v15 = vld [vmem:[%s5497_s1 + $0x800] ss:$8 sps:$4 sm:$0xff]  }
  0x4b   :  { %2574 = vmatpush1.bf16.msra.mxu1 %v3655_v16  ;;  %v3751_v16 = vld [vmem:[%s5497_s1 + $0x214] ss:$8 sps:$4 sm:$0xff]  }
  0x4c   :  { %2820 = vmatpush1.bf16.msra.mxu0 %v3658_v17  ;;  %2575 = vmatprep.subr.bf16.mxu1 %v3663_v18  ;;  %v3754_v17 = vld [vmem:[%s5497_s1 + $0x814] ss:$8 sps:$4 sm:$0xff]  }
  0x4d   :  { %2821 = vmatprep.subr.bf16.mxu0 %v3666_v19  ;;  %v4618_v18 = vld [vmem:[%s5498_s0 + $0x10] sm:$0xff] }
  0x4e   :  { %v3074_v19 = vcombine.high %v4618_v18, %v4618_v18 }
  0x4f   :  { %2576 = vmatpush1.bf16.msra.mxu1 %v3661_v20  ;;  %v4625_v20 = vld [vmem:[%s5498_s0 + $0x40] sm:$0xff] }
  0x50   :  { %2822 = vmatpush1.bf16.msra.mxu0 %v3664_v21  ;;  %2577 = vmatprep.subr.bf16.mxu1 %v3669_v22  ;;  %v3749_v21 = vld [vmem:[%s5497_s1 + $0x210] ss:$8 sps:$4 sm:$0xff]  }
  0x51   :  { %2823 = vmatprep.subr.bf16.mxu0 %v3672_v23  ;;  %v3752_v22 = vld [vmem:[%s5497_s1 + $0x810] ss:$8 sps:$4 sm:$0xff]   ;;  %v3086_v23 = vcombine.high %v4625_v20, %v4625_v20 }
  0x53   :  { %2578 = vmatpush1.bf16.msra.mxu1 %v3667_v24  ;;  %v3757_v24 = vld [vmem:[%s5497_s1 + $0x224] ss:$8 sps:$4 sm:$0xff]  }
  0x54   :  { %2824 = vmatpush1.bf16.msra.mxu0 %v3670_v25  ;;  %2579 = vmatprep.subr.bf16.mxu1 %v3675_v26  ;;  %v3760_v25 = vld [vmem:[%s5497_s1 + $0x824] ss:$8 sps:$4 sm:$0xff]   ;;  %v3755_v26 = vld [vmem:[%s5497_s1 + $0x220] ss:$8 sps:$4 sm:$0xff]  }
  0x55   :  { %2825 = vmatprep.subr.bf16.mxu0 %v3678_v27  ;;  %v3758_v27 = vld [vmem:[%s5497_s1 + $0x820] ss:$8 sps:$4 sm:$0xff]  }
  0x57   :  { %2580 = vmatpush1.bf16.msra.mxu1 %v3673_v28  ;;  %v3763_v28 = vld [vmem:[%s5497_s1 + $0x234] ss:$8 sps:$4 sm:$0xff]  }
  0x58   :  { %2826 = vmatpush1.bf16.msra.mxu0 %v3676_v29  ;;  %2581 = vmatprep.subr.bf16.mxu1 %v3681_v30  ;;  %v3766_v29 = vld [vmem:[%s5497_s1 + $0x834] ss:$8 sps:$4 sm:$0xff]   ;;  %v3761_v30 = vld [vmem:[%s5497_s1 + $0x230] ss:$8 sps:$4 sm:$0xff]  }
  0x59   :  { %2827 = vmatprep.subr.bf16.mxu0 %v3684_v31  ;;  %v3764_v31 = vld [vmem:[%s5497_s1 + $0x830] ss:$8 sps:$4 sm:$0xff]  }
  0x5b   :  { %2582 = vmatpush1.bf16.msra.mxu1 %v3679_v33  ;;  %v3772_v33 = vld [vmem:[%s5497_s1 + $0x844] ss:$8 sps:$4 sm:$0xff]  }
  0x5c   :  { %2828 = vmatpush1.bf16.msra.mxu0 %v3682_v34  ;;  %2583 = vmatprep.subr.bf16.mxu1 %v3687_v37  ;;  %v3767_v34 = vld [vmem:[%s5497_s1 + $0x240] ss:$8 sps:$4 sm:$0xff]   ;;  %v3778_v37 = vld [vmem:[%s5497_s1 + $0x854] ss:$8 sps:$4 sm:$0xff]  }
  0x5d   :  { %2829 = vmatprep.subr.bf16.mxu0 %v3690_v39  ;;  %v3776_v39 = vld [vmem:[%s5497_s1 + $0x850] ss:$8 sps:$4 sm:$0xff]  }
  0x5f   :  { %2584 = vmatpush1.bf16.msra.mxu1 %v3685_v40  ;;  %v3781_v40 = vld [vmem:[%s5497_s1 + $0x264] ss:$8 sps:$4 sm:$0xff]  }
  0x60   :  { %2830 = vmatpush1.bf16.msra.mxu0 %v3688_v41  ;;  %2585 = vmatprep.subr.bf16.mxu1 %v3693_v42  ;;  %v3784_v41 = vld [vmem:[%s5497_s1 + $0x864] ss:$8 sps:$4 sm:$0xff]   ;;  %v3779_v42 = vld [vmem:[%s5497_s1 + $0x260] ss:$8 sps:$4 sm:$0xff]  }
  0x61   :  { %2831 = vmatprep.subr.bf16.mxu0 %v3696_v43  ;;  %v3782_v43 = vld [vmem:[%s5497_s1 + $0x860] ss:$8 sps:$4 sm:$0xff]  }
  0x63   :  { %2586 = vmatpush1.bf16.msra.mxu1 %v3691_v44  ;;  %v3787_v44 = vld [vmem:[%s5497_s1 + $0x274] ss:$8 sps:$4 sm:$0xff]  }
  0x64   :  { %2832 = vmatpush1.bf16.msra.mxu0 %v3694_v45  ;;  %2587 = vmatprep.subr.bf16.mxu1 %v3699_v46  ;;  %v3790_v45 = vld [vmem:[%s5497_s1 + $0x874] ss:$8 sps:$4 sm:$0xff]   ;;  %v3785_v46 = vld [vmem:[%s5497_s1 + $0x270] ss:$8 sps:$4 sm:$0xff]  }
  0x65   :  { %2833 = vmatprep.subr.bf16.mxu0 %v3702_v47  ;;  %v3788_v47 = vld [vmem:[%s5497_s1 + $0x870] ss:$8 sps:$4 sm:$0xff]  }
  0x67   :  { %2588 = vmatpush1.bf16.msra.mxu1 %v3697_v48  ;;  %v3793_v48 = vld [vmem:[%s5497_s1 + $0x284] ss:$8 sps:$4 sm:$0xff]  }
  0x68   :  { %2834 = vmatpush1.bf16.msra.mxu0 %v3700_v49  ;;  %2589 = vmatprep.subr.bf16.mxu1 %v3705_v50  ;;  %v3796_v49 = vld [vmem:[%s5497_s1 + $0x884] ss:$8 sps:$4 sm:$0xff]   ;;  %v3791_v50 = vld [vmem:[%s5497_s1 + $0x280] ss:$8 sps:$4 sm:$0xff]  }
  0x69   :  { %2835 = vmatprep.subr.bf16.mxu0 %v3708_v51  ;;  %v3794_v51 = vld [vmem:[%s5497_s1 + $0x880] ss:$8 sps:$4 sm:$0xff]  }
  0x6b   :  { %2590 = vmatpush1.bf16.msra.mxu1 %v3703_v52  ;;  %v3799_v52 = vld [vmem:[%s5497_s1 + $0x294] ss:$8 sps:$4 sm:$0xff]  }
  0x6c   :  { %2836 = vmatpush1.bf16.msra.mxu0 %v3706_v53  ;;  %2591 = vmatprep.subr.bf16.mxu1 %v3711_v54  ;;  %v3802_v53 = vld [vmem:[%s5497_s1 + $0x894] ss:$8 sps:$4 sm:$0xff]   ;;  %v3797_v54 = vld [vmem:[%s5497_s1 + $0x290] ss:$8 sps:$4 sm:$0xff]  }
  0x6d   :  { %2837 = vmatprep.subr.bf16.mxu0 %v3714_v55  ;;  %v3800_v55 = vld [vmem:[%s5497_s1 + $0x890] ss:$8 sps:$4 sm:$0xff]  }
  0x6f   :  { %2592 = vmatpush1.bf16.msra.mxu1 %v3709_v56  ;;  %v3805_v56 = vld [vmem:[%s5497_s1 + $0x2a4] ss:$8 sps:$4 sm:$0xff]  }
  0x70   :  { %2838 = vmatpush1.bf16.msra.mxu0 %v3712_v57  ;;  %2593 = vmatprep.subr.bf16.mxu1 %v3717_v58  ;;  %v3808_v57 = vld [vmem:[%s5497_s1 + $0x8a4] ss:$8 sps:$4 sm:$0xff]   ;;  %v3803_v58 = vld [vmem:[%s5497_s1 + $0x2a0] ss:$8 sps:$4 sm:$0xff]  }
  0x71   :  { %2839 = vmatprep.subr.bf16.mxu0 %v3720_v59  ;;  %v3806_v59 = vld [vmem:[%s5497_s1 + $0x8a0] ss:$8 sps:$4 sm:$0xff]  }
  0x73   :  { %2594 = vmatpush1.bf16.msra.mxu1 %v3715_v60  ;;  %v3811_v60 = vld [vmem:[%s5497_s1 + $0x2b4] ss:$8 sps:$4 sm:$0xff]  }
  0x74   :  { %2840 = vmatpush1.bf16.msra.mxu0 %v3718_v61  ;;  %2595 = vmatprep.subr.bf16.mxu1 %v3723_v62  ;;  %v3814_v61 = vld [vmem:[%s5497_s1 + $0x8b4] ss:$8 sps:$4 sm:$0xff]   ;;  %v3809_v62 = vld [vmem:[%s5497_s1 + $0x2b0] ss:$8 sps:$4 sm:$0xff]  }
  0x75   :  { %2841 = vmatprep.subr.bf16.mxu0 %v3726_v63  ;;  %v3812_v63 = vld [vmem:[%s5497_s1 + $0x8b0] ss:$8 sps:$4 sm:$0xff]  }
  0x77   :  { %2596 = vmatpush1.bf16.msra.mxu1 %v3721_v0  ;;  %v3817_v0 = vld [vmem:[%s5497_s1 + $0x2c4] ss:$8 sps:$4 sm:$0xff]  }
  0x78   :  { %2842 = vmatpush1.bf16.msra.mxu0 %v3724_v1  ;;  %2597 = vmatprep.subr.bf16.mxu1 %v3729_v2  ;;  %v3820_v1 = vld [vmem:[%s5497_s1 + $0x8c4] ss:$8 sps:$4 sm:$0xff]   ;;  %v3815_v2 = vld [vmem:[%s5497_s1 + $0x2c0] ss:$8 sps:$4 sm:$0xff]  }
  0x79   :  { %2843 = vmatprep.subr.bf16.mxu0 %v3732_v3  ;;  %v3818_v3 = vld [vmem:[%s5497_s1 + $0x8c0] ss:$8 sps:$4 sm:$0xff]  }
  0x7b   :  { %2598 = vmatpush1.bf16.msra.mxu1 %v3727_v4  ;;  %v3823_v4 = vld [vmem:[%s5497_s1 + $0x2d4] ss:$8 sps:$4 sm:$0xff]  }
  0x7c   :  { %2844 = vmatpush1.bf16.msra.mxu0 %v3730_v5  ;;  %2599 = vmatprep.subr.bf16.mxu1 %v3735_v6  ;;  %v3826_v5 = vld [vmem:[%s5497_s1 + $0x8d4] ss:$8 sps:$4 sm:$0xff]   ;;  %v3821_v6 = vld [vmem:[%s5497_s1 + $0x2d0] ss:$8 sps:$4 sm:$0xff]  }
  0x7d   :  { %2845 = vmatprep.subr.bf16.mxu0 %v3738_v7  ;;  %v3824_v7 = vld [vmem:[%s5497_s1 + $0x8d0] ss:$8 sps:$4 sm:$0xff]  }
  0x7f   :  { %2600 = vmatpush1.bf16.msra.mxu1 %v3733_v8  ;;  %v3829_v8 = vld [vmem:[%s5497_s1 + $0x2e4] ss:$8 sps:$4 sm:$0xff]  }
  0x80   :  { %2846 = vmatpush1.bf16.msra.mxu0 %v3736_v9  ;;  %2610 = vmatprep.subr.bf16.mxu1 %v3743_v10  ;;  %v3832_v9 = vld [vmem:[%s5497_s1 + $0x8e4] ss:$8 sps:$4 sm:$0xff]   ;;  %v3827_v10 = vld [vmem:[%s5497_s1 + $0x2e0] ss:$8 sps:$4 sm:$0xff]  }
  0x81   :  { %2856 = vmatprep.subr.bf16.mxu0 %v3748_v11  ;;  %v3830_v11 = vld [vmem:[%s5497_s1 + $0x8e0] ss:$8 sps:$4 sm:$0xff]  }
  0x82   :  { %2602 = vmatmul.mubr.bf16.vlgmr.msra.gmra.mrb[0].mxu1 %v3071_v12  ;;  %v3835_v12 = vld [vmem:[%s5497_s1 + $0x2f4] ss:$8 sps:$4 sm:$0xff]  }
  0x83   :  { %2848 = vmatmul.mubr.bf16.vlgmr.msra.gmra.mrb[0].mxu0 %v3083_v14  ;;  %2611 = vmatpush1.bf16.msra.mxu1 %v3741_v13  ;;  %v3838_v13 = vld [vmem:[%s5497_s1 + $0x8f4] ss:$8 sps:$4 sm:$0xff]   ;;  %v3833_v14 = vld [vmem:[%s5497_s1 + $0x2f0] ss:$8 sps:$4 sm:$0xff]  }
  0x84   :  { %2857 = vmatpush1.bf16.msra.mxu0 %v3746_v15  ;;  %2612 = vmatprep.subr.bf16.mxu1 %v3751_v16  ;;  %v3836_v15 = vld [vmem:[%s5497_s1 + $0x8f0] ss:$8 sps:$4 sm:$0xff]   ;;  %v3843_v16 = vld [vmem:[%s5497_s1 + $0x304] ss:$8 sps:$4 sm:$0xff]  }
  0x85   :  { %2858 = vmatprep.subr.bf16.mxu0 %v3754_v17  ;;  %2642 = vmatprep.mubr.bf16.mxu1 %v3074_v19  ;;  %v3848_v17 = vld [vmem:[%s5497_s1 + $0x904] ss:$8 sps:$4 sm:$0xff]   ;;  %v3841_v19 = vld [vmem:[%s5497_s1 + $0x300] ss:$8 sps:$4 sm:$0xff]  }
  0x86   :  { %2888 = vmatprep.mubr.bf16.mxu0 %v3086_v23  ;;  %v3085_v23 = vcombine.low %v4625_v20, %v4625_v20 }
  0x87   :  { %2613 = vmatpush1.bf16.msra.mxu1 %v3749_v21  ;;  %v3846_v21 = vld [vmem:[%s5497_s1 + $0x900] ss:$8 sps:$4 sm:$0xff]  }
  0x88   :  { %2859 = vmatpush1.bf16.msra.mxu0 %v3752_v22  ;;  %2614 = vmatprep.subr.bf16.mxu1 %v3757_v24  ;;  %v3073_v22 = vcombine.low %v4618_v18, %v4618_v18  ;;  %v4822_v24 = vld [vmem:[%s5498_s0 + $0x18] sm:$0xff] }
  0x89   :  { %2860 = vmatprep.subr.bf16.mxu0 %v3760_v25  ;;  %v4827_v25 = vld [vmem:[%s5498_s0 + $0x48] sm:$0xff]  ;;  %v3854_v18 = vld [vmem:[%s5497_s1 + $0x914] ss:$8 sps:$4 sm:$0xff]   ;;  %v3076_v20 = vcombine.high %v4822_v24, %v4822_v24 }
  0x8b   :  { %2615 = vmatpush1.bf16.msra.mxu1 %v3755_v26  ;;  %v3851_v26 = vld [vmem:[%s5497_s1 + $0x314] ss:$8 sps:$4 sm:$0xff]  }
  0x8c   :  { %2861 = vmatpush1.bf16.msra.mxu0 %v3758_v27  ;;  %2616 = vmatprep.subr.bf16.mxu1 %v3763_v28  ;;  %v3088_v27 = vcombine.high %v4827_v25, %v4827_v25  ;;  %v3849_v28 = vld [vmem:[%s5497_s1 + $0x310] ss:$8 sps:$4 sm:$0xff]  }
  0x8d   :  { %2862 = vmatprep.subr.bf16.mxu0 %v3766_v29  ;;  %v3852_v29 = vld [vmem:[%s5497_s1 + $0x910] ss:$8 sps:$4 sm:$0xff]  }
  0x8f   :  { %2617 = vmatpush1.bf16.msra.mxu1 %v3761_v30  ;;  %v3857_v30 = vld [vmem:[%s5497_s1 + $0x324] ss:$8 sps:$4 sm:$0xff]  }
  0x90   :  { %2863 = vmatpush1.bf16.msra.mxu0 %v3764_v31  ;;  %2618 = vmatprep.subr.bf16.mxu1 %v3769_v32  ;;  %v3860_v31 = vld [vmem:[%s5497_s1 + $0x924] ss:$8 sps:$4 sm:$0xff]   ;;  %v3855_v32 = vld [vmem:[%s5497_s1 + $0x320] ss:$8 sps:$4 sm:$0xff]  }
  0x91   :  { %2864 = vmatprep.subr.bf16.mxu0 %v3772_v33  ;;  %v3858_v33 = vld [vmem:[%s5497_s1 + $0x920] ss:$8 sps:$4 sm:$0xff]  }
  0x93   :  { %2619 = vmatpush1.bf16.msra.mxu1 %v3767_v34  ;;  %v3863_v34 = vld [vmem:[%s5497_s1 + $0x334] ss:$8 sps:$4 sm:$0xff]  }
  0x94   :  { %2865 = vmatpush1.bf16.msra.mxu0 %v3770_v35  ;;  %2620 = vmatprep.subr.bf16.mxu1 %v3775_v36  ;;  %v3866_v35 = vld [vmem:[%s5497_s1 + $0x934] ss:$8 sps:$4 sm:$0xff]   ;;  %v3861_v36 = vld [vmem:[%s5497_s1 + $0x330] ss:$8 sps:$4 sm:$0xff]  }
  0x95   :  { %2866 = vmatprep.subr.bf16.mxu0 %v3778_v37  ;;  %v3864_v37 = vld [vmem:[%s5497_s1 + $0x930] ss:$8 sps:$4 sm:$0xff]  }
  0x97   :  { %2621 = vmatpush1.bf16.msra.mxu1 %v3773_v38  ;;  %v3869_v38 = vld [vmem:[%s5497_s1 + $0x344] ss:$8 sps:$4 sm:$0xff]  }
  0x98   :  { %2867 = vmatpush1.bf16.msra.mxu0 %v3776_v39  ;;  %2622 = vmatprep.subr.bf16.mxu1 %v3781_v40  ;;  %v3872_v39 = vld [vmem:[%s5497_s1 + $0x944] ss:$8 sps:$4 sm:$0xff]   ;;  %v3867_v40 = vld [vmem:[%s5497_s1 + $0x340] ss:$8 sps:$4 sm:$0xff]  }
  0x99   :  { %2868 = vmatprep.subr.bf16.mxu0 %v3784_v41  ;;  %v3870_v41 = vld [vmem:[%s5497_s1 + $0x940] ss:$8 sps:$4 sm:$0xff]  }
  0x9b   :  { %2623 = vmatpush1.bf16.msra.mxu1 %v3779_v42  ;;  %v3875_v42 = vld [vmem:[%s5497_s1 + $0x354] ss:$8 sps:$4 sm:$0xff]  }
  0x9c   :  { %2869 = vmatpush1.bf16.msra.mxu0 %v3782_v43  ;;  %2624 = vmatprep.subr.bf16.mxu1 %v3787_v44  ;;  %v3878_v43 = vld [vmem:[%s5497_s1 + $0x954] ss:$8 sps:$4 sm:$0xff]   ;;  %v3873_v44 = vld [vmem:[%s5497_s1 + $0x350] ss:$8 sps:$4 sm:$0xff]  }
  0x9d   :  { %2870 = vmatprep.subr.bf16.mxu0 %v3790_v45  ;;  %v3876_v45 = vld [vmem:[%s5497_s1 + $0x950] ss:$8 sps:$4 sm:$0xff]  }
  0x9f   :  { %2625 = vmatpush1.bf16.msra.mxu1 %v3785_v46  ;;  %v3881_v46 = vld [vmem:[%s5497_s1 + $0x364] ss:$8 sps:$4 sm:$0xff]  }
  0xa0   :  { %2871 = vmatpush1.bf16.msra.mxu0 %v3788_v47  ;;  %2626 = vmatprep.subr.bf16.mxu1 %v3793_v48  ;;  %v3884_v47 = vld [vmem:[%s5497_s1 + $0x964] ss:$8 sps:$4 sm:$0xff]   ;;  %v3879_v48 = vld [vmem:[%s5497_s1 + $0x360] ss:$8 sps:$4 sm:$0xff]  }
  0xa1   :  { %2872 = vmatprep.subr.bf16.mxu0 %v3796_v49  ;;  %v3882_v49 = vld [vmem:[%s5497_s1 + $0x960] ss:$8 sps:$4 sm:$0xff]  }
  0xa3   :  { %2627 = vmatpush1.bf16.msra.mxu1 %v3791_v50  ;;  %v3887_v50 = vld [vmem:[%s5497_s1 + $0x374] ss:$8 sps:$4 sm:$0xff]  }
  0xa4   :  { %2873 = vmatpush1.bf16.msra.mxu0 %v3794_v51  ;;  %2628 = vmatprep.subr.bf16.mxu1 %v3799_v52  ;;  %v3890_v51 = vld [vmem:[%s5497_s1 + $0x974] ss:$8 sps:$4 sm:$0xff]   ;;  %v3885_v52 = vld [vmem:[%s5497_s1 + $0x370] ss:$8 sps:$4 sm:$0xff]  }
  0xa5   :  { %2874 = vmatprep.subr.bf16.mxu0 %v3802_v53  ;;  %v3888_v53 = vld [vmem:[%s5497_s1 + $0x970] ss:$8 sps:$4 sm:$0xff]  }
  0xa7   :  { %2629 = vmatpush1.bf16.msra.mxu1 %v3797_v54  ;;  %v3893_v54 = vld [vmem:[%s5497_s1 + $0x384] ss:$8 sps:$4 sm:$0xff]  }
  0xa8   :  { %2875 = vmatpush1.bf16.msra.mxu0 %v3800_v55  ;;  %2630 = vmatprep.subr.bf16.mxu1 %v3805_v56  ;;  %v3896_v55 = vld [vmem:[%s5497_s1 + $0x984] ss:$8 sps:$4 sm:$0xff]   ;;  %v3891_v56 = vld [vmem:[%s5497_s1 + $0x380] ss:$8 sps:$4 sm:$0xff]  }
  0xa9   :  { %2876 = vmatprep.subr.bf16.mxu0 %v3808_v57  ;;  %v3894_v57 = vld [vmem:[%s5497_s1 + $0x980] ss:$8 sps:$4 sm:$0xff]  }
  0xab   :  { %2631 = vmatpush1.bf16.msra.mxu1 %v3803_v58  ;;  %v3899_v58 = vld [vmem:[%s5497_s1 + $0x394] ss:$8 sps:$4 sm:$0xff]  }
  0xac   :  { %2877 = vmatpush1.bf16.msra.mxu0 %v3806_v59  ;;  %2632 = vmatprep.subr.bf16.mxu1 %v3811_v60  ;;  %v3902_v59 = vld [vmem:[%s5497_s1 + $0x994] ss:$8 sps:$4 sm:$0xff]   ;;  %v3897_v60 = vld [vmem:[%s5497_s1 + $0x390] ss:$8 sps:$4 sm:$0xff]  }
  0xad   :  { %2878 = vmatprep.subr.bf16.mxu0 %v3814_v61  ;;  %v3900_v61 = vld [vmem:[%s5497_s1 + $0x990] ss:$8 sps:$4 sm:$0xff]  }
  0xaf   :  { %2633 = vmatpush1.bf16.msra.mxu1 %v3809_v62  ;;  %v3905_v62 = vld [vmem:[%s5497_s1 + $0x3a4] ss:$8 sps:$4 sm:$0xff]  }
  0xb0   :  { %2879 = vmatpush1.bf16.msra.mxu0 %v3812_v63  ;;  %2634 = vmatprep.subr.bf16.mxu1 %v3817_v0  ;;  %v3908_v63 = vld [vmem:[%s5497_s1 + $0x9a4] ss:$8 sps:$4 sm:$0xff]   ;;  %v3903_v0 = vld [vmem:[%s5497_s1 + $0x3a0] ss:$8 sps:$4 sm:$0xff]  }
  0xb1   :  { %2880 = vmatprep.subr.bf16.mxu0 %v3820_v1  ;;  %v3906_v1 = vld [vmem:[%s5497_s1 + $0x9a0] ss:$8 sps:$4 sm:$0xff]  }
  0xb3   :  { %2635 = vmatpush1.bf16.msra.mxu1 %v3815_v2  ;;  %v3911_v2 = vld [vmem:[%s5497_s1 + $0x3b4] ss:$8 sps:$4 sm:$0xff]  }
  0xb4   :  { %2881 = vmatpush1.bf16.msra.mxu0 %v3818_v3  ;;  %2636 = vmatprep.subr.bf16.mxu1 %v3823_v4  ;;  %v3914_v3 = vld [vmem:[%s5497_s1 + $0x9b4] ss:$8 sps:$4 sm:$0xff]   ;;  %v3909_v4 = vld [vmem:[%s5497_s1 + $0x3b0] ss:$8 sps:$4 sm:$0xff]  }
  0xb5   :  { %2882 = vmatprep.subr.bf16.mxu0 %v3826_v5  ;;  %v3912_v5 = vld [vmem:[%s5497_s1 + $0x9b0] ss:$8 sps:$4 sm:$0xff]  }
  0xb7   :  { %2637 = vmatpush1.bf16.msra.mxu1 %v3821_v6  ;;  %v3917_v6 = vld [vmem:[%s5497_s1 + $0x3c4] ss:$8 sps:$4 sm:$0xff]  }
  0xb8   :  { %2883 = vmatpush1.bf16.msra.mxu0 %v3824_v7  ;;  %2638 = vmatprep.subr.bf16.mxu1 %v3829_v8  ;;  %v3920_v7 = vld [vmem:[%s5497_s1 + $0x9c4] ss:$8 sps:$4 sm:$0xff]   ;;  %v3915_v8 = vld [vmem:[%s5497_s1 + $0x3c0] ss:$8 sps:$4 sm:$0xff]  }
  0xb9   :  { %2884 = vmatprep.subr.bf16.mxu0 %v3832_v9  ;;  %v3918_v9 = vld [vmem:[%s5497_s1 + $0x9c0] ss:$8 sps:$4 sm:$0xff]  }
  0xbb   :  { %2639 = vmatpush1.bf16.msra.mxu1 %v3827_v10  ;;  %v3923_v10 = vld [vmem:[%s5497_s1 + $0x3d4] ss:$8 sps:$4 sm:$0xff]  }
  0xbc   :  { %2885 = vmatpush1.bf16.msra.mxu0 %v3830_v11  ;;  %2640 = vmatprep.subr.bf16.mxu1 %v3835_v12  ;;  %v3926_v11 = vld [vmem:[%s5497_s1 + $0x9d4] ss:$8 sps:$4 sm:$0xff]   ;;  %v3921_v12 = vld [vmem:[%s5497_s1 + $0x3d0] ss:$8 sps:$4 sm:$0xff]  }
  0xbd   :  { %2886 = vmatprep.subr.bf16.mxu0 %v3838_v13  ;;  %v3924_v13 = vld [vmem:[%s5497_s1 + $0x9d0] ss:$8 sps:$4 sm:$0xff]  }
  0xbf   :  { %2641 = vmatpush1.bf16.msra.mxu1 %v3833_v14  ;;  %v3929_v14 = vld [vmem:[%s5497_s1 + $0x3e4] ss:$8 sps:$4 sm:$0xff]  }
  0xc0   :  { %2887 = vmatpush1.bf16.msra.mxu0 %v3836_v15  ;;  %2651 = vmatprep.subr.bf16.mxu1 %v3843_v16  ;;  %v3932_v15 = vld [vmem:[%s5497_s1 + $0x9e4] ss:$8 sps:$4 sm:$0xff]   ;;  %v3927_v16 = vld [vmem:[%s5497_s1 + $0x3e0] ss:$8 sps:$4 sm:$0xff]  }
  0xc1   :  { %2897 = vmatprep.subr.bf16.mxu0 %v3848_v17  ;;  %v3930_v17 = vld [vmem:[%s5497_s1 + $0x9e0] ss:$8 sps:$4 sm:$0xff]  }
  0xc2   :  { %2643 = vmatmul.mubr.bf16.vlgmr.msra.gmra.mrb[0].mxu1 %v3073_v22  ;;  %v3933_v22 = vld [vmem:[%s5497_s1 + $0x3f0] ss:$8 sps:$4 sm:$0xff]  }
  0xc3   :  { %2889 = vmatmul.mubr.bf16.vlgmr.msra.gmra.mrb[0].mxu0 %v3085_v23  ;;  %2652 = vmatpush1.bf16.msra.mxu1 %v3841_v19  ;;  %v3935_v19 = vld [vmem:[%s5497_s1 + $0x3f4] ss:$8 sps:$4 sm:$0xff]   ;;  %v3936_v23 = vld [vmem:[%s5497_s1 + $0x9f0] ss:$8 sps:$4 sm:$0xff]  }
  0xc4   :  { %2898 = vmatpush1.bf16.msra.mxu0 %v3846_v21  ;;  %2653 = vmatprep.subr.bf16.mxu1 %v3851_v26  ;;  %v3938_v21 = vld [vmem:[%s5497_s1 + $0x9f4] ss:$8 sps:$4 sm:$0xff]   ;;  %v3943_v26 = vld [vmem:[%s5497_s1 + $0x404] ss:$8 sps:$4 sm:$0xff]  }
  0xc5   :  { %2899 = vmatprep.subr.bf16.mxu0 %v3854_v18  ;;  %2683 = vmatprep.mubr.bf16.mxu1 %v3076_v20  ;;  %v3948_v18 = vld [vmem:[%s5497_s1 + $0xa04] ss:$8 sps:$4 sm:$0xff]  }
  0xc6   :  { %2929 = vmatprep.mubr.bf16.mxu0 %v3088_v27  ;;  %v5022_v20 = vld [vmem:[%s5498_s0 + $0x20] sm:$0xff]  ;;  %v3075_v27 = vcombine.low %v4822_v24, %v4822_v24  ;;  %v3951_v24 = vld [vmem:[%s5497_s1 + $0x414] ss:$8 sps:$4 sm:$0xff]  }
  0xc7   :  { %2654 = vmatpush1.bf16.msra.mxu1 %v3849_v28  ;;  %v3087_v28 = vcombine.low %v4827_v25, %v4827_v25  ;;  %v3954_v25 = vld [vmem:[%s5497_s1 + $0xa14] ss:$8 sps:$4 sm:$0xff]  }
  0xc8   :  { %2900 = vmatpush1.bf16.msra.mxu0 %v3852_v29  ;;  %2655 = vmatprep.subr.bf16.mxu1 %v3857_v30  ;;  %v5031_v29 = vld [vmem:[%s5498_s0 + $0x50] sm:$0xff]  ;;  %v3941_v30 = vld [vmem:[%s5497_s1 + $0x400] ss:$8 sps:$4 sm:$0xff]  }
  0xc9   :  { %2901 = vmatprep.subr.bf16.mxu0 %v3860_v31  ;;  %v3946_v31 = vld [vmem:[%s5497_s1 + $0xa00] ss:$8 sps:$4 sm:$0xff]  }
  0xcb   :  { %2656 = vmatpush1.bf16.msra.mxu1 %v3855_v32  ;;  %v3078_v32 = vcombine.high %v5022_v20, %v5022_v20 }
  0xcc   :  { %2902 = vmatpush1.bf16.msra.mxu0 %v3858_v33  ;;  %2657 = vmatprep.subr.bf16.mxu1 %v3863_v34  ;;  %v3090_v33 = vcombine.high %v5031_v29, %v5031_v29  ;;  %v3949_v34 = vld [vmem:[%s5497_s1 + $0x410] ss:$8 sps:$4 sm:$0xff]  }
  0xcd   :  { %2903 = vmatprep.subr.bf16.mxu0 %v3866_v35  ;;  %v3952_v35 = vld [vmem:[%s5497_s1 + $0xa10] ss:$8 sps:$4 sm:$0xff]  }
  0xcf   :  { %2658 = vmatpush1.bf16.msra.mxu1 %v3861_v36  ;;  %v3957_v36 = vld [vmem:[%s5497_s1 + $0x424] ss:$8 sps:$4 sm:$0xff]  }
  0xd0   :  { %2904 = vmatpush1.bf16.msra.mxu0 %v3864_v37  ;;  %2659 = vmatprep.subr.bf16.mxu1 %v3869_v38  ;;  %v3960_v37 = vld [vmem:[%s5497_s1 + $0xa24] ss:$8 sps:$4 sm:$0xff]   ;;  %v3955_v38 = vld [vmem:[%s5497_s1 + $0x420] ss:$8 sps:$4 sm:$0xff]  }
  0xd1   :  { %2905 = vmatprep.subr.bf16.mxu0 %v3872_v39  ;;  %v3958_v39 = vld [vmem:[%s5497_s1 + $0xa20] ss:$8 sps:$4 sm:$0xff]  }
  0xd3   :  { %2660 = vmatpush1.bf16.msra.mxu1 %v3867_v40  ;;  %v3963_v40 = vld [vmem:[%s5497_s1 + $0x434] ss:$8 sps:$4 sm:$0xff]  }
  0xd4   :  { %2906 = vmatpush1.bf16.msra.mxu0 %v3870_v41  ;;  %2661 = vmatprep.subr.bf16.mxu1 %v3875_v42  ;;  %v3966_v41 = vld [vmem:[%s5497_s1 + $0xa34] ss:$8 sps:$4 sm:$0xff]   ;;  %v3961_v42 = vld [vmem:[%s5497_s1 + $0x430] ss:$8 sps:$4 sm:$0xff]  }
  0xd5   :  { %2907 = vmatprep.subr.bf16.mxu0 %v3878_v43  ;;  %v3964_v43 = vld [vmem:[%s5497_s1 + $0xa30] ss:$8 sps:$4 sm:$0xff]  }
  0xd7   :  { %2662 = vmatpush1.bf16.msra.mxu1 %v3873_v44  ;;  %v3969_v44 = vld [vmem:[%s5497_s1 + $0x444] ss:$8 sps:$4 sm:$0xff]  }
  0xd8   :  { %2908 = vmatpush1.bf16.msra.mxu0 %v3876_v45  ;;  %2663 = vmatprep.subr.bf16.mxu1 %v3881_v46  ;;  %v3972_v45 = vld [vmem:[%s5497_s1 + $0xa44] ss:$8 sps:$4 sm:$0xff]   ;;  %v3967_v46 = vld [vmem:[%s5497_s1 + $0x440] ss:$8 sps:$4 sm:$0xff]  }
  0xd9   :  { %2909 = vmatprep.subr.bf16.mxu0 %v3884_v47  ;;  %v3970_v47 = vld [vmem:[%s5497_s1 + $0xa40] ss:$8 sps:$4 sm:$0xff]  }
  0xdb   :  { %2664 = vmatpush1.bf16.msra.mxu1 %v3879_v48  ;;  %v3975_v48 = vld [vmem:[%s5497_s1 + $0x454] ss:$8 sps:$4 sm:$0xff]  }
  0xdc   :  { %2910 = vmatpush1.bf16.msra.mxu0 %v3882_v49  ;;  %2665 = vmatprep.subr.bf16.mxu1 %v3887_v50  ;;  %v3978_v49 = vld [vmem:[%s5497_s1 + $0xa54] ss:$8 sps:$4 sm:$0xff]   ;;  %v3973_v50 = vld [vmem:[%s5497_s1 + $0x450] ss:$8 sps:$4 sm:$0xff]  }
  0xdd   :  { %2911 = vmatprep.subr.bf16.mxu0 %v3890_v51  ;;  %v3976_v51 = vld [vmem:[%s5497_s1 + $0xa50] ss:$8 sps:$4 sm:$0xff]  }
  0xdf   :  { %2666 = vmatpush1.bf16.msra.mxu1 %v3885_v52  ;;  %v3981_v52 = vld [vmem:[%s5497_s1 + $0x464] ss:$8 sps:$4 sm:$0xff]  }
  0xe0   :  { %2912 = vmatpush1.bf16.msra.mxu0 %v3888_v53  ;;  %2667 = vmatprep.subr.bf16.mxu1 %v3893_v54  ;;  %v3984_v53 = vld [vmem:[%s5497_s1 + $0xa64] ss:$8 sps:$4 sm:$0xff]   ;;  %v3979_v54 = vld [vmem:[%s5497_s1 + $0x460] ss:$8 sps:$4 sm:$0xff]  }
  0xe1   :  { %2913 = vmatprep.subr.bf16.mxu0 %v3896_v55  ;;  %v3982_v55 = vld [vmem:[%s5497_s1 + $0xa60] ss:$8 sps:$4 sm:$0xff]  }
  0xe3   :  { %2668 = vmatpush1.bf16.msra.mxu1 %v3891_v56  ;;  %v3987_v56 = vld [vmem:[%s5497_s1 + $0x474] ss:$8 sps:$4 sm:$0xff]  }
  0xe4   :  { %2914 = vmatpush1.bf16.msra.mxu0 %v3894_v57  ;;  %2669 = vmatprep.subr.bf16.mxu1 %v3899_v58  ;;  %v3990_v57 = vld [vmem:[%s5497_s1 + $0xa74] ss:$8 sps:$4 sm:$0xff]   ;;  %v3985_v58 = vld [vmem:[%s5497_s1 + $0x470] ss:$8 sps:$4 sm:$0xff]  }
  0xe5   :  { %2915 = vmatprep.subr.bf16.mxu0 %v3902_v59  ;;  %v3988_v59 = vld [vmem:[%s5497_s1 + $0xa70] ss:$8 sps:$4 sm:$0xff]  }
  0xe7   :  { %2670 = vmatpush1.bf16.msra.mxu1 %v3897_v60  ;;  %v3993_v60 = vld [vmem:[%s5497_s1 + $0x484] ss:$8 sps:$4 sm:$0xff]  }
  0xe8   :  { %2916 = vmatpush1.bf16.msra.mxu0 %v3900_v61  ;;  %2671 = vmatprep.subr.bf16.mxu1 %v3905_v62  ;;  %v3996_v61 = vld [vmem:[%s5497_s1 + $0xa84] ss:$8 sps:$4 sm:$0xff]   ;;  %v3991_v62 = vld [vmem:[%s5497_s1 + $0x480] ss:$8 sps:$4 sm:$0xff]  }
  0xe9   :  { %2917 = vmatprep.subr.bf16.mxu0 %v3908_v63  ;;  %v3994_v63 = vld [vmem:[%s5497_s1 + $0xa80] ss:$8 sps:$4 sm:$0xff]  }
  0xeb   :  { %2672 = vmatpush1.bf16.msra.mxu1 %v3903_v0  ;;  %v3999_v0 = vld [vmem:[%s5497_s1 + $0x494] ss:$8 sps:$4 sm:$0xff]  }
  0xec   :  { %2918 = vmatpush1.bf16.msra.mxu0 %v3906_v1  ;;  %2673 = vmatprep.subr.bf16.mxu1 %v3911_v2  ;;  %v4002_v1 = vld [vmem:[%s5497_s1 + $0xa94] ss:$8 sps:$4 sm:$0xff]   ;;  %v3997_v2 = vld [vmem:[%s5497_s1 + $0x490] ss:$8 sps:$4 sm:$0xff]  }
  0xed   :  { %2919 = vmatprep.subr.bf16.mxu0 %v3914_v3  ;;  %v4000_v3 = vld [vmem:[%s5497_s1 + $0xa90] ss:$8 sps:$4 sm:$0xff]  }
  0xef   :  { %2674 = vmatpush1.bf16.msra.mxu1 %v3909_v4  ;;  %v4005_v4 = vld [vmem:[%s5497_s1 + $0x4a4] ss:$8 sps:$4 sm:$0xff]  }
  0xf0   :  { %2920 = vmatpush1.bf16.msra.mxu0 %v3912_v5  ;;  %2675 = vmatprep.subr.bf16.mxu1 %v3917_v6  ;;  %v4008_v5 = vld [vmem:[%s5497_s1 + $0xaa4] ss:$8 sps:$4 sm:$0xff]   ;;  %v4003_v6 = vld [vmem:[%s5497_s1 + $0x4a0] ss:$8 sps:$4 sm:$0xff]  }
  0xf1   :  { %2921 = vmatprep.subr.bf16.mxu0 %v3920_v7  ;;  %v4006_v7 = vld [vmem:[%s5497_s1 + $0xaa0] ss:$8 sps:$4 sm:$0xff]  }
  0xf3   :  { %2676 = vmatpush1.bf16.msra.mxu1 %v3915_v8  ;;  %v4011_v8 = vld [vmem:[%s5497_s1 + $0x4b4] ss:$8 sps:$4 sm:$0xff]  }
  0xf4   :  { %2922 = vmatpush1.bf16.msra.mxu0 %v3918_v9  ;;  %2677 = vmatprep.subr.bf16.mxu1 %v3923_v10  ;;  %v4014_v9 = vld [vmem:[%s5497_s1 + $0xab4] ss:$8 sps:$4 sm:$0xff]   ;;  %v4009_v10 = vld [vmem:[%s5497_s1 + $0x4b0] ss:$8 sps:$4 sm:$0xff]  }
  0xf5   :  { %2923 = vmatprep.subr.bf16.mxu0 %v3926_v11  ;;  %v4012_v11 = vld [vmem:[%s5497_s1 + $0xab0] ss:$8 sps:$4 sm:$0xff]  }
  0xf7   :  { %2678 = vmatpush1.bf16.msra.mxu1 %v3921_v12  ;;  %v4017_v12 = vld [vmem:[%s5497_s1 + $0x4c4] ss:$8 sps:$4 sm:$0xff]  }
  0xf8   :  { %2924 = vmatpush1.bf16.msra.mxu0 %v3924_v13  ;;  %2679 = vmatprep.subr.bf16.mxu1 %v3929_v14  ;;  %v4020_v13 = vld [vmem:[%s5497_s1 + $0xac4] ss:$8 sps:$4 sm:$0xff]   ;;  %v4015_v14 = vld [vmem:[%s5497_s1 + $0x4c0] ss:$8 sps:$4 sm:$0xff]  }
  0xf9   :  { %2925 = vmatprep.subr.bf16.mxu0 %v3932_v15  ;;  %v4018_v15 = vld [vmem:[%s5497_s1 + $0xac0] ss:$8 sps:$4 sm:$0xff]  }
  0xfb   :  { %2680 = vmatpush1.bf16.msra.mxu1 %v3927_v16  ;;  %v4023_v16 = vld [vmem:[%s5497_s1 + $0x4d4] ss:$8 sps:$4 sm:$0xff]  }
  0xfc   :  { %2926 = vmatpush1.bf16.msra.mxu0 %v3930_v17  ;;  %2681 = vmatprep.subr.bf16.mxu1 %v3935_v19  ;;  %v4026_v17 = vld [vmem:[%s5497_s1 + $0xad4] ss:$8 sps:$4 sm:$0xff]   ;;  %v4021_v19 = vld [vmem:[%s5497_s1 + $0x4d0] ss:$8 sps:$4 sm:$0xff]  }
  0xfd   :  { %2927 = vmatprep.subr.bf16.mxu0 %v3938_v21  ;;  %v4024_v21 = vld [vmem:[%s5497_s1 + $0xad0] ss:$8 sps:$4 sm:$0xff]  }
  0xff   :  { %2682 = vmatpush1.bf16.msra.mxu1 %v3933_v22  ;;  %v4029_v22 = vld [vmem:[%s5497_s1 + $0x4e4] ss:$8 sps:$4 sm:$0xff]  }
 0x100   :  { %2928 = vmatpush1.bf16.msra.mxu0 %v3936_v23  ;;  %2692 = vmatprep.subr.bf16.mxu1 %v3943_v26  ;;  %v4032_v23 = vld [vmem:[%s5497_s1 + $0xae4] ss:$8 sps:$4 sm:$0xff]   ;;  %v4027_v26 = vld [vmem:[%s5497_s1 + $0x4e0] ss:$8 sps:$4 sm:$0xff]  }
 0x101   :  { %2938 = vmatprep.subr.bf16.mxu0 %v3948_v18  ;;  %v4030_v18 = vld [vmem:[%s5497_s1 + $0xae0] ss:$8 sps:$4 sm:$0xff]  }
 0x102   :  { %2684 = vmatmul.mubr.bf16.vlgmr.msra.gmra.mrb[0].mxu1 %v3075_v27  ;;  %v4035_v27 = vld [vmem:[%s5497_s1 + $0x4f4] ss:$8 sps:$4 sm:$0xff]  }
 0x103   :  { %2930 = vmatmul.mubr.bf16.vlgmr.msra.gmra.mrb[0].mxu0 %v3087_v28  ;;  %2693 = vmatpush1.bf16.msra.mxu1 %v3941_v30  ;;  %v4038_v28 = vld [vmem:[%s5497_s1 + $0xaf4] ss:$8 sps:$4 sm:$0xff]   ;;  %v4033_v30 = vld [vmem:[%s5497_s1 + $0x4f0] ss:$8 sps:$4 sm:$0xff]  }
 0x104   :  { %2939 = vmatpush1.bf16.msra.mxu0 %v3946_v31  ;;  %2694 = vmatprep.subr.bf16.mxu1 %v3951_v24  ;;  %v4036_v31 = vld [vmem:[%s5497_s1 + $0xaf0] ss:$8 sps:$4 sm:$0xff]   ;;  %v4043_v24 = vld [vmem:[%s5497_s1 + $0x504] ss:$8 sps:$4 sm:$0xff]  }
 0x105   :  { %2940 = vmatprep.subr.bf16.mxu0 %v3954_v25  ;;  %2724 = vmatprep.mubr.bf16.mxu1 %v3078_v32  ;;  %v4048_v25 = vld [vmem:[%s5497_s1 + $0xb04] ss:$8 sps:$4 sm:$0xff]   ;;  %v3077_v32 = vcombine.low %v5022_v20, %v5022_v20  ;;  %v4046_v20 = vld [vmem:[%s5497_s1 + $0xb00] ss:$8 sps:$4 sm:$0xff]  }
 0x106   :  { %2970 = vmatprep.mubr.bf16.mxu0 %v3090_v33  ;;  %v3089_v33 = vcombine.low %v5031_v29, %v5031_v29  ;;  %v4051_v29 = vld [vmem:[%s5497_s1 + $0x514] ss:$8 sps:$4 sm:$0xff]  }
 0x107   :  { %2695 = vmatpush1.bf16.msra.mxu1 %v3949_v34  ;;  %v5236_v34 = vld [vmem:[%s5498_s0 + $0x28] sm:$0xff] }
 0x108   :  { %2941 = vmatpush1.bf16.msra.mxu0 %v3952_v35  ;;  %2696 = vmatprep.subr.bf16.mxu1 %v3957_v36  ;;  %v5241_v35 = vld [vmem:[%s5498_s0 + $0x58] sm:$0xff]  ;;  %v4041_v36 = vld [vmem:[%s5497_s1 + $0x500] ss:$8 sps:$4 sm:$0xff]  }
 0x109   :  { %2942 = vmatprep.subr.bf16.mxu0 %v3960_v37  ;;  %v4054_v37 = vld [vmem:[%s5497_s1 + $0xb14] ss:$8 sps:$4 sm:$0xff]  }
 0x10b   :  { %2697 = vmatpush1.bf16.msra.mxu1 %v3955_v38  ;;  %v3080_v38 = vcombine.high %v5236_v34, %v5236_v34 }
 0x10c   :  { %2943 = vmatpush1.bf16.msra.mxu0 %v3958_v39  ;;  %2698 = vmatprep.subr.bf16.mxu1 %v3963_v40  ;;  %v3092_v39 = vcombine.high %v5241_v35, %v5241_v35  ;;  %v4049_v40 = vld [vmem:[%s5497_s1 + $0x510] ss:$8 sps:$4 sm:$0xff]  }
 0x10d   :  { %2944 = vmatprep.subr.bf16.mxu0 %v3966_v41  ;;  %v4052_v41 = vld [vmem:[%s5497_s1 + $0xb10] ss:$8 sps:$4 sm:$0xff]  }
 0x10f   :  { %2699 = vmatpush1.bf16.msra.mxu1 %v3961_v42  ;;  %v4057_v42 = vld [vmem:[%s5497_s1 + $0x524] ss:$8 sps:$4 sm:$0xff]  }
 0x110   :  { %2945 = vmatpush1.bf16.msra.mxu0 %v3964_v43  ;;  %2700 = vmatprep.subr.bf16.mxu1 %v3969_v44  ;;  %v4060_v43 = vld [vmem:[%s5497_s1 + $0xb24] ss:$8 sps:$4 sm:$0xff]   ;;  %v4055_v44 = vld [vmem:[%s5497_s1 + $0x520] ss:$8 sps:$4 sm:$0xff]  }
 0x111   :  { %2946 = vmatprep.subr.bf16.mxu0 %v3972_v45  ;;  %v4058_v45 = vld [vmem:[%s5497_s1 + $0xb20] ss:$8 sps:$4 sm:$0xff]  }
 0x113   :  { %2701 = vmatpush1.bf16.msra.mxu1 %v3967_v46  ;;  %v4063_v46 = vld [vmem:[%s5497_s1 + $0x534] ss:$8 sps:$4 sm:$0xff]  }
 0x114   :  { %2947 = vmatpush1.bf16.msra.mxu0 %v3970_v47  ;;  %2702 = vmatprep.subr.bf16.mxu1 %v3975_v48  ;;  %v4066_v47 = vld [vmem:[%s5497_s1 + $0xb34] ss:$8 sps:$4 sm:$0xff]   ;;  %v4061_v48 = vld [vmem:[%s5497_s1 + $0x530] ss:$8 sps:$4 sm:$0xff]  }
 0x115   :  { %2948 = vmatprep.subr.bf16.mxu0 %v3978_v49  ;;  %v4064_v49 = vld [vmem:[%s5497_s1 + $0xb30] ss:$8 sps:$4 sm:$0xff]  }
 0x117   :  { %2703 = vmatpush1.bf16.msra.mxu1 %v3973_v50  ;;  %v4069_v50 = vld [vmem:[%s5497_s1 + $0x544] ss:$8 sps:$4 sm:$0xff]  }
 0x118   :  { %2949 = vmatpush1.bf16.msra.mxu0 %v3976_v51  ;;  %2704 = vmatprep.subr.bf16.mxu1 %v3981_v52  ;;  %v4072_v51 = vld [vmem:[%s5497_s1 + $0xb44] ss:$8 sps:$4 sm:$0xff]   ;;  %v4067_v52 = vld [vmem:[%s5497_s1 + $0x540] ss:$8 sps:$4 sm:$0xff]  }
 0x119   :  { %2950 = vmatprep.subr.bf16.mxu0 %v3984_v53  ;;  %v4070_v53 = vld [vmem:[%s5497_s1 + $0xb40] ss:$8 sps:$4 sm:$0xff]  }
 0x11b   :  { %2705 = vmatpush1.bf16.msra.mxu1 %v3979_v54  ;;  %v4075_v54 = vld [vmem:[%s5497_s1 + $0x554] ss:$8 sps:$4 sm:$0xff]  }
 0x11c   :  { %2951 = vmatpush1.bf16.msra.mxu0 %v3982_v55  ;;  %2706 = vmatprep.subr.bf16.mxu1 %v3987_v56  ;;  %v4078_v55 = vld [vmem:[%s5497_s1 + $0xb54] ss:$8 sps:$4 sm:$0xff]   ;;  %v4073_v56 = vld [vmem:[%s5497_s1 + $0x550] ss:$8 sps:$4 sm:$0xff]  }
 0x11d   :  { %2952 = vmatprep.subr.bf16.mxu0 %v3990_v57  ;;  %v4076_v57 = vld [vmem:[%s5497_s1 + $0xb50] ss:$8 sps:$4 sm:$0xff]  }
 0x11f   :  { %2707 = vmatpush1.bf16.msra.mxu1 %v3985_v58  ;;  %v4081_v58 = vld [vmem:[%s5497_s1 + $0x564] ss:$8 sps:$4 sm:$0xff]  }
 0x120   :  { %2953 = vmatpush1.bf16.msra.mxu0 %v3988_v59  ;;  %2708 = vmatprep.subr.bf16.mxu1 %v3993_v60  ;;  %v4084_v59 = vld [vmem:[%s5497_s1 + $0xb64] ss:$8 sps:$4 sm:$0xff]   ;;  %v4079_v60 = vld [vmem:[%s5497_s1 + $0x560] ss:$8 sps:$4 sm:$0xff]  }
 0x121   :  { %2954 = vmatprep.subr.bf16.mxu0 %v3996_v61  ;;  %v4082_v61 = vld [vmem:[%s5497_s1 + $0xb60] ss:$8 sps:$4 sm:$0xff]  }
 0x123   :  { %2709 = vmatpush1.bf16.msra.mxu1 %v3991_v62  ;;  %v4087_v62 = vld [vmem:[%s5497_s1 + $0x574] ss:$8 sps:$4 sm:$0xff]  }
 0x124   :  { %2955 = vmatpush1.bf16.msra.mxu0 %v3994_v63  ;;  %2710 = vmatprep.subr.bf16.mxu1 %v3999_v0  ;;  %v4090_v63 = vld [vmem:[%s5497_s1 + $0xb74] ss:$8 sps:$4 sm:$0xff]   ;;  %v4085_v0 = vld [vmem:[%s5497_s1 + $0x570] ss:$8 sps:$4 sm:$0xff]  }
 0x125   :  { %2956 = vmatprep.subr.bf16.mxu0 %v4002_v1  ;;  %v4088_v1 = vld [vmem:[%s5497_s1 + $0xb70] ss:$8 sps:$4 sm:$0xff]  }
 0x127   :  { %2711 = vmatpush1.bf16.msra.mxu1 %v3997_v2  ;;  %v4093_v2 = vld [vmem:[%s5497_s1 + $0x584] ss:$8 sps:$4 sm:$0xff]  }
 0x128   :  { %2957 = vmatpush1.bf16.msra.mxu0 %v4000_v3  ;;  %2712 = vmatprep.subr.bf16.mxu1 %v4005_v4  ;;  %v4096_v3 = vld [vmem:[%s5497_s1 + $0xb84] ss:$8 sps:$4 sm:$0xff]   ;;  %v4091_v4 = vld [vmem:[%s5497_s1 + $0x580] ss:$8 sps:$4 sm:$0xff]  }
 0x129   :  { %2958 = vmatprep.subr.bf16.mxu0 %v4008_v5  ;;  %v4094_v5 = vld [vmem:[%s5497_s1 + $0xb80] ss:$8 sps:$4 sm:$0xff]  }
 0x12b   :  { %2713 = vmatpush1.bf16.msra.mxu1 %v4003_v6  ;;  %v4099_v6 = vld [vmem:[%s5497_s1 + $0x594] ss:$8 sps:$4 sm:$0xff]  }
 0x12c   :  { %2959 = vmatpush1.bf16.msra.mxu0 %v4006_v7  ;;  %2714 = vmatprep.subr.bf16.mxu1 %v4011_v8  ;;  %v4102_v7 = vld [vmem:[%s5497_s1 + $0xb94] ss:$8 sps:$4 sm:$0xff]   ;;  %v4097_v8 = vld [vmem:[%s5497_s1 + $0x590] ss:$8 sps:$4 sm:$0xff]  }
 0x12d   :  { %2960 = vmatprep.subr.bf16.mxu0 %v4014_v9  ;;  %v4100_v9 = vld [vmem:[%s5497_s1 + $0xb90] ss:$8 sps:$4 sm:$0xff]  }
 0x12f   :  { %2715 = vmatpush1.bf16.msra.mxu1 %v4009_v10  ;;  %v4105_v10 = vld [vmem:[%s5497_s1 + $0x5a4] ss:$8 sps:$4 sm:$0xff]  }
 0x130   :  { %2961 = vmatpush1.bf16.msra.mxu0 %v4012_v11  ;;  %2716 = vmatprep.subr.bf16.mxu1 %v4017_v12  ;;  %v4108_v11 = vld [vmem:[%s5497_s1 + $0xba4] ss:$8 sps:$4 sm:$0xff]   ;;  %v4103_v12 = vld [vmem:[%s5497_s1 + $0x5a0] ss:$8 sps:$4 sm:$0xff]  }
 0x131   :  { %2962 = vmatprep.subr.bf16.mxu0 %v4020_v13  ;;  %v4106_v13 = vld [vmem:[%s5497_s1 + $0xba0] ss:$8 sps:$4 sm:$0xff]  }
 0x133   :  { %2717 = vmatpush1.bf16.msra.mxu1 %v4015_v14  ;;  %v4111_v14 = vld [vmem:[%s5497_s1 + $0x5b4] ss:$8 sps:$4 sm:$0xff]  }
 0x134   :  { %2963 = vmatpush1.bf16.msra.mxu0 %v4018_v15  ;;  %2718 = vmatprep.subr.bf16.mxu1 %v4023_v16  ;;  %v4114_v15 = vld [vmem:[%s5497_s1 + $0xbb4] ss:$8 sps:$4 sm:$0xff]   ;;  %v4109_v16 = vld [vmem:[%s5497_s1 + $0x5b0] ss:$8 sps:$4 sm:$0xff]  }
 0x135   :  { %2964 = vmatprep.subr.bf16.mxu0 %v4026_v17  ;;  %v4112_v17 = vld [vmem:[%s5497_s1 + $0xbb0] ss:$8 sps:$4 sm:$0xff]  }
 0x137   :  { %2719 = vmatpush1.bf16.msra.mxu1 %v4021_v19  ;;  %v4117_v19 = vld [vmem:[%s5497_s1 + $0x5c4] ss:$8 sps:$4 sm:$0xff]  }
 0x138   :  { %2965 = vmatpush1.bf16.msra.mxu0 %v4024_v21  ;;  %2720 = vmatprep.subr.bf16.mxu1 %v4029_v22  ;;  %v4120_v21 = vld [vmem:[%s5497_s1 + $0xbc4] ss:$8 sps:$4 sm:$0xff]   ;;  %v4115_v22 = vld [vmem:[%s5497_s1 + $0x5c0] ss:$8 sps:$4 sm:$0xff]  }
 0x139   :  { %2966 = vmatprep.subr.bf16.mxu0 %v4032_v23  ;;  %v4118_v23 = vld [vmem:[%s5497_s1 + $0xbc0] ss:$8 sps:$4 sm:$0xff]  }
 0x13b   :  { %2721 = vmatpush1.bf16.msra.mxu1 %v4027_v26  ;;  %v4123_v26 = vld [vmem:[%s5497_s1 + $0x5d4] ss:$8 sps:$4 sm:$0xff]  }
 0x13c   :  { %2967 = vmatpush1.bf16.msra.mxu0 %v4030_v18  ;;  %2722 = vmatprep.subr.bf16.mxu1 %v4035_v27  ;;  %v4126_v18 = vld [vmem:[%s5497_s1 + $0xbd4] ss:$8 sps:$4 sm:$0xff]   ;;  %v4121_v27 = vld [vmem:[%s5497_s1 + $0x5d0] ss:$8 sps:$4 sm:$0xff]  }
 0x13d   :  { %2968 = vmatprep.subr.bf16.mxu0 %v4038_v28  ;;  %v4124_v28 = vld [vmem:[%s5497_s1 + $0xbd0] ss:$8 sps:$4 sm:$0xff]  }
 0x13f   :  { %2723 = vmatpush1.bf16.msra.mxu1 %v4033_v30  ;;  %v4129_v30 = vld [vmem:[%s5497_s1 + $0x5e4] ss:$8 sps:$4 sm:$0xff]  }
 0x140   :  { %2969 = vmatpush1.bf16.msra.mxu0 %v4036_v31  ;;  %2733 = vmatprep.subr.bf16.mxu1 %v4043_v24  ;;  %v4132_v31 = vld [vmem:[%s5497_s1 + $0xbe4] ss:$8 sps:$4 sm:$0xff]   ;;  %v4127_v24 = vld [vmem:[%s5497_s1 + $0x5e0] ss:$8 sps:$4 sm:$0xff]  }
 0x141   :  { %2979 = vmatprep.subr.bf16.mxu0 %v4048_v25  ;;  %v4130_v25 = vld [vmem:[%s5497_s1 + $0xbe0] ss:$8 sps:$4 sm:$0xff]  }
 0x142   :  { %2725 = vmatmul.mubr.bf16.vlgmr.msra.gmra.mrb[0].mxu1 %v3077_v32  ;;  %v4135_v32 = vld [vmem:[%s5497_s1 + $0x5f4] ss:$8 sps:$4 sm:$0xff]  }
 0x143   :  { %2971 = vmatmul.mubr.bf16.vlgmr.msra.gmra.mrb[0].mxu0 %v3089_v33  ;;  %2734 = vmatpush1.bf16.msra.mxu1 %v4041_v36  ;;  %v4138_v33 = vld [vmem:[%s5497_s1 + $0xbf4] ss:$8 sps:$4 sm:$0xff]   ;;  %v4133_v36 = vld [vmem:[%s5497_s1 + $0x5f0] ss:$8 sps:$4 sm:$0xff]  }
 0x144   :  { %2980 = vmatpush1.bf16.msra.mxu0 %v4046_v20  ;;  %2735 = vmatprep.subr.bf16.mxu1 %v4051_v29  ;;  %v4136_v20 = vld [vmem:[%s5497_s1 + $0xbf0] ss:$8 sps:$4 sm:$0xff]   ;;  %v4145_v29 = vld [vmem:[%s5497_s1 + $0xc04] ss:$8 sps:$4 sm:$0xff]  }
 0x145   :  { %2981 = vmatprep.subr.bf16.mxu0 %v4054_v37  ;;  %2765 = vmatprep.mubr.bf16.mxu1 %v3080_v38  ;;  %v3079_v37 = vcombine.low %v5236_v34, %v5236_v34  ;;  %v3091_v38 = vcombine.low %v5241_v35, %v5241_v35  ;;  %v4146_v34 = vld [vmem:[%s5497_s1 + $0xc10] ss:$8 sps:$4 sm:$0xff]   ;;  %v4151_v35 = vld [vmem:[%s5497_s1 + $0xc24] ss:$8 sps:$4 sm:$0xff]  }
 0x146   :  { %3011 = vmatprep.mubr.bf16.mxu0 %v3092_v39  ;;  %v4143_v39 = vld [vmem:[%s5497_s1 + $0xc00] ss:$8 sps:$4 sm:$0xff]  }
 0x147   :  { %2736 = vmatpush1.bf16.msra.mxu1 %v4049_v40  ;;  %v4148_v40 = vld [vmem:[%s5497_s1 + $0xc14] ss:$8 sps:$4 sm:$0xff]  }
 0x148   :  { %2982 = vmatpush1.bf16.msra.mxu0 %v4052_v41  ;;  %2737 = vmatprep.subr.bf16.mxu1 %v4057_v42  ;;  %v4168_v41 = vmov 0   ;;  %v4149_v42 = vld [vmem:[%s5497_s1 + $0xc20] ss:$8 sps:$4 sm:$0xff]  }
 0x149   :  { %2983 = vmatprep.subr.bf16.mxu0 %v4060_v43  ;;  %v4154_v43 = vld [vmem:[%s5497_s1 + $0xc34] ss:$8 sps:$4 sm:$0xff]  }
 0x14b   :  { %2738 = vmatpush1.bf16.msra.mxu1 %v4055_v44  ;;  %v4152_v44 = vld [vmem:[%s5497_s1 + $0xc30] ss:$8 sps:$4 sm:$0xff]  }
 0x14c   :  { %2984 = vmatpush1.bf16.msra.mxu0 %v4058_v45  ;;  %2739 = vmatprep.subr.bf16.mxu1 %v4063_v46  ;;  %v4157_v45 = vld [vmem:[%s5497_s1 + $0xc44] ss:$8 sps:$4 sm:$0xff]   ;;  %v4155_v46 = vld [vmem:[%s5497_s1 + $0xc40] ss:$8 sps:$4 sm:$0xff]  }
 0x14d   :  { %2985 = vmatprep.subr.bf16.mxu0 %v4066_v47  ;;  %v4160_v47 = vld [vmem:[%s5497_s1 + $0xc54] ss:$8 sps:$4 sm:$0xff]  }
 0x14f   :  { %2740 = vmatpush1.bf16.msra.mxu1 %v4061_v48  ;;  %v4158_v48 = vld [vmem:[%s5497_s1 + $0xc50] ss:$8 sps:$4 sm:$0xff]  }
 0x150   :  { %2986 = vmatpush1.bf16.msra.mxu0 %v4064_v49  ;;  %2741 = vmatprep.subr.bf16.mxu1 %v4069_v50  ;;  %v4163_v49 = vld [vmem:[%s5497_s1 + $0xc64] ss:$8 sps:$4 sm:$0xff]   ;;  %v4161_v50 = vld [vmem:[%s5497_s1 + $0xc60] ss:$8 sps:$4 sm:$0xff]  }
 0x151   :  { %2987 = vmatprep.subr.bf16.mxu0 %v4072_v51  ;;  %v4166_v51 = vld [vmem:[%s5497_s1 + $0xc74] ss:$8 sps:$4 sm:$0xff]  }
 0x153   :  { %2742 = vmatpush1.bf16.msra.mxu1 %v4067_v52  ;;  %v4164_v52 = vld [vmem:[%s5497_s1 + $0xc70] ss:$8 sps:$4 sm:$0xff]  }
 0x154   :  { %2988 = vmatpush1.bf16.msra.mxu0 %v4070_v53  ;;  %2743 = vmatprep.subr.bf16.mxu1 %v4075_v54  ;;  %v4167_v53 = vld [vmem:[%s5498_s0 + $0x60] ss:$0 sps:$4 sm:$0xff]  }
 0x155   :  { %2989 = vmatprep.subr.bf16.mxu0 %v4078_v55 }
 0x157   :  { %2744 = vmatpush1.bf16.msra.mxu1 %v4073_v56 }
 0x158   :  { %2990 = vmatpush1.bf16.msra.mxu0 %v4076_v57  ;;  %2745 = vmatprep.subr.bf16.mxu1 %v4081_v58  ;;  %v430_v58 = vlaneseq }
 0x159   :  { %2991 = vmatprep.subr.bf16.mxu0 %v4084_v59 }
 0x15a   :  { %v431_v59 = vshrl.u32 %v430_v58, 7 }
 0x15b   :  { %2746 = vmatpush1.bf16.msra.mxu1 %v4079_v60 }
 0x15c   :  { %2992 = vmatpush1.bf16.msra.mxu0 %v4082_v61  ;;  %2747 = vmatprep.subr.bf16.mxu1 %v4087_v62  ;;  %v432_v60 = vsub.s32 0, %v431_v59  ;;  %v428_v61 = vld [vmem:[%s5499_s2] sm:$0x3]  ;;  %v436_v62 = vsub.s32 1, %v431_v59 }
 0x15d   :  { %2993 = vmatprep.subr.bf16.mxu0 %v4090_v63 }
 0x15e   :  { %v433_v63 = vrot.slane %v428_v61, %v432_v60 }
 0x15f   :  { %2748 = vmatpush1.bf16.msra.mxu1 %v4085_v0  ;;  %v437_v0 = vrot.slane %v428_v61, %v436_v62 }
 0x160   :  { %2994 = vmatpush1.bf16.msra.mxu0 %v4088_v1  ;;  %2749 = vmatprep.subr.bf16.mxu1 %v4093_v2 }
 0x161   :  { %2995 = vmatprep.subr.bf16.mxu0 %v4096_v3 }
 0x163   :  { %2750 = vmatpush1.bf16.msra.mxu1 %v4091_v4 }
 0x164   :  { %2996 = vmatpush1.bf16.msra.mxu0 %v4094_v5  ;;  %2751 = vmatprep.subr.bf16.mxu1 %v4099_v6 }
 0x165   :  { %2997 = vmatprep.subr.bf16.mxu0 %v4102_v7 }
 0x167   :  { %2752 = vmatpush1.bf16.msra.mxu1 %v4097_v8 }
 0x168   :  { %2998 = vmatpush1.bf16.msra.mxu0 %v4100_v9  ;;  %2753 = vmatprep.subr.bf16.mxu1 %v4105_v10 }
 0x169   :  { %2999 = vmatprep.subr.bf16.mxu0 %v4108_v11 }
 0x16b   :  { %2754 = vmatpush1.bf16.msra.mxu1 %v4103_v12 }
 0x16c   :  { %3000 = vmatpush1.bf16.msra.mxu0 %v4106_v13  ;;  %2755 = vmatprep.subr.bf16.mxu1 %v4111_v14 }
 0x16d   :  { %3001 = vmatprep.subr.bf16.mxu0 %v4114_v15 }
 0x16f   :  { %2756 = vmatpush1.bf16.msra.mxu1 %v4109_v16 }
 0x170   :  { %3002 = vmatpush1.bf16.msra.mxu0 %v4112_v17  ;;  %2757 = vmatprep.subr.bf16.mxu1 %v4117_v19 }
 0x171   :  { %3003 = vmatprep.subr.bf16.mxu0 %v4120_v21 }
 0x173   :  { %2758 = vmatpush1.bf16.msra.mxu1 %v4115_v22 }
 0x174   :  { %3004 = vmatpush1.bf16.msra.mxu0 %v4118_v23  ;;  %2759 = vmatprep.subr.bf16.mxu1 %v4123_v26 }
 0x175   :  { %3005 = vmatprep.subr.bf16.mxu0 %v4126_v18 }
 0x177   :  { %2760 = vmatpush1.bf16.msra.mxu1 %v4121_v27 }
 0x178   :  { %3006 = vmatpush1.bf16.msra.mxu0 %v4124_v28  ;;  %2761 = vmatprep.subr.bf16.mxu1 %v4129_v30 }
 0x179   :  { %3007 = vmatprep.subr.bf16.mxu0 %v4132_v31 }
 0x17b   :  { %2762 = vmatpush1.bf16.msra.mxu1 %v4127_v24 }
 0x17c   :  { %3008 = vmatpush1.bf16.msra.mxu0 %v4130_v25  ;;  %2763 = vmatprep.subr.bf16.mxu1 %v4135_v32 }
 0x17d   :  { %3009 = vmatprep.subr.bf16.mxu0 %v4138_v33 }
 0x17f   :  { %2764 = vmatpush1.bf16.msra.mxu1 %v4133_v36 }
 0x180   :  { %3010 = vmatpush1.bf16.msra.mxu0 %v4136_v20 }
 0x181   :  { %3020 = vmatprep.subr.bf16.mxu0 %v4145_v29 }
 0x182   :  { %2766 = vmatmul.mubr.bf16.vlgmr.msra.gmra.mrb[0].mxu1 %v3079_v37 }
 0x183   :  { %3012 = vmatmul.mubr.bf16.vlgmr.msra.gmra.mrb[0].mxu0 %v3091_v38 }
 0x184   :  { %3021 = vmatpush1.bf16.msra.mxu0 %v4143_v39  ;;  %3052 = vmatprep.mubr.bf16.mxu0 %v4168_v41 }
 0x185   :  { %3022 = vmatprep.subr.bf16.mxu0 %v4148_v40 }
 0x188   :  { %3023 = vmatpush1.bf16.msra.mxu0 %v4146_v34 }
 0x189   :  { %3024 = vmatprep.subr.bf16.mxu0 %v4151_v35 }
 0x18c   :  { %3025 = vmatpush1.bf16.msra.mxu0 %v4149_v42 }
 0x18d   :  { %3026 = vmatprep.subr.bf16.mxu0 %v4154_v43 }
 0x190   :  { %3027 = vmatpush1.bf16.msra.mxu0 %v4152_v44 }
 0x191   :  { %3028 = vmatprep.subr.bf16.mxu0 %v4157_v45 }
 0x194   :  { %3029 = vmatpush1.bf16.msra.mxu0 %v4155_v46 }
 0x195   :  { %3030 = vmatprep.subr.bf16.mxu0 %v4160_v47 }
 0x198   :  { %3031 = vmatpush1.bf16.msra.mxu0 %v4158_v48 }
 0x199   :  { %3032 = vmatprep.subr.bf16.mxu0 %v4163_v49 }
 0x19c   :  { %3033 = vmatpush1.bf16.msra.mxu0 %v4161_v50 }
 0x19d   :  { %3034 = vmatprep.subr.bf16.mxu0 %v4166_v51 }
 0x1a0   :  { %3035 = vmatpush1.bf16.msra.mxu0 %v4164_v52 }
 0x1a3   :  { %3053 = vmatmul.mubr.bf16.vlgmr.msra.gmra.mrb[0].mxu0 %v4167_v53 }
 0x255   :  { %v2767_v54 = vpop.f32.mrb[0].mxu1 }
 0x256   :  { %v2769_v55 = vpop.f32.mrb[1].mxu1  ;;  %v3494_v1 = vadd.f32 %v2767_v54, %v433_v63 }
 0x257   :  { %v2771_v56 = vpop.f32.mrb[2].mxu1  ;;  %v3496_v2 = vadd.f32 %v2769_v55, %v437_v0 }
 0x258   :  { %v2772_v57 = vpop.f32.mrb[3].mxu1 }
 0x276   :  { %v3054_v3 = vpop.f32.mrb[0].mxu0 }
 0x277   :  { %v3495_v4 = vadd.f32 %v3494_v1, %v3054_v3  ;;  %v3056_v5 = vpop.f32.mrb[1].mxu0 }
 0x278   :  { %v3497_v6 = vadd.f32 %v3496_v2, %v3056_v5  ;;  %v3058_v7 = vpop.f32.mrb[2].mxu0 }
 0x279   :  { %v3061_v8 = vmax.f32 %v3495_v4, 0.0  ;;  %v3059_v9 = vpop.f32.mrb[3].mxu0 }
 0x27a   :  { %v3062_v10 = vmax.f32 %v3497_v6, 0.0 }
 0x27b   :  { %3063 = vst [vmem:[%s5500_s3] sm:$0xff] %v3061_v8 }
 0x27c   :  { %3064 = vst [vmem:[%s5500_s3 + $0x8] sm:$0xff] %v3062_v10 }

// kernel: fcn_forward.7
= control target key start
LH: loop header
LB: loop body
LE: loop exit
PB: predicated region body
PF: predicated region fallthrough
CT: control target
= control target key end

     0   :  { %s2666_s0 = inlined_call_operand.vmem [shape: bf16[8,2304], index: 0, kind: input, shape index: {}]   ;;  %s2667_s1 = inlined_call_operand.vmem [shape: bf16[2304,128], index: 1, kind: input, shape index: {}]   ;;  %s2668_s2 = inlined_call_operand.vmem [shape: f32[1,128], index: 2, kind: input, shape index: {}]   ;;  %s2669_s3 = inlined_call_operand.hbm [shape: f32[8,128], index: 3, kind: output, shape index: {}]  }
   0x1   :  { %v1985_v0 = vld [vmem:[%s2667_s1 + $0x40] sm:$0xff]   ;;  %v1989_v4 = vld [vmem:[%s2667_s1 + $0x48] sm:$0xff]   ;;  %v1993_v8 = vld [vmem:[%s2667_s1 + $0x50] sm:$0xff]  }
   0x2   :  { %v1986_v1 = vld [vmem:[%s2667_s1] sm:$0xff]   ;;  %1786 = vmatprep.subr.bf16.mxu0 %v1985_v0  ;;  %v1990_v5 = vld [vmem:[%s2667_s1 + $0x8] sm:$0xff]   ;;  %v1994_v9 = vld [vmem:[%s2667_s1 + $0x10] sm:$0xff]  }
   0x3   :  { %v1987_v2 = vld [vmem:[%s2667_s1 + $0xc0] sm:$0xff]   ;;  %1787 = vmatpush3.bf16.msra.mxu0 %v1986_v1  ;;  %v1991_v6 = vld [vmem:[%s2667_s1 + $0xc8] sm:$0xff]   ;;  %v1995_v10 = vld [vmem:[%s2667_s1 + $0xd0] sm:$0xff]  }
   0x4   :  { %v1988_v3 = vld [vmem:[%s2667_s1 + $0x80] sm:$0xff]   ;;  %1808 = vmatprep.subr.bf16.mxu1 %v1987_v2  ;;  %1788 = vmatprep.subr.bf16.mxu0 %v1989_v4  ;;  %v1992_v7 = vld [vmem:[%s2667_s1 + $0x88] sm:$0xff]   ;;  %v1996_v11 = vld [vmem:[%s2667_s1 + $0x90] sm:$0xff]  }
   0x5   :  { %1809 = vmatpush3.bf16.msra.mxu1 %v1988_v3  ;;  %v1997_v12 = vld [vmem:[%s2667_s1 + $0x58] sm:$0xff]   ;;  %v2001_v16 = vld [vmem:[%s2667_s1 + $0x60] sm:$0xff]   ;;  %v2005_v20 = vld [vmem:[%s2667_s1 + $0x68] sm:$0xff]  }
   0x6   :  { %1810 = vmatprep.subr.bf16.mxu1 %v1991_v6  ;;  %v1998_v13 = vld [vmem:[%s2667_s1 + $0x18] sm:$0xff]   ;;  %v2002_v17 = vld [vmem:[%s2667_s1 + $0x20] sm:$0xff]   ;;  %v2006_v21 = vld [vmem:[%s2667_s1 + $0x28] sm:$0xff]  }
   0x7   :  { %1789 = vmatpush3.bf16.msra.mxu0 %v1990_v5  ;;  %v1999_v14 = vld [vmem:[%s2667_s1 + $0xd8] sm:$0xff]   ;;  %v2003_v18 = vld [vmem:[%s2667_s1 + $0xe0] sm:$0xff]   ;;  %v2007_v22 = vld [vmem:[%s2667_s1 + $0xe8] sm:$0xff]  }
   0x8   :  { %1790 = vmatprep.subr.bf16.mxu0 %v1993_v8  ;;  %v2000_v15 = vld [vmem:[%s2667_s1 + $0x98] sm:$0xff]   ;;  %v2004_v19 = vld [vmem:[%s2667_s1 + $0xa0] sm:$0xff]   ;;  %v2008_v23 = vld [vmem:[%s2667_s1 + $0xa8] sm:$0xff]  }
   0x9   :  { %1811 = vmatpush3.bf16.msra.mxu1 %v1992_v7  ;;  %v2009_v24 = vld [vmem:[%s2667_s1 + $0x70] sm:$0xff]   ;;  %v2013_v28 = vld [vmem:[%s2667_s1 + $0x78] sm:$0xff]   ;;  %v16_v31 = vld [vmem:[%s2666_s0] sm:$0xff] }
   0xa   :  { %1812 = vmatprep.subr.bf16.mxu1 %v1995_v10  ;;  %v2010_v25 = vld [vmem:[%s2667_s1 + $0x30] sm:$0xff]   ;;  %v2014_v29 = vld [vmem:[%s2667_s1 + $0x38] sm:$0xff]   ;;  %v1624_v32 = vcombine.low %v16_v31, %v16_v31  ;;  %v1625_v33 = vcombine.high %v16_v31, %v16_v31  ;;  %v2019_v35 = vld [vmem:[%s2667_s1 + $0x140] sm:$0xff]  }
   0xb   :  { %1791 = vmatpush3.bf16.msra.mxu0 %v1994_v9  ;;  %v2011_v26 = vld [vmem:[%s2667_s1 + $0xf0] sm:$0xff]   ;;  %v2015_v30 = vld [vmem:[%s2667_s1 + $0xf8] sm:$0xff]   ;;  %v17_v36 = vld [vmem:[%s2666_s0 + $0x8] sm:$0xff] }
   0xc   :  { %1792 = vmatprep.subr.bf16.mxu0 %v1997_v12  ;;  %v2012_v27 = vld [vmem:[%s2667_s1 + $0xb0] sm:$0xff]   ;;  %v2018_v34 = vld [vmem:[%s2667_s1 + $0xb8] sm:$0xff]   ;;  %1279 = vmatprep.mubr.bf16.mxu0 %v1625_v33  ;;  %v1626_v37 = vcombine.low %v17_v36, %v17_v36  ;;  %v1627_v38 = vcombine.high %v17_v36, %v17_v36  ;;  %v2022_v39 = vld [vmem:[%s2667_s1 + $0x100] sm:$0xff]  }
   0xd   :  { %1813 = vmatpush3.bf16.msra.mxu1 %v1996_v11  ;;  %v2023_v40 = vld [vmem:[%s2667_s1 + $0x1c0] sm:$0xff]   ;;  %v2025_v42 = vld [vmem:[%s2667_s1 + $0x148] sm:$0xff]   ;;  %v2029_v46 = vld [vmem:[%s2667_s1 + $0x150] sm:$0xff]  }
   0xe   :  { %1814 = vmatprep.subr.bf16.mxu1 %v1999_v14  ;;  %1319 = vmatprep.mubr.bf16.mxu1 %v1627_v38  ;;  %v2024_v41 = vld [vmem:[%s2667_s1 + $0x180] sm:$0xff]   ;;  %v2026_v43 = vld [vmem:[%s2667_s1 + $0x108] sm:$0xff]   ;;  %v2030_v47 = vld [vmem:[%s2667_s1 + $0x110] sm:$0xff]  }
   0xf   :  { %1793 = vmatpush3.bf16.msra.mxu0 %v1998_v13  ;;  %v2027_v44 = vld [vmem:[%s2667_s1 + $0x1c8] sm:$0xff]   ;;  %v2031_v48 = vld [vmem:[%s2667_s1 + $0x1d0] sm:$0xff]   ;;  %v2033_v50 = vld [vmem:[%s2667_s1 + $0x158] sm:$0xff]  }
  0x10   :  { %1794 = vmatprep.subr.bf16.mxu0 %v2001_v16  ;;  %v2028_v45 = vld [vmem:[%s2667_s1 + $0x188] sm:$0xff]   ;;  %v2032_v49 = vld [vmem:[%s2667_s1 + $0x190] sm:$0xff]   ;;  %v2034_v51 = vld [vmem:[%s2667_s1 + $0x118] sm:$0xff]  }
  0x11   :  { %1815 = vmatpush3.bf16.msra.mxu1 %v2000_v15  ;;  %v2035_v52 = vld [vmem:[%s2667_s1 + $0x1d8] sm:$0xff]   ;;  %v2037_v54 = vld [vmem:[%s2667_s1 + $0x160] sm:$0xff]   ;;  %v2041_v58 = vld [vmem:[%s2667_s1 + $0x168] sm:$0xff]  }
  0x12   :  { %1816 = vmatprep.subr.bf16.mxu1 %v2003_v18  ;;  %v2036_v53 = vld [vmem:[%s2667_s1 + $0x198] sm:$0xff]   ;;  %v2038_v55 = vld [vmem:[%s2667_s1 + $0x120] sm:$0xff]   ;;  %v2042_v59 = vld [vmem:[%s2667_s1 + $0x128] sm:$0xff]  }
  0x13   :  { %1795 = vmatpush3.bf16.msra.mxu0 %v2002_v17  ;;  %v2039_v56 = vld [vmem:[%s2667_s1 + $0x1e0] sm:$0xff]   ;;  %v2043_v60 = vld [vmem:[%s2667_s1 + $0x1e8] sm:$0xff]   ;;  %v2045_v62 = vld [vmem:[%s2667_s1 + $0x170] sm:$0xff]  }
  0x14   :  { %1796 = vmatprep.subr.bf16.mxu0 %v2005_v20  ;;  %v2040_v57 = vld [vmem:[%s2667_s1 + $0x1a0] sm:$0xff]   ;;  %v2044_v61 = vld [vmem:[%s2667_s1 + $0x1a8] sm:$0xff]   ;;  %v2046_v63 = vld [vmem:[%s2667_s1 + $0x130] sm:$0xff]  }
  0x15   :  { %1817 = vmatpush3.bf16.msra.mxu1 %v2004_v19  ;;  %v2047_v0 = vld [vmem:[%s2667_s1 + $0x1f0] sm:$0xff]   ;;  %v2049_v2 = vld [vmem:[%s2667_s1 + $0x178] sm:$0xff]   ;;  %v2055_v9 = vld [vmem:[%s2667_s1 + $0x240] sm:$0xff]  }
  0x16   :  { %1818 = vmatprep.subr.bf16.mxu1 %v2007_v22  ;;  %v2048_v1 = vld [vmem:[%s2667_s1 + $0x1b0] sm:$0xff]   ;;  %v2050_v3 = vld [vmem:[%s2667_s1 + $0x138] sm:$0xff]   ;;  %v2058_v13 = vld [vmem:[%s2667_s1 + $0x200] sm:$0xff]  }
  0x17   :  { %1797 = vmatpush3.bf16.msra.mxu0 %v2006_v21  ;;  %v2051_v4 = vld [vmem:[%s2667_s1 + $0x1f8] sm:$0xff]   ;;  %v18_v5 = vld [vmem:[%s2666_s0 + $0x10] sm:$0xff]  ;;  %v2059_v14 = vld [vmem:[%s2667_s1 + $0x2c0] sm:$0xff]  }
  0x18   :  { %1798 = vmatprep.subr.bf16.mxu0 %v2009_v24  ;;  %v1628_v6 = vcombine.low %v18_v5, %v18_v5  ;;  %v1629_v7 = vcombine.high %v18_v5, %v18_v5  ;;  %v2054_v8 = vld [vmem:[%s2667_s1 + $0x1b8] sm:$0xff]   ;;  %v2060_v15 = vld [vmem:[%s2667_s1 + $0x280] sm:$0xff]   ;;  %v2061_v16 = vld [vmem:[%s2667_s1 + $0x248] sm:$0xff]  }
  0x19   :  { %1819 = vmatpush3.bf16.msra.mxu1 %v2008_v23  ;;  %v19_v10 = vld [vmem:[%s2666_s0 + $0x18] sm:$0xff]  ;;  %v2062_v17 = vld [vmem:[%s2667_s1 + $0x208] sm:$0xff]   ;;  %v2065_v20 = vld [vmem:[%s2667_s1 + $0x250] sm:$0xff]  }
  0x1a   :  { %1820 = vmatprep.subr.bf16.mxu1 %v2011_v26  ;;  %v1630_v11 = vcombine.low %v19_v10, %v19_v10  ;;  %v1631_v12 = vcombine.high %v19_v10, %v19_v10  ;;  %v2063_v18 = vld [vmem:[%s2667_s1 + $0x2c8] sm:$0xff]   ;;  %v2066_v21 = vld [vmem:[%s2667_s1 + $0x210] sm:$0xff]   ;;  %v2069_v24 = vld [vmem:[%s2667_s1 + $0x258] sm:$0xff]  }
  0x1b   :  { %1799 = vmatpush3.bf16.msra.mxu0 %v2010_v25  ;;  %v2064_v19 = vld [vmem:[%s2667_s1 + $0x288] sm:$0xff]   ;;  %v2067_v22 = vld [vmem:[%s2667_s1 + $0x2d0] sm:$0xff]   ;;  %v2070_v25 = vld [vmem:[%s2667_s1 + $0x218] sm:$0xff]  }
  0x1c   :  { %1800 = vmatprep.subr.bf16.mxu0 %v2013_v28  ;;  %v2068_v23 = vld [vmem:[%s2667_s1 + $0x290] sm:$0xff]   ;;  %v2071_v26 = vld [vmem:[%s2667_s1 + $0x2d8] sm:$0xff]   ;;  %v2073_v28 = vld [vmem:[%s2667_s1 + $0x260] sm:$0xff]  }
  0x1d   :  { %1821 = vmatpush3.bf16.msra.mxu1 %v2012_v27  ;;  %v2072_v27 = vld [vmem:[%s2667_s1 + $0x298] sm:$0xff]   ;;  %v2076_v31 = vld [vmem:[%s2667_s1 + $0x2a0] sm:$0xff]   ;;  %v2078_v33 = vld [vmem:[%s2667_s1 + $0x228] sm:$0xff]  }
  0x1e   :  { %1822 = vmatprep.subr.bf16.mxu1 %v2015_v30  ;;  %v2075_v30 = vld [vmem:[%s2667_s1 + $0x2e0] sm:$0xff]   ;;  %v2081_v36 = vld [vmem:[%s2667_s1 + $0x270] sm:$0xff]  }
  0x1f   :  { %1801 = vmatpush3.bf16.msra.mxu0 %v2014_v29  ;;  %v2074_v29 = vld [vmem:[%s2667_s1 + $0x220] sm:$0xff]   ;;  %v2083_v38 = vld [vmem:[%s2667_s1 + $0x2f0] sm:$0xff]  }
  0x20   :  { %1830 = vmatprep.subr.bf16.mxu0 %v2019_v35  ;;  %v2080_v35 = vld [vmem:[%s2667_s1 + $0x2a8] sm:$0xff]   ;;  %v2112_v5 = vld [vmem:[%s2667_s1 + $0x3a0] sm:$0xff]   ;;  %v2117_v10 = vld [vmem:[%s2667_s1 + $0x370] sm:$0xff]  }
  0x21   :  { %1823 = vmatpush3.bf16.msra.mxu1 %v2018_v34  ;;  %v2079_v34 = vld [vmem:[%s2667_s1 + $0x2e8] sm:$0xff]  }
  0x22   :  { %1280 = vmatmul.mubr.bf16.vlgmr.msra.gmra.mrb[0].mxu0 %v1624_v32  ;;  %1852 = vmatprep.subr.bf16.mxu1 %v2023_v40  ;;  %v2077_v32 = vld [vmem:[%s2667_s1 + $0x268] sm:$0xff]   ;;  %v2085_v40 = vld [vmem:[%s2667_s1 + $0x278] sm:$0xff]  }
  0x23   :  { %1831 = vmatpush3.bf16.msra.mxu0 %v2022_v39  ;;  %1359 = vmatprep.mubr.bf16.mxu0 %v1629_v7  ;;  %v2084_v39 = vld [vmem:[%s2667_s1 + $0x2b0] sm:$0xff]   ;;  %v2114_v7 = vld [vmem:[%s2667_s1 + $0x328] sm:$0xff]  }
  0x24   :  { %1320 = vmatmul.mubr.bf16.vlgmr.msra.gmra.mrb[0].mxu1 %v1626_v37  ;;  %1832 = vmatprep.subr.bf16.mxu0 %v2025_v42  ;;  %v2082_v37 = vld [vmem:[%s2667_s1 + $0x230] sm:$0xff]   ;;  %v2087_v42 = vld [vmem:[%s2667_s1 + $0x2f8] sm:$0xff]  }
  0x25   :  { %1853 = vmatpush3.bf16.msra.mxu1 %v2024_v41  ;;  %1399 = vmatprep.mubr.bf16.mxu1 %v1631_v12  ;;  %v2086_v41 = vld [vmem:[%s2667_s1 + $0x238] sm:$0xff]   ;;  %v2119_v12 = vld [vmem:[%s2667_s1 + $0x3f0] sm:$0xff]  }
  0x26   :  { %1854 = vmatprep.subr.bf16.mxu1 %v2027_v44 }
  0x27   :  { %1833 = vmatpush3.bf16.msra.mxu0 %v2026_v43  ;;  %v20_v43 = vld [vmem:[%s2666_s0 + $0x20] sm:$0xff] }
  0x28   :  { %1834 = vmatprep.subr.bf16.mxu0 %v2029_v46  ;;  %v1632_v44 = vcombine.low %v20_v43, %v20_v43  ;;  %v2090_v46 = vld [vmem:[%s2667_s1 + $0x2b8] sm:$0xff]  }
  0x29   :  { %1855 = vmatpush3.bf16.msra.mxu1 %v2028_v45  ;;  %v1633_v45 = vcombine.high %v20_v43, %v20_v43 }
  0x2a   :  { %1856 = vmatprep.subr.bf16.mxu1 %v2031_v48  ;;  %v21_v48 = vld [vmem:[%s2666_s0 + $0x28] sm:$0xff] }
  0x2b   :  { %1835 = vmatpush3.bf16.msra.mxu0 %v2030_v47  ;;  %v2091_v47 = vld [vmem:[%s2667_s1 + $0x340] sm:$0xff]  }
  0x2c   :  { %1836 = vmatprep.subr.bf16.mxu0 %v2033_v50  ;;  %v1635_v50 = vcombine.high %v21_v48, %v21_v48 }
  0x2d   :  { %1857 = vmatpush3.bf16.msra.mxu1 %v2032_v49  ;;  %v1634_v49 = vcombine.low %v21_v48, %v21_v48 }
  0x2e   :  { %1858 = vmatprep.subr.bf16.mxu1 %v2035_v52  ;;  %v2095_v52 = vld [vmem:[%s2667_s1 + $0x3c0] sm:$0xff]  }
  0x2f   :  { %1837 = vmatpush3.bf16.msra.mxu0 %v2034_v51  ;;  %v2094_v51 = vld [vmem:[%s2667_s1 + $0x300] sm:$0xff]  }
  0x30   :  { %1838 = vmatprep.subr.bf16.mxu0 %v2037_v54  ;;  %v2097_v54 = vld [vmem:[%s2667_s1 + $0x348] sm:$0xff]  }
  0x31   :  { %1859 = vmatpush3.bf16.msra.mxu1 %v2036_v53  ;;  %v2096_v53 = vld [vmem:[%s2667_s1 + $0x380] sm:$0xff]  }
  0x32   :  { %1860 = vmatprep.subr.bf16.mxu1 %v2039_v56  ;;  %v2099_v56 = vld [vmem:[%s2667_s1 + $0x3c8] sm:$0xff]  }
  0x33   :  { %1839 = vmatpush3.bf16.msra.mxu0 %v2038_v55  ;;  %v2098_v55 = vld [vmem:[%s2667_s1 + $0x308] sm:$0xff]  }
  0x34   :  { %1840 = vmatprep.subr.bf16.mxu0 %v2041_v58  ;;  %v2101_v58 = vld [vmem:[%s2667_s1 + $0x350] sm:$0xff]  }
  0x35   :  { %1861 = vmatpush3.bf16.msra.mxu1 %v2040_v57  ;;  %v2100_v57 = vld [vmem:[%s2667_s1 + $0x388] sm:$0xff]  }
  0x36   :  { %1862 = vmatprep.subr.bf16.mxu1 %v2043_v60  ;;  %v2103_v60 = vld [vmem:[%s2667_s1 + $0x3d0] sm:$0xff]  }
  0x37   :  { %1841 = vmatpush3.bf16.msra.mxu0 %v2042_v59  ;;  %v2102_v59 = vld [vmem:[%s2667_s1 + $0x310] sm:$0xff]  }
  0x38   :  { %1842 = vmatprep.subr.bf16.mxu0 %v2045_v62  ;;  %v2105_v62 = vld [vmem:[%s2667_s1 + $0x358] sm:$0xff]  }
  0x39   :  { %1863 = vmatpush3.bf16.msra.mxu1 %v2044_v61  ;;  %v2104_v61 = vld [vmem:[%s2667_s1 + $0x390] sm:$0xff]  }
  0x3a   :  { %1864 = vmatprep.subr.bf16.mxu1 %v2047_v0  ;;  %v2107_v0 = vld [vmem:[%s2667_s1 + $0x3d8] sm:$0xff]  }
  0x3b   :  { %1843 = vmatpush3.bf16.msra.mxu0 %v2046_v63  ;;  %v2106_v63 = vld [vmem:[%s2667_s1 + $0x318] sm:$0xff]  }
  0x3c   :  { %1844 = vmatprep.subr.bf16.mxu0 %v2049_v2  ;;  %v2109_v2 = vld [vmem:[%s2667_s1 + $0x360] sm:$0xff]  }
  0x3d   :  { %1865 = vmatpush3.bf16.msra.mxu1 %v2048_v1  ;;  %v2108_v1 = vld [vmem:[%s2667_s1 + $0x398] sm:$0xff]  }
  0x3e   :  { %1866 = vmatprep.subr.bf16.mxu1 %v2051_v4  ;;  %v2111_v4 = vld [vmem:[%s2667_s1 + $0x3e0] sm:$0xff]  }
  0x3f   :  { %1845 = vmatpush3.bf16.msra.mxu0 %v2050_v3  ;;  %v2110_v3 = vld [vmem:[%s2667_s1 + $0x320] sm:$0xff]  }
  0x40   :  { %1874 = vmatprep.subr.bf16.mxu0 %v2055_v9  ;;  %v2116_v9 = vld [vmem:[%s2667_s1 + $0x3a8] sm:$0xff]  }
  0x41   :  { %1867 = vmatpush3.bf16.msra.mxu1 %v2054_v8  ;;  %v2115_v8 = vld [vmem:[%s2667_s1 + $0x3e8] sm:$0xff]  }
  0x42   :  { %1360 = vmatmul.mubr.bf16.vlgmr.msra.gmra.mrb[4].mxu0 %v1628_v6  ;;  %1896 = vmatprep.subr.bf16.mxu1 %v2059_v14  ;;  %v2113_v6 = vld [vmem:[%s2667_s1 + $0x368] sm:$0xff]   ;;  %v2121_v14 = vld [vmem:[%s2667_s1 + $0x378] sm:$0xff]  }
  0x43   :  { %1875 = vmatpush3.bf16.msra.mxu0 %v2058_v13  ;;  %1439 = vmatprep.mubr.bf16.mxu0 %v1633_v45  ;;  %v2120_v13 = vld [vmem:[%s2667_s1 + $0x3b0] sm:$0xff]  }
  0x44   :  { %1400 = vmatmul.mubr.bf16.vlgmr.msra.gmra.mrb[4].mxu1 %v1630_v11  ;;  %1876 = vmatprep.subr.bf16.mxu0 %v2061_v16  ;;  %v2118_v11 = vld [vmem:[%s2667_s1 + $0x330] sm:$0xff]   ;;  %v2123_v16 = vld [vmem:[%s2667_s1 + $0x3f8] sm:$0xff]  }
  0x45   :  { %1897 = vmatpush3.bf16.msra.mxu1 %v2060_v15  ;;  %1479 = vmatprep.mubr.bf16.mxu1 %v1635_v50  ;;  %v2122_v15 = vld [vmem:[%s2667_s1 + $0x338] sm:$0xff]  }
  0x46   :  { %1898 = vmatprep.subr.bf16.mxu1 %v2063_v18 }
  0x47   :  { %1877 = vmatpush3.bf16.msra.mxu0 %v2062_v17  ;;  %v22_v17 = vld [vmem:[%s2666_s0 + $0x30] sm:$0xff] }
  0x48   :  { %1878 = vmatprep.subr.bf16.mxu0 %v2065_v20  ;;  %v1636_v18 = vcombine.low %v22_v17, %v22_v17  ;;  %v2126_v20 = vld [vmem:[%s2667_s1 + $0x3b8] sm:$0xff]  }
  0x49   :  { %1899 = vmatpush3.bf16.msra.mxu1 %v2064_v19  ;;  %v1637_v19 = vcombine.high %v22_v17, %v22_v17 }
  0x4a   :  { %1900 = vmatprep.subr.bf16.mxu1 %v2067_v22  ;;  %v23_v22 = vld [vmem:[%s2666_s0 + $0x38] sm:$0xff] }
  0x4b   :  { %1879 = vmatpush3.bf16.msra.mxu0 %v2066_v21  ;;  %v2127_v21 = vld [vmem:[%s2667_s1 + $0x440] sm:$0xff]  }
  0x4c   :  { %1880 = vmatprep.subr.bf16.mxu0 %v2069_v24  ;;  %v1639_v24 = vcombine.high %v23_v22, %v23_v22 }
  0x4d   :  { %1901 = vmatpush3.bf16.msra.mxu1 %v2068_v23  ;;  %v1638_v23 = vcombine.low %v23_v22, %v23_v22 }
  0x4e   :  { %1902 = vmatprep.subr.bf16.mxu1 %v2071_v26  ;;  %v2131_v26 = vld [vmem:[%s2667_s1 + $0x448] sm:$0xff]  }
  0x4f   :  { %1881 = vmatpush3.bf16.msra.mxu0 %v2070_v25  ;;  %v2130_v25 = vld [vmem:[%s2667_s1 + $0x400] sm:$0xff]  }
  0x50   :  { %1882 = vmatprep.subr.bf16.mxu0 %v2073_v28  ;;  %v2133_v28 = vld [vmem:[%s2667_s1 + $0x450] sm:$0xff]  }
  0x51   :  { %1903 = vmatpush3.bf16.msra.mxu1 %v2072_v27  ;;  %v2132_v27 = vld [vmem:[%s2667_s1 + $0x408] sm:$0xff]  }
  0x52   :  { %1904 = vmatprep.subr.bf16.mxu1 %v2075_v30  ;;  %v2135_v30 = vld [vmem:[%s2667_s1 + $0x458] sm:$0xff]  }
  0x53   :  { %1883 = vmatpush3.bf16.msra.mxu0 %v2074_v29  ;;  %v2134_v29 = vld [vmem:[%s2667_s1 + $0x410] sm:$0xff]  }
  0x54   :  { %1884 = vmatprep.subr.bf16.mxu0 %v2077_v32  ;;  %v2137_v32 = vld [vmem:[%s2667_s1 + $0x460] sm:$0xff]  }
  0x55   :  { %1905 = vmatpush3.bf16.msra.mxu1 %v2076_v31  ;;  %v2136_v31 = vld [vmem:[%s2667_s1 + $0x418] sm:$0xff]  }
  0x56   :  { %1906 = vmatprep.subr.bf16.mxu1 %v2079_v34  ;;  %v24_v34 = vld [vmem:[%s2666_s0 + $0x40] sm:$0xff] }
  0x57   :  { %1885 = vmatpush3.bf16.msra.mxu0 %v2078_v33  ;;  %v2138_v33 = vld [vmem:[%s2667_s1 + $0x420] sm:$0xff]  }
  0x58   :  { %1886 = vmatprep.subr.bf16.mxu0 %v2081_v36  ;;  %v1641_v36 = vcombine.high %v24_v34, %v24_v34 }
  0x59   :  { %1907 = vmatpush3.bf16.msra.mxu1 %v2080_v35  ;;  %v2139_v35 = vld [vmem:[%s2667_s1 + $0x468] sm:$0xff]  }
  0x5a   :  { %1908 = vmatprep.subr.bf16.mxu1 %v2083_v38 }
  0x5b   :  { %1887 = vmatpush3.bf16.msra.mxu0 %v2082_v37 }
  0x5c   :  { %1888 = vmatprep.subr.bf16.mxu0 %v2085_v40 }
  0x5d   :  { %1909 = vmatpush3.bf16.msra.mxu1 %v2084_v39 }
  0x5e   :  { %1910 = vmatprep.subr.bf16.mxu1 %v2087_v42 }
  0x5f   :  { %1889 = vmatpush3.bf16.msra.mxu0 %v2086_v41 }
  0x60   :  { %1918 = vmatprep.subr.bf16.mxu0 %v2091_v47 }
  0x61   :  { %1911 = vmatpush3.bf16.msra.mxu1 %v2090_v46 }
  0x62   :  { %1440 = vmatmul.mubr.bf16.vlgmr.msra.gmra.mrb[8].mxu0 %v1632_v44  ;;  %1940 = vmatprep.subr.bf16.mxu1 %v2095_v52 }
  0x63   :  { %1919 = vmatpush3.bf16.msra.mxu0 %v2094_v51  ;;  %1519 = vmatprep.mubr.bf16.mxu0 %v1637_v19 }
  0x64   :  { %1480 = vmatmul.mubr.bf16.vlgmr.msra.gmra.mrb[8].mxu1 %v1634_v49  ;;  %1920 = vmatprep.subr.bf16.mxu0 %v2097_v54 }
  0x65   :  { %1941 = vmatpush3.bf16.msra.mxu1 %v2096_v53  ;;  %1559 = vmatprep.mubr.bf16.mxu1 %v1639_v24 }
  0x66   :  { %1942 = vmatprep.subr.bf16.mxu1 %v2099_v56 }
  0x67   :  { %1921 = vmatpush3.bf16.msra.mxu0 %v2098_v55 }
  0x68   :  { %1922 = vmatprep.subr.bf16.mxu0 %v2101_v58 }
  0x69   :  { %1943 = vmatpush3.bf16.msra.mxu1 %v2100_v57 }
  0x6a   :  { %1944 = vmatprep.subr.bf16.mxu1 %v2103_v60 }
  0x6b   :  { %1923 = vmatpush3.bf16.msra.mxu0 %v2102_v59 }
  0x6c   :  { %1924 = vmatprep.subr.bf16.mxu0 %v2105_v62 }
  0x6d   :  { %1945 = vmatpush3.bf16.msra.mxu1 %v2104_v61 }
  0x6e   :  { %1946 = vmatprep.subr.bf16.mxu1 %v2107_v0 }
  0x6f   :  { %1925 = vmatpush3.bf16.msra.mxu0 %v2106_v63 }
  0x70   :  { %1926 = vmatprep.subr.bf16.mxu0 %v2109_v2 }
  0x71   :  { %1947 = vmatpush3.bf16.msra.mxu1 %v2108_v1 }
  0x72   :  { %1948 = vmatprep.subr.bf16.mxu1 %v2111_v4 }
  0x73   :  { %1927 = vmatpush3.bf16.msra.mxu0 %v2110_v3 }
  0x74   :  { %1928 = vmatprep.subr.bf16.mxu0 %v2113_v6 }
  0x75   :  { %1949 = vmatpush3.bf16.msra.mxu1 %v2112_v5 }
  0x76   :  { %1950 = vmatprep.subr.bf16.mxu1 %v2115_v8 }
  0x77   :  { %1929 = vmatpush3.bf16.msra.mxu0 %v2114_v7 }
  0x78   :  { %1930 = vmatprep.subr.bf16.mxu0 %v2117_v10 }
  0x79   :  { %1951 = vmatpush3.bf16.msra.mxu1 %v2116_v9 }
  0x7a   :  { %1952 = vmatprep.subr.bf16.mxu1 %v2119_v12 }
  0x7b   :  { %1931 = vmatpush3.bf16.msra.mxu0 %v2118_v11 }
  0x7c   :  { %1932 = vmatprep.subr.bf16.mxu0 %v2121_v14 }
  0x7d   :  { %1953 = vmatpush3.bf16.msra.mxu1 %v2120_v13 }
  0x7e   :  { %1954 = vmatprep.subr.bf16.mxu1 %v2123_v16 }
  0x7f   :  { %1933 = vmatpush3.bf16.msra.mxu0 %v2122_v15 }
  0x80   :  { %1962 = vmatprep.subr.bf16.mxu0 %v2127_v21 }
  0x81   :  { %1955 = vmatpush3.bf16.msra.mxu1 %v2126_v20 }
  0x82   :  { %1520 = vmatmul.mubr.bf16.vlgmr.msra.gmra.mrb[12].mxu0 %v1636_v18 }
  0x83   :  { %1963 = vmatpush3.bf16.msra.mxu0 %v2130_v25 }
  0x84   :  { %1560 = vmatmul.mubr.bf16.vlgmr.msra.gmra.mrb[12].mxu1 %v1638_v23  ;;  %1964 = vmatprep.subr.bf16.mxu0 %v2131_v26 }
  0x87   :  { %1965 = vmatpush3.bf16.msra.mxu0 %v2132_v27 }
  0x88   :  { %1966 = vmatprep.subr.bf16.mxu0 %v2133_v28 }
  0x8b   :  { %1967 = vmatpush3.bf16.msra.mxu0 %v2134_v29 }
  0x8c   :  { %1968 = vmatprep.subr.bf16.mxu0 %v2135_v30 }
  0x8f   :  { %1969 = vmatpush3.bf16.msra.mxu0 %v2136_v31 }
  0x90   :  { %1970 = vmatprep.subr.bf16.mxu0 %v2137_v32 }
  0x91   :  { %8 = vsyncpa [#allocation3], 0  ;;  %1599 = vmatprep.mubr.bf16.mxu0 %v1641_v36  ;;  %v2140_v37 = vld [vmem:[%s2667_s1 + $0x428] sm:$0xff]   ;;  %v2141_v38 = vld [vmem:[%s2667_s1 + $0x470] sm:$0xff]   ;;  %v1640_v42 = vcombine.low %v24_v34, %v24_v34 }
  0x92   :  { %v2142_v39 = vld [vmem:[%s2667_s1 + $0x430] sm:$0xff]   ;;  %v2143_v40 = vld [vmem:[%s2667_s1 + $0x478] sm:$0xff]   ;;  %v1623_v44 = vld [vmem:[%s2668_s2] ss:$0 sm:$0xff] }
  0x93   :  { %1971 = vmatpush3.bf16.msra.mxu0 %v2138_v33  ;;  %v2144_v41 = vld [vmem:[%s2667_s1 + $0x438] sm:$0xff]   ;;  %s2171_s1 = smov [#allocation2]  }
  0x94   :  { %1972 = vmatprep.subr.bf16.mxu0 %v2139_v35  ;;  %s1615_s2 = sshll.u32 %s2171_s1, 4  ;;  %s1616_s2 = int_to_ptr.vmem [resolvable:$true] %s1615_s2 }
  0x95   :  { %s2147_s22 = scalar_lea.vmem %s1616_s2, 128  ;;  %p2152_p1 = scmp.lt.s32.totalorder %s1616_s2, %s1616_s2 }
  0x96   :  { %p2148_p0 = scmp.ne.s32.totalorder %s1616_s2, %s2147_s22  ;;  %p2153_p2 = scmp.lt.s32.totalorder %s2147_s22, %s2147_s22 }
  0x97   :  { %1973 = vmatpush3.bf16.msra.mxu0 %v2140_v37 }
  0x98   :  { %1974 = vmatprep.subr.bf16.mxu0 %v2141_v38  ;;  %p2154_p3 = por %p2153_p2, %p2152_p1 }
  0x9a   :  { %p2155_p4 = pnand %p2154_p3, %p2148_p0 }
  0x9b   :  { %1975 = vmatpush3.bf16.msra.mxu0 %v2142_v39 }
  0x9c   :  { %1976 = vmatprep.subr.bf16.mxu0 %v2143_v40 }
  0x9f   :  { %1977 = vmatpush3.bf16.msra.mxu0 %v2144_v41 }
  0xa2   :  { %1600 = vmatmul.mubr.bf16.vlgmr.msra.gmra.mrb[16].mxu0 %v1640_v42 }
  0xf5   :  { %v1802_v43 = vpop.f32.mrb[0].mxu0 }
  0xf6   :  { %v1803_v45 = vpop.f32.mrb[1].mxu0 }
  0xf7   :  { %v1804_v46 = vadd.f32 %v1803_v45, %v1802_v43  ;;  %v1805_v47 = vpop.f32.mrb[2].mxu0  ;;  %v1824_v48 = vpop.f32.mrb[0].mxu1 }
  0xf8   :  { %v1806_v49 = vpop.f32.mrb[3].mxu0  ;;  %v1825_v50 = vpop.f32.mrb[1].mxu1 }
  0xf9   :  { %v1282_v51 = vadd.f32 %v1804_v46, %v1623_v44  ;;  %v1826_v52 = vadd.f32 %v1825_v50, %v1824_v48  ;;  %v1827_v53 = vpop.f32.mrb[2].mxu1 }
  0xfa   :  { %v1828_v54 = vpop.f32.mrb[3].mxu1 }
  0xfb   :  { %v1322_v55 = vadd.f32 %v1826_v52, %v1282_v51 }
 0x115   :  { %v1846_v56 = vpop.f32.mrb[4].mxu0 }
 0x116   :  { %v1847_v57 = vpop.f32.mrb[5].mxu0 }
 0x117   :  { %v1848_v58 = vadd.f32 %v1847_v57, %v1846_v56  ;;  %v1849_v59 = vpop.f32.mrb[6].mxu0  ;;  %v1868_v60 = vpop.f32.mrb[4].mxu1 }
 0x118   :  { %v1850_v61 = vpop.f32.mrb[7].mxu0  ;;  %v1869_v63 = vpop.f32.mrb[5].mxu1 }
 0x119   :  { %v1362_v62 = vadd.f32 %v1848_v58, %v1322_v55  ;;  %v1870_v0 = vadd.f32 %v1869_v63, %v1868_v60  ;;  %v1871_v1 = vpop.f32.mrb[6].mxu1 }
 0x11a   :  { %v1872_v2 = vpop.f32.mrb[7].mxu1 }
 0x11b   :  { %v1402_v3 = vadd.f32 %v1870_v0, %v1362_v62 }
 0x135   :  { %v1890_v4 = vpop.f32.mrb[8].mxu0 }
 0x136   :  { %v1891_v5 = vpop.f32.mrb[9].mxu0 }
 0x137   :  { %v1892_v6 = vadd.f32 %v1891_v5, %v1890_v4  ;;  %v1893_v7 = vpop.f32.mrb[10].mxu0  ;;  %v1912_v8 = vpop.f32.mrb[8].mxu1 }
 0x138   :  { %v1894_v9 = vpop.f32.mrb[11].mxu0  ;;  %v1913_v10 = vpop.f32.mrb[9].mxu1 }
 0x139   :  { %v1442_v11 = vadd.f32 %v1892_v6, %v1402_v3  ;;  %v1914_v12 = vadd.f32 %v1913_v10, %v1912_v8  ;;  %v1915_v13 = vpop.f32.mrb[10].mxu1 }
 0x13a   :  { %v1916_v14 = vpop.f32.mrb[11].mxu1 }
 0x13b   :  { %v1482_v15 = vadd.f32 %v1914_v12, %v1442_v11 }
 0x155   :  { %v1934_v16 = vpop.f32.mrb[12].mxu0 }
 0x156   :  { %v1935_v17 = vpop.f32.mrb[13].mxu0 }
 0x157   :  { %v1936_v18 = vadd.f32 %v1935_v17, %v1934_v16  ;;  %v1937_v19 = vpop.f32.mrb[14].mxu0  ;;  %v1956_v20 = vpop.f32.mrb[12].mxu1 }
 0x158   :  { %v1938_v21 = vpop.f32.mrb[15].mxu0  ;;  %v1957_v22 = vpop.f32.mrb[13].mxu1 }
 0x159   :  { %v1522_v23 = vadd.f32 %v1936_v18, %v1482_v15  ;;  %v1958_v24 = vadd.f32 %v1957_v22, %v1956_v20  ;;  %v1959_v25 = vpop.f32.mrb[14].mxu1 }
 0x15a   :  { %v1960_v26 = vpop.f32.mrb[15].mxu1 }
 0x15b   :  { %v1562_v27 = vadd.f32 %v1958_v24, %v1522_v23 }
 0x175   :  { %v1978_v28 = vpop.f32.mrb[16].mxu0 }
 0x176   :  { %v1979_v29 = vpop.f32.mrb[17].mxu0 }
 0x177   :  { %v1980_v30 = vadd.f32 %v1979_v29, %v1978_v28  ;;  %v1981_v31 = vpop.f32.mrb[18].mxu0 }
 0x178   :  { %v1982_v32 = vpop.f32.mrb[19].mxu0 }
 0x179   :  { %v1602_v33 = vadd.f32 %v1980_v30, %v1562_v27 }
 0x17b   :  { %v1607_v34 = vmax.f32 %v1602_v33, 0.0 }
 0x17d   :  { %1608 = vst [vmem:[#allocation2] sm:$0xff] %v1607_v34 }
 0x17e   :  { %2158 = shalt.err (!%p2155_p4)
}
 0x17f   :  { %s2159_s25 = scalar_lea.hbm %s2669_s3, 128 }
 0x180   :  { %p2160_p5 = scmp.ne.s32.totalorder %s2669_s3, %s2159_s25  ;;  %p2163_p6 = scmp.lt.u32.totalorder %s2159_s25, %s2669_s3 }
 0x182   :  { %p2165_p7 = pnand %p2163_p6, %p2160_p5 }
 0x184   :  { %2168 = shalt.err (!%p2165_p7)
}
 0x185   :  { %1618 = dma.vmem_to_hbm [thread:$0]  %s1616_s2, 128, %s2669_s3, [#allocation3]  }
 0x186   :  { %2169 = dma.done.wait [#allocation3], 128  }
 0x187   :  { %2170 = vsyncadd [#allocation3], 4294967168 }
 0x188   :  { %1622 = vsyncpa [#allocation3], 1 }

</bundles_post_ra>
